<compile_context>
chip_gen: v7x
topology: tpu7x:2x2x1
jax: 0.10.0
libtpu: 0.0.40
codegen_flags: <defaults>
</compile_context>

<pallas_src>
import functools

import jax
import jax.numpy as jnp
from jax.experimental import pallas as pl
from jax.experimental.pallas import tpu as pltpu

_LANE = 128


def _round_up(n, m):
    return (n + m - 1) // m * m


@functools.lru_cache(maxsize=None)
def _vmem_capacity_bytes():
    """Physical VMEM per core; safe fallback if the query is unavailable."""
    try:
        return int(pltpu.get_tpu_info().vmem_capacity_bytes)
    except Exception:
        return 64 * 1024 * 1024  # conservative (v7x per-TC size)


def _vmem_limit_bytes():
    return int(_vmem_capacity_bytes() * 0.75)


def _choose_time_chunk(T, bp, dp, cap=64):
    """Largest time-chunk whose chunk-resident VMEM fits ~60% of capacity."""
    budget = int(_vmem_capacity_bytes() * 0.6)
    # resident: 2 weights (bf16, single-buffered) + h/c state + slack
    fixed = 2 * (dp * 4 * dp * 2) + 2 * (bp * dp * 4) + (1 << 20)
    # per timestep of a chunk: x bf16 (x2 buf) + y bf16 (x2 buf) + xp f32 scratch
    per_t = bp * dp * (4 + 4 + 16)
    tc = min(cap, T, max(1, (budget - fixed) // per_t))
    return int(max(1, tc))


# --------------------------------------------------------------------------
# Fused per-layer kernel: chunk input projection + serial recurrence.
# --------------------------------------------------------------------------
def _lstm_layer_kernel(x_ref, wih_hbm, whh_hbm, b_ref, y_ref,
                       wih_vmem, whh_vmem, xp_scr, h_scr, c_scr, w_sem,
                       *, tc, bp, dp):
    """One time-chunk of a single LSTM layer.

    x_ref   : (Tc*Bp, Dp)   bf16  layer input chunk (time-major rows, Bp rows/step)
    wih_hbm : (Dp, 4*Dp)    bf16  HBM ref (memory_space=pl.ANY)
    whh_hbm : (Dp, 4*Dp)    bf16  HBM ref (memory_space=pl.ANY)
    b_ref   : (1, 4*Dp)     f32   b_ih + b_hh (gate order i,f,o,g)
    y_ref   : (Tc*Bp, Dp)   bf16  hidden states for this chunk
    wih_vmem/whh_vmem : resident single-buffered weight copies (VMEM scratch)
    xp_scr  : (Tc*Bp, 4*Dp) f32   chunk input projection
    h_scr, c_scr : (Bp, Dp) f32   state carried across chunks (grid steps)
    """
    @pl.when(pl.program_id(0) == 0)
    def _():
        cp_ih = pltpu.make_async_copy(wih_hbm, wih_vmem, w_sem.at[0])
        cp_hh = pltpu.make_async_copy(whh_hbm, whh_vmem, w_sem.at[1])
        cp_ih.start()
        cp_hh.start()
        h_scr[...] = jnp.zeros_like(h_scr)
        c_scr[...] = jnp.zeros_like(c_scr)
        cp_ih.wait()
        cp_hh.wait()

    # Chunk-level input projection (off the per-step serial path): one MXU
    # matmul with M = Tc*Bp rows; never touches HBM.
    xp_scr[...] = (
        jnp.dot(x_ref[...], wih_vmem[...], preferred_element_type=jnp.float32)
        + b_ref[...]
    )

    w_hh = whh_vmem[...]          # (Dp, 4*Dp) bf16, resident; loaded once per chunk
    g3 = 3 * dp

    def step(t, carry):
        h_prev, c_prev = carry
        row = pl.multiple_of(t * bp, bp)           # sublane-aligned (Bp % 8 == 0)
        gates = xp_scr[pl.ds(row, bp), :] + jnp.dot(
            h_prev.astype(w_hh.dtype), w_hh, preferred_element_type=jnp.float32
        )                                          # (Bp, 4*Dp) f32
        # sigmoid via tanh identity -> single EUP pass over the i|f|o slab.
        sig = 0.5 * jnp.tanh(0.5 * gates[:, :g3]) + 0.5
        g = jnp.tanh(gates[:, g3:])
        i_g = sig[:, :dp]
        f_g = sig[:, dp:2 * dp]
        o_g = sig[:, 2 * dp:g3]
        c_new = f_g * c_prev + i_g * g
        h_new = o_g * jnp.tanh(c_new)
        y_ref[pl.ds(row, bp), :] = h_new.astype(y_ref.dtype)
        return h_new, c_new

    h_last, c_last = jax.lax.fori_loop(
        0, tc, step, (h_scr[...], c_scr[...]), unroll=min(tc, 8)
    )
    h_scr[...] = h_last
    c_scr[...] = c_last


def _run_lstm_layer(h2, w_ih_p, w_hh_p, b_p, *, tc, tp, bp, dp):
    """h2: (Tp*Bp, Dp) bf16 layer input -> (Tp*Bp, Dp) bf16 layer output."""
    G = 4 * dp
    kernel = functools.partial(_lstm_layer_kernel, tc=tc, bp=bp, dp=dp)
    return pl.pallas_call(
        kernel,
        out_shape=jax.ShapeDtypeStruct((tp * bp, dp), jnp.bfloat16),
        grid_spec=pltpu.PrefetchScalarGridSpec(
            num_scalar_prefetch=0,
            grid=(tp // tc,),
            in_specs=[
                pl.BlockSpec((tc * bp, dp), lambda c: (c, 0)),   # x chunk
                pl.BlockSpec(memory_space=pl.ANY),               # W_ih (HBM)
                pl.BlockSpec(memory_space=pl.ANY),               # W_hh (HBM)
                pl.BlockSpec((1, G), lambda c: (0, 0)),          # fused bias
            ],
            out_specs=pl.BlockSpec((tc * bp, dp), lambda c: (c, 0)),
            scratch_shapes=[
                pltpu.VMEM((dp, G), jnp.bfloat16),        # W_ih resident
                pltpu.VMEM((dp, G), jnp.bfloat16),        # W_hh resident
                pltpu.VMEM((tc * bp, G), jnp.float32),    # chunk x_proj
                pltpu.VMEM((bp, dp), jnp.float32),        # h state
                pltpu.VMEM((bp, dp), jnp.float32),        # c state
                pltpu.SemaphoreType.DMA((2,)),            # weight-load sems
            ],
        ),
        compiler_params=pltpu.CompilerParams(
            dimension_semantics=("arbitrary",),           # sequential recurrence
            vmem_limit_bytes=_vmem_limit_bytes(),
        ),
    )(h2, w_ih_p, w_hh_p, b_p)


# --------------------------------------------------------------------------
# Parameter init / packing (packing runs ONCE, outside the jitted forward)
# --------------------------------------------------------------------------
def init_lstm_params(key, dim, num_layers=2):
    """Deterministic init matching nn.LSTM parameter shapes (uniform(-k, k))."""
    k = 1.0 / jnp.sqrt(jnp.float32(dim))
    params = []
    for _ in range(num_layers):
        key, k1, k2, k3, k4 = jax.random.split(key, 5)
        w_ih = jax.random.uniform(k1, (4 * dim, dim), jnp.float32, -k, k)
        w_hh = jax.random.uniform(k2, (4 * dim, dim), jnp.float32, -k, k)
        b_ih = jax.random.uniform(k3, (4 * dim,), jnp.float32, -k, k)
        b_hh = jax.random.uniform(k4, (4 * dim,), jnp.float32, -k, k)
        params.append((w_ih, w_hh, b_ih, b_hh))
    return params


def pack_lstm_params(params, dim, lane=_LANE):
    """Pre-pack nn.LSTM params for the Pallas kernel.

    - reorder gates (i,f,g,o) -> (i,f,o,g) so sigmoid/tanh hit contiguous slabs
    - transpose to (in, 4*out) so the kernel computes x @ W
    - zero-pad dim up to a multiple of 128 (lane-dense loads/stores)
    - weights -> bf16 (MXU-native); combined bias stays f32 (folded into x_proj)
    """
    dp = _round_up(dim, lane)
    order = (0, 1, 3, 2)  # i, f, o, g

    def pack_w(w):
        w4 = w.reshape(4, dim, dim)                       # (gate, out, in)
        w4 = jnp.stack([w4[k] for k in order], axis=0)    # reorder gates
        w4 = jnp.transpose(w4, (2, 0, 1))                 # (in, gate, out)
        w4 = jnp.pad(w4, ((0, dp - dim), (0, 0), (0, dp - dim)))
        return w4.reshape(dp, 4 * dp).astype(jnp.bfloat16)

    packed = []
    for (w_ih, w_hh, b_ih, b_hh) in params:
        b = (b_ih + b_hh).reshape(4, dim)
        b = jnp.stack([b[k] for k in order], axis=0)
        b = jnp.pad(b, ((0, 0), (0, dp - dim))).reshape(1, 4 * dp)
        packed.append((pack_w(w_ih), pack_w(w_hh), b.astype(jnp.float32)))
    return packed, dp


# --------------------------------------------------------------------------
# Module forward + pure-JAX reference
# --------------------------------------------------------------------------
@functools.partial(jax.jit, static_argnames=("dp", "tc", "skip"))
def lstm_module_forward(x_bct, packed_params, *, dp, tc, skip=True):
    """EnCodec LSTM module forward.  x_bct: (B, C, T) -> (B, C, T)."""
    B, C, T = x_bct.shape
    bp = _round_up(max(B, 8), 8)        # batch >= one full sublane group
    tp = _round_up(T, tc)               # never silently drop trailing timesteps

    x_tbc = jnp.transpose(x_bct, (2, 0, 1)).astype(jnp.float32)     # (T, B, C)
    h3 = jnp.zeros((tp, bp, dp), jnp.bfloat16)
    h3 = h3.at[:T, :B, :C].set(x_tbc.astype(jnp.bfloat16))
    h = h3.reshape(tp * bp, dp)          # (Tp*Bp, Dp) bf16, time-major rows

    for (w_ih_p, w_hh_p, b_p) in packed_params:
        h = _run_lstm_layer(h, w_ih_p, w_hh_p, b_p, tc=tc, tp=tp, bp=bp, dp=dp)

    y = h.reshape(tp, bp, dp)[:T, :B, :C].astype(jnp.float32)        # (T, B, C)
    if skip:
        y = y + x_tbc
    return jnp.transpose(y, (1, 2, 0))                               # (B, C, T)


def lstm_module_reference(x_bct, params, skip=True):
    """Pure-JAX reference (lax.scan) mirroring torch.nn.LSTM semantics (f32)."""
    B, C, T = x_bct.shape
    x_tbc = jnp.transpose(x_bct, (2, 0, 1))
    h_seq = x_tbc
    for (w_ih, w_hh, b_ih, b_hh) in params:
        def step(carry, x_t, w_ih=w_ih, w_hh=w_hh, b_ih=b_ih, b_hh=b_hh):
            h, c = carry
            gates = x_t @ w_ih.T + b_ih + h @ w_hh.T + b_hh
            i, f, g, o = jnp.split(gates, 4, axis=-1)
            i, f, o = jax.nn.sigmoid(i), jax.nn.sigmoid(f), jax.nn.sigmoid(o)
            g = jnp.tanh(g)
            c = f * c + i * g
            h = o * jnp.tanh(c)
            return (h, c), h
        init = (jnp.zeros((B, C), jnp.float32), jnp.zeros((B, C), jnp.float32))
        _, h_seq = jax.lax.scan(step, init, h_seq)
    if skip:
        h_seq = h_seq + x_tbc
    return jnp.transpose(h_seq, (1, 2, 0))


if __name__ == "__main__":
    B, C, T = 2, 32, 8          # batch, channels (= LSTM dim), sequence length
    num_layers = 2

    key = jax.random.PRNGKey(0)
    kx, kp = jax.random.split(key)
    x = jax.random.normal(kx, (B, C, T), dtype=jnp.float32)
    params = init_lstm_params(kp, C, num_layers)

    packed_params, dp = pack_lstm_params(params, C)   # packed once, outside jit
    bp = _round_up(max(B, 8), 8)
    tc = _choose_time_chunk(T, bp, dp)

    y = lstm_module_forward(x, packed_params, dp=dp, tc=tc, skip=True)
    y = jax.block_until_ready(y)

    y_ref = lstm_module_reference(x, params, skip=True)
    assert y.shape == (B, C, T)
    # bf16 MXU operands / bf16 inter-layer h vs the pure-f32 reference -> loose tol.
    err = float(jnp.max(jnp.abs(y - y_ref)))
    assert jnp.allclose(y, y_ref, atol=5e-2, rtol=5e-2), (
        "mismatch vs reference: max abs err = %f" % err)

    print("KERNEL_OK")
</pallas_src>

<mosaic_0001>
module attributes {stable_mosaic.version = 11 : i64} {
  func.func @_lstm_layer_kernel(%arg0: i32, %arg1: memref<64x128xbf16, #tpu.memory_space<vmem>>, %arg2: memref<128x512xbf16, #tpu.memory_space<any>>, %arg3: memref<128x512xbf16, #tpu.memory_space<any>>, %arg4: memref<1x512xf32, #tpu.memory_space<vmem>>, %arg5: memref<64x128xbf16, #tpu.memory_space<vmem>>, %arg6: memref<128x512xbf16, #tpu.memory_space<vmem>>, %arg7: memref<128x512xbf16, #tpu.memory_space<vmem>>, %arg8: memref<64x512xf32, #tpu.memory_space<vmem>>, %arg9: memref<8x128xf32, #tpu.memory_space<vmem>>, %arg10: memref<8x128xf32, #tpu.memory_space<vmem>>, %arg11: memref<2x!tpu.dma_semaphore, #tpu.memory_space<semaphore_mem>>) attributes {dimension_semantics = [#tpu.dimension_semantics<arbitrary>], iteration_bounds = array<i64: 1>, scalar_prefetch = 0 : i64, scratch_operands = 6 : i64, tpu.core_type = #tpu.core_type<tc>, window_params = [{transform_indices = @transform_0, window_bounds = array<i64: 64, 128>}, {}, {}, {pipeline_mode = #tpu.pipeline_mode<synchronous>, transform_indices = @transform_3, window_bounds = array<i64: 1, 512>}, {transform_indices = @transform_4, window_bounds = array<i64: 64, 128>}]} {
    %c0_i32 = arith.constant 0 : i32
    %0 = arith.cmpi eq, %arg0, %c0_i32 : i32
    %1 = arith.extui %0 : i1 to i32
    %c0_i32_0 = arith.constant 0 : i32
    %2 = arith.cmpi ne, %1, %c0_i32_0 : i32
    scf.if %2 {
      %c0_i32_75 = arith.constant 0 : i32
      %239 = tpu.memref_slice %arg11[%c0_i32_75] : memref<2x!tpu.dma_semaphore, #tpu.memory_space<semaphore_mem>> -> memref<1x!tpu.dma_semaphore, #tpu.memory_space<semaphore_mem>>
      %240 = tpu.memref_squeeze %239 : memref<1x!tpu.dma_semaphore, #tpu.memory_space<semaphore_mem>> -> memref<!tpu.dma_semaphore, #tpu.memory_space<semaphore_mem>>
      tpu.enqueue_dma source(%arg2 : memref<128x512xbf16, #tpu.memory_space<any>>) target(%arg6 : memref<128x512xbf16, #tpu.memory_space<vmem>>) target_semaphore(%240 : memref<!tpu.dma_semaphore, #tpu.memory_space<semaphore_mem>>)
      %c1_i32_76 = arith.constant 1 : i32
      %241 = tpu.memref_slice %arg11[%c1_i32_76] : memref<2x!tpu.dma_semaphore, #tpu.memory_space<semaphore_mem>> -> memref<1x!tpu.dma_semaphore, #tpu.memory_space<semaphore_mem>>
      %242 = tpu.memref_squeeze %241 : memref<1x!tpu.dma_semaphore, #tpu.memory_space<semaphore_mem>> -> memref<!tpu.dma_semaphore, #tpu.memory_space<semaphore_mem>>
      tpu.enqueue_dma source(%arg3 : memref<128x512xbf16, #tpu.memory_space<any>>) target(%arg7 : memref<128x512xbf16, #tpu.memory_space<vmem>>) target_semaphore(%242 : memref<!tpu.dma_semaphore, #tpu.memory_space<semaphore_mem>>)
      %cst_77 = arith.constant 0.000000e+00 : f32
      %243 = vector.broadcast %cst_77 : f32 to vector<8x128xf32>
      %c0_78 = arith.constant 0 : index
      %c0_79 = arith.constant 0 : index
      %244 = vector.load %arg9[%c0_78, %c0_79] : memref<8x128xf32, #tpu.memory_space<vmem>>, vector<8x128xf32>
      tpu.vector_store %arg9[%c0_78, %c0_79], %243 {strides = array<i32>} : memref<8x128xf32, #tpu.memory_space<vmem>>, vector<8x128xf32>,
      %cst_80 = arith.constant 0.000000e+00 : f32
      %245 = vector.broadcast %cst_80 : f32 to vector<8x128xf32>
      %c0_81 = arith.constant 0 : index
      %c0_82 = arith.constant 0 : index
      %246 = vector.load %arg10[%c0_81, %c0_82] : memref<8x128xf32, #tpu.memory_space<vmem>>, vector<8x128xf32>
      tpu.vector_store %arg10[%c0_81, %c0_82], %245 {strides = array<i32>} : memref<8x128xf32, #tpu.memory_space<vmem>>, vector<8x128xf32>,
      %c0_i32_83 = arith.constant 0 : i32
      %247 = tpu.memref_slice %arg11[%c0_i32_83] : memref<2x!tpu.dma_semaphore, #tpu.memory_space<semaphore_mem>> -> memref<1x!tpu.dma_semaphore, #tpu.memory_space<semaphore_mem>>
      %248 = tpu.memref_squeeze %247 : memref<1x!tpu.dma_semaphore, #tpu.memory_space<semaphore_mem>> -> memref<!tpu.dma_semaphore, #tpu.memory_space<semaphore_mem>>
      tpu.wait_dma2 semaphore(%248 : memref<!tpu.dma_semaphore, #tpu.memory_space<semaphore_mem>>) src(%arg2 : memref<128x512xbf16, #tpu.memory_space<any>>) dst(%arg6 : memref<128x512xbf16, #tpu.memory_space<vmem>>)
      %c1_i32_84 = arith.constant 1 : i32
      %249 = tpu.memref_slice %arg11[%c1_i32_84] : memref<2x!tpu.dma_semaphore, #tpu.memory_space<semaphore_mem>> -> memref<1x!tpu.dma_semaphore, #tpu.memory_space<semaphore_mem>>
      %250 = tpu.memref_squeeze %249 : memref<1x!tpu.dma_semaphore, #tpu.memory_space<semaphore_mem>> -> memref<!tpu.dma_semaphore, #tpu.memory_space<semaphore_mem>>
      tpu.wait_dma2 semaphore(%250 : memref<!tpu.dma_semaphore, #tpu.memory_space<semaphore_mem>>) src(%arg3 : memref<128x512xbf16, #tpu.memory_space<any>>) dst(%arg7 : memref<128x512xbf16, #tpu.memory_space<vmem>>)
    } else {
    }
    %c0 = arith.constant 0 : index
    %c0_1 = arith.constant 0 : index
    %3 = vector.load %arg1[%c0, %c0_1] : memref<64x128xbf16, #tpu.memory_space<vmem>>, vector<64x128xbf16>
    %c0_2 = arith.constant 0 : index
    %c0_3 = arith.constant 0 : index
    %4 = vector.load %arg6[%c0_2, %c0_3] : memref<128x512xbf16, #tpu.memory_space<vmem>>, vector<128x512xbf16>
    %cst = arith.constant dense<0.000000e+00> : vector<64x512xf32>
    %5 = tpu.matmul %3, %4, %cst {dimension_numbers = #tpu.dot_dimension_numbers<[1], [0], [0], [1], [0, 0, 1, 1], [], []>} : vector<64x128xbf16>, vector<128x512xbf16>, vector<64x512xf32> -> vector<64x512xf32>
    %c0_4 = arith.constant 0 : index
    %c0_5 = arith.constant 0 : index
    %6 = vector.load %arg4[%c0_4, %c0_5] : memref<1x512xf32, #tpu.memory_space<vmem>>, vector<1x512xf32>
    %7 = vector.broadcast %6 : vector<1x512xf32> to vector<64x512xf32>
    %8 = arith.addf %5, %7 : vector<64x512xf32>
    %c0_6 = arith.constant 0 : index
    %c0_7 = arith.constant 0 : index
    %9 = vector.load %arg8[%c0_6, %c0_7] : memref<64x512xf32, #tpu.memory_space<vmem>>, vector<64x512xf32>
    tpu.vector_store %arg8[%c0_6, %c0_7], %8 {strides = array<i32>} : memref<64x512xf32, #tpu.memory_space<vmem>>, vector<64x512xf32>,
    %c0_8 = arith.constant 0 : index
    %c0_9 = arith.constant 0 : index
    %10 = vector.load %arg7[%c0_8, %c0_9] : memref<128x512xbf16, #tpu.memory_space<vmem>>, vector<128x512xbf16>
    %c0_10 = arith.constant 0 : index
    %c0_11 = arith.constant 0 : index
    %11 = vector.load %arg9[%c0_10, %c0_11] : memref<8x128xf32, #tpu.memory_space<vmem>>, vector<8x128xf32>
    %c0_12 = arith.constant 0 : index
    %c0_13 = arith.constant 0 : index
    %12 = vector.load %arg10[%c0_12, %c0_13] : memref<8x128xf32, #tpu.memory_space<vmem>>, vector<8x128xf32>
    %c0_i32_14 = arith.constant 0 : i32
    %c8_i32 = arith.constant 8 : i32
    %13 = arith.muli %c0_i32_14, %c8_i32 : i32
    %14 = tpu.assume_multiple %13, 8 : i32
    %15 = arith.index_cast %14 : i32 to index
    %c0_15 = arith.constant 0 : index
    %16 = vector.load %arg8[%15, %c0_15] : memref<64x512xf32, #tpu.memory_space<vmem>>, vector<8x512xf32>
    %17 = arith.truncf %11 : vector<8x128xf32> to vector<8x128xbf16>
    %cst_16 = arith.constant dense<0.000000e+00> : vector<8x512xf32>
    %18 = tpu.matmul %17, %10, %cst_16 {dimension_numbers = #tpu.dot_dimension_numbers<[1], [0], [0], [1], [0, 0, 1, 1], [], []>} : vector<8x128xbf16>, vector<128x512xbf16>, vector<8x512xf32> -> vector<8x512xf32>
    %19 = arith.addf %16, %18 : vector<8x512xf32>
    %20 = vector.extract_strided_slice %19 {offsets = [0, 0], sizes = [8, 384], strides = [1, 1]} : vector<8x512xf32> to vector<8x384xf32>
    %cst_17 = arith.constant 5.000000e-01 : f32
    %21 = vector.broadcast %cst_17 : f32 to vector<8x384xf32>
    %22 = arith.mulf %21, %20 : vector<8x384xf32>
    %23 = math.tanh %22 : vector<8x384xf32>
    %cst_18 = arith.constant 5.000000e-01 : f32
    %24 = vector.broadcast %cst_18 : f32 to vector<8x384xf32>
    %25 = arith.mulf %24, %23 : vector<8x384xf32>
    %cst_19 = arith.constant 5.000000e-01 : f32
    %26 = vector.broadcast %cst_19 : f32 to vector<8x384xf32>
    %27 = arith.addf %25, %26 : vector<8x384xf32>
    %28 = vector.extract_strided_slice %19 {offsets = [0, 384], sizes = [8, 128], strides = [1, 1]} : vector<8x512xf32> to vector<8x128xf32>
    %29 = math.tanh %28 : vector<8x128xf32>
    %30 = vector.extract_strided_slice %27 {offsets = [0, 0], sizes = [8, 128], strides = [1, 1]} : vector<8x384xf32> to vector<8x128xf32>
    %31 = vector.extract_strided_slice %27 {offsets = [0, 128], sizes = [8, 128], strides = [1, 1]} : vector<8x384xf32> to vector<8x128xf32>
    %32 = vector.extract_strided_slice %27 {offsets = [0, 256], sizes = [8, 128], strides = [1, 1]} : vector<8x384xf32> to vector<8x128xf32>
    %33 = arith.mulf %31, %12 : vector<8x128xf32>
    %34 = arith.mulf %30, %29 : vector<8x128xf32>
    %35 = arith.addf %33, %34 : vector<8x128xf32>
    %36 = math.tanh %35 : vector<8x128xf32>
    %37 = arith.mulf %32, %36 : vector<8x128xf32>
    %38 = arith.truncf %37 : vector<8x128xf32> to vector<8x128xbf16>
    %39 = arith.index_cast %14 : i32 to index
    %c0_20 = arith.constant 0 : index
    %40 = vector.load %arg5[%39, %c0_20] : memref<64x128xbf16, #tpu.memory_space<vmem>>, vector<8x128xbf16>
    tpu.vector_store %arg5[%39, %c0_20], %38 {strides = array<i32>} : memref<64x128xbf16, #tpu.memory_space<vmem>>, vector<8x128xbf16>,
    %c1_i32 = arith.constant 1 : i32
    %c8_i32_21 = arith.constant 8 : i32
    %41 = arith.muli %c1_i32, %c8_i32_21 : i32
    %42 = tpu.assume_multiple %41, 8 : i32
    %43 = arith.index_cast %42 : i32 to index
    %c0_22 = arith.constant 0 : index
    %44 = vector.load %arg8[%43, %c0_22] : memref<64x512xf32, #tpu.memory_space<vmem>>, vector<8x512xf32>
    %45 = arith.truncf %37 : vector<8x128xf32> to vector<8x128xbf16>
    %cst_23 = arith.constant dense<0.000000e+00> : vector<8x512xf32>
    %46 = tpu.matmul %45, %10, %cst_23 {dimension_numbers = #tpu.dot_dimension_numbers<[1], [0], [0], [1], [0, 0, 1, 1], [], []>} : vector<8x128xbf16>, vector<128x512xbf16>, vector<8x512xf32> -> vector<8x512xf32>
    %47 = arith.addf %44, %46 : vector<8x512xf32>
    %48 = vector.extract_strided_slice %47 {offsets = [0, 0], sizes = [8, 384], strides = [1, 1]} : vector<8x512xf32> to vector<8x384xf32>
    %cst_24 = arith.constant 5.000000e-01 : f32
    %49 = vector.broadcast %cst_24 : f32 to vector<8x384xf32>
    %50 = arith.mulf %49, %48 : vector<8x384xf32>
    %51 = math.tanh %50 : vector<8x384xf32>
    %cst_25 = arith.constant 5.000000e-01 : f32
    %52 = vector.broadcast %cst_25 : f32 to vector<8x384xf32>
    %53 = arith.mulf %52, %51 : vector<8x384xf32>
    %cst_26 = arith.constant 5.000000e-01 : f32
    %54 = vector.broadcast %cst_26 : f32 to vector<8x384xf32>
    %55 = arith.addf %53, %54 : vector<8x384xf32>
    %56 = vector.extract_strided_slice %47 {offsets = [0, 384], sizes = [8, 128], strides = [1, 1]} : vector<8x512xf32> to vector<8x128xf32>
    %57 = math.tanh %56 : vector<8x128xf32>
    %58 = vector.extract_strided_slice %55 {offsets = [0, 0], sizes = [8, 128], strides = [1, 1]} : vector<8x384xf32> to vector<8x128xf32>
    %59 = vector.extract_strided_slice %55 {offsets = [0, 128], sizes = [8, 128], strides = [1, 1]} : vector<8x384xf32> to vector<8x128xf32>
    %60 = vector.extract_strided_slice %55 {offsets = [0, 256], sizes = [8, 128], strides = [1, 1]} : vector<8x384xf32> to vector<8x128xf32>
    %61 = arith.mulf %59, %35 : vector<8x128xf32>
    %62 = arith.mulf %58, %57 : vector<8x128xf32>
    %63 = arith.addf %61, %62 : vector<8x128xf32>
    %64 = math.tanh %63 : vector<8x128xf32>
    %65 = arith.mulf %60, %64 : vector<8x128xf32>
    %66 = arith.truncf %65 : vector<8x128xf32> to vector<8x128xbf16>
    %67 = arith.index_cast %42 : i32 to index
    %c0_27 = arith.constant 0 : index
    %68 = vector.load %arg5[%67, %c0_27] : memref<64x128xbf16, #tpu.memory_space<vmem>>, vector<8x128xbf16>
    tpu.vector_store %arg5[%67, %c0_27], %66 {strides = array<i32>} : memref<64x128xbf16, #tpu.memory_space<vmem>>, vector<8x128xbf16>,
    %c2_i32 = arith.constant 2 : i32
    %c8_i32_28 = arith.constant 8 : i32
    %69 = arith.muli %c2_i32, %c8_i32_28 : i32
    %70 = tpu.assume_multiple %69, 8 : i32
    %71 = arith.index_cast %70 : i32 to index
    %c0_29 = arith.constant 0 : index
    %72 = vector.load %arg8[%71, %c0_29] : memref<64x512xf32, #tpu.memory_space<vmem>>, vector<8x512xf32>
    %73 = arith.truncf %65 : vector<8x128xf32> to vector<8x128xbf16>
    %cst_30 = arith.constant dense<0.000000e+00> : vector<8x512xf32>
    %74 = tpu.matmul %73, %10, %cst_30 {dimension_numbers = #tpu.dot_dimension_numbers<[1], [0], [0], [1], [0, 0, 1, 1], [], []>} : vector<8x128xbf16>, vector<128x512xbf16>, vector<8x512xf32> -> vector<8x512xf32>
    %75 = arith.addf %72, %74 : vector<8x512xf32>
    %76 = vector.extract_strided_slice %75 {offsets = [0, 0], sizes = [8, 384], strides = [1, 1]} : vector<8x512xf32> to vector<8x384xf32>
    %cst_31 = arith.constant 5.000000e-01 : f32
    %77 = vector.broadcast %cst_31 : f32 to vector<8x384xf32>
    %78 = arith.mulf %77, %76 : vector<8x384xf32>
    %79 = math.tanh %78 : vector<8x384xf32>
    %cst_32 = arith.constant 5.000000e-01 : f32
    %80 = vector.broadcast %cst_32 : f32 to vector<8x384xf32>
    %81 = arith.mulf %80, %79 : vector<8x384xf32>
    %cst_33 = arith.constant 5.000000e-01 : f32
    %82 = vector.broadcast %cst_33 : f32 to vector<8x384xf32>
    %83 = arith.addf %81, %82 : vector<8x384xf32>
    %84 = vector.extract_strided_slice %75 {offsets = [0, 384], sizes = [8, 128], strides = [1, 1]} : vector<8x512xf32> to vector<8x128xf32>
    %85 = math.tanh %84 : vector<8x128xf32>
    %86 = vector.extract_strided_slice %83 {offsets = [0, 0], sizes = [8, 128], strides = [1, 1]} : vector<8x384xf32> to vector<8x128xf32>
    %87 = vector.extract_strided_slice %83 {offsets = [0, 128], sizes = [8, 128], strides = [1, 1]} : vector<8x384xf32> to vector<8x128xf32>
    %88 = vector.extract_strided_slice %83 {offsets = [0, 256], sizes = [8, 128], strides = [1, 1]} : vector<8x384xf32> to vector<8x128xf32>
    %89 = arith.mulf %87, %63 : vector<8x128xf32>
    %90 = arith.mulf %86, %85 : vector<8x128xf32>
    %91 = arith.addf %89, %90 : vector<8x128xf32>
    %92 = math.tanh %91 : vector<8x128xf32>
    %93 = arith.mulf %88, %92 : vector<8x128xf32>
    %94 = arith.truncf %93 : vector<8x128xf32> to vector<8x128xbf16>
    %95 = arith.index_cast %70 : i32 to index
    %c0_34 = arith.constant 0 : index
    %96 = vector.load %arg5[%95, %c0_34] : memref<64x128xbf16, #tpu.memory_space<vmem>>, vector<8x128xbf16>
    tpu.vector_store %arg5[%95, %c0_34], %94 {strides = array<i32>} : memref<64x128xbf16, #tpu.memory_space<vmem>>, vector<8x128xbf16>,
    %c3_i32 = arith.constant 3 : i32
    %c8_i32_35 = arith.constant 8 : i32
    %97 = arith.muli %c3_i32, %c8_i32_35 : i32
    %98 = tpu.assume_multiple %97, 8 : i32
    %99 = arith.index_cast %98 : i32 to index
    %c0_36 = arith.constant 0 : index
    %100 = vector.load %arg8[%99, %c0_36] : memref<64x512xf32, #tpu.memory_space<vmem>>, vector<8x512xf32>
    %101 = arith.truncf %93 : vector<8x128xf32> to vector<8x128xbf16>
    %cst_37 = arith.constant dense<0.000000e+00> : vector<8x512xf32>
    %102 = tpu.matmul %101, %10, %cst_37 {dimension_numbers = #tpu.dot_dimension_numbers<[1], [0], [0], [1], [0, 0, 1, 1], [], []>} : vector<8x128xbf16>, vector<128x512xbf16>, vector<8x512xf32> -> vector<8x512xf32>
    %103 = arith.addf %100, %102 : vector<8x512xf32>
    %104 = vector.extract_strided_slice %103 {offsets = [0, 0], sizes = [8, 384], strides = [1, 1]} : vector<8x512xf32> to vector<8x384xf32>
    %cst_38 = arith.constant 5.000000e-01 : f32
    %105 = vector.broadcast %cst_38 : f32 to vector<8x384xf32>
    %106 = arith.mulf %105, %104 : vector<8x384xf32>
    %107 = math.tanh %106 : vector<8x384xf32>
    %cst_39 = arith.constant 5.000000e-01 : f32
    %108 = vector.broadcast %cst_39 : f32 to vector<8x384xf32>
    %109 = arith.mulf %108, %107 : vector<8x384xf32>
    %cst_40 = arith.constant 5.000000e-01 : f32
    %110 = vector.broadcast %cst_40 : f32 to vector<8x384xf32>
    %111 = arith.addf %109, %110 : vector<8x384xf32>
    %112 = vector.extract_strided_slice %103 {offsets = [0, 384], sizes = [8, 128], strides = [1, 1]} : vector<8x512xf32> to vector<8x128xf32>
    %113 = math.tanh %112 : vector<8x128xf32>
    %114 = vector.extract_strided_slice %111 {offsets = [0, 0], sizes = [8, 128], strides = [1, 1]} : vector<8x384xf32> to vector<8x128xf32>
    %115 = vector.extract_strided_slice %111 {offsets = [0, 128], sizes = [8, 128], strides = [1, 1]} : vector<8x384xf32> to vector<8x128xf32>
    %116 = vector.extract_strided_slice %111 {offsets = [0, 256], sizes = [8, 128], strides = [1, 1]} : vector<8x384xf32> to vector<8x128xf32>
    %117 = arith.mulf %115, %91 : vector<8x128xf32>
    %118 = arith.mulf %114, %113 : vector<8x128xf32>
    %119 = arith.addf %117, %118 : vector<8x128xf32>
    %120 = math.tanh %119 : vector<8x128xf32>
    %121 = arith.mulf %116, %120 : vector<8x128xf32>
    %122 = arith.truncf %121 : vector<8x128xf32> to vector<8x128xbf16>
    %123 = arith.index_cast %98 : i32 to index
    %c0_41 = arith.constant 0 : index
    %124 = vector.load %arg5[%123, %c0_41] : memref<64x128xbf16, #tpu.memory_space<vmem>>, vector<8x128xbf16>
    tpu.vector_store %arg5[%123, %c0_41], %122 {strides = array<i32>} : memref<64x128xbf16, #tpu.memory_space<vmem>>, vector<8x128xbf16>,
    %c4_i32 = arith.constant 4 : i32
    %c8_i32_42 = arith.constant 8 : i32
    %125 = arith.muli %c4_i32, %c8_i32_42 : i32
    %126 = tpu.assume_multiple %125, 8 : i32
    %127 = arith.index_cast %126 : i32 to index
    %c0_43 = arith.constant 0 : index
    %128 = vector.load %arg8[%127, %c0_43] : memref<64x512xf32, #tpu.memory_space<vmem>>, vector<8x512xf32>
    %129 = arith.truncf %121 : vector<8x128xf32> to vector<8x128xbf16>
    %cst_44 = arith.constant dense<0.000000e+00> : vector<8x512xf32>
    %130 = tpu.matmul %129, %10, %cst_44 {dimension_numbers = #tpu.dot_dimension_numbers<[1], [0], [0], [1], [0, 0, 1, 1], [], []>} : vector<8x128xbf16>, vector<128x512xbf16>, vector<8x512xf32> -> vector<8x512xf32>
    %131 = arith.addf %128, %130 : vector<8x512xf32>
    %132 = vector.extract_strided_slice %131 {offsets = [0, 0], sizes = [8, 384], strides = [1, 1]} : vector<8x512xf32> to vector<8x384xf32>
    %cst_45 = arith.constant 5.000000e-01 : f32
    %133 = vector.broadcast %cst_45 : f32 to vector<8x384xf32>
    %134 = arith.mulf %133, %132 : vector<8x384xf32>
    %135 = math.tanh %134 : vector<8x384xf32>
    %cst_46 = arith.constant 5.000000e-01 : f32
    %136 = vector.broadcast %cst_46 : f32 to vector<8x384xf32>
    %137 = arith.mulf %136, %135 : vector<8x384xf32>
    %cst_47 = arith.constant 5.000000e-01 : f32
    %138 = vector.broadcast %cst_47 : f32 to vector<8x384xf32>
    %139 = arith.addf %137, %138 : vector<8x384xf32>
    %140 = vector.extract_strided_slice %131 {offsets = [0, 384], sizes = [8, 128], strides = [1, 1]} : vector<8x512xf32> to vector<8x128xf32>
    %141 = math.tanh %140 : vector<8x128xf32>
    %142 = vector.extract_strided_slice %139 {offsets = [0, 0], sizes = [8, 128], strides = [1, 1]} : vector<8x384xf32> to vector<8x128xf32>
    %143 = vector.extract_strided_slice %139 {offsets = [0, 128], sizes = [8, 128], strides = [1, 1]} : vector<8x384xf32> to vector<8x128xf32>
    %144 = vector.extract_strided_slice %139 {offsets = [0, 256], sizes = [8, 128], strides = [1, 1]} : vector<8x384xf32> to vector<8x128xf32>
    %145 = arith.mulf %143, %119 : vector<8x128xf32>
    %146 = arith.mulf %142, %141 : vector<8x128xf32>
    %147 = arith.addf %145, %146 : vector<8x128xf32>
    %148 = math.tanh %147 : vector<8x128xf32>
    %149 = arith.mulf %144, %148 : vector<8x128xf32>
    %150 = arith.truncf %149 : vector<8x128xf32> to vector<8x128xbf16>
    %151 = arith.index_cast %126 : i32 to index
    %c0_48 = arith.constant 0 : index
    %152 = vector.load %arg5[%151, %c0_48] : memref<64x128xbf16, #tpu.memory_space<vmem>>, vector<8x128xbf16>
    tpu.vector_store %arg5[%151, %c0_48], %150 {strides = array<i32>} : memref<64x128xbf16, #tpu.memory_space<vmem>>, vector<8x128xbf16>,
    %c5_i32 = arith.constant 5 : i32
    %c8_i32_49 = arith.constant 8 : i32
    %153 = arith.muli %c5_i32, %c8_i32_49 : i32
    %154 = tpu.assume_multiple %153, 8 : i32
    %155 = arith.index_cast %154 : i32 to index
    %c0_50 = arith.constant 0 : index
    %156 = vector.load %arg8[%155, %c0_50] : memref<64x512xf32, #tpu.memory_space<vmem>>, vector<8x512xf32>
    %157 = arith.truncf %149 : vector<8x128xf32> to vector<8x128xbf16>
    %cst_51 = arith.constant dense<0.000000e+00> : vector<8x512xf32>
    %158 = tpu.matmul %157, %10, %cst_51 {dimension_numbers = #tpu.dot_dimension_numbers<[1], [0], [0], [1], [0, 0, 1, 1], [], []>} : vector<8x128xbf16>, vector<128x512xbf16>, vector<8x512xf32> -> vector<8x512xf32>
    %159 = arith.addf %156, %158 : vector<8x512xf32>
    %160 = vector.extract_strided_slice %159 {offsets = [0, 0], sizes = [8, 384], strides = [1, 1]} : vector<8x512xf32> to vector<8x384xf32>
    %cst_52 = arith.constant 5.000000e-01 : f32
    %161 = vector.broadcast %cst_52 : f32 to vector<8x384xf32>
    %162 = arith.mulf %161, %160 : vector<8x384xf32>
    %163 = math.tanh %162 : vector<8x384xf32>
    %cst_53 = arith.constant 5.000000e-01 : f32
    %164 = vector.broadcast %cst_53 : f32 to vector<8x384xf32>
    %165 = arith.mulf %164, %163 : vector<8x384xf32>
    %cst_54 = arith.constant 5.000000e-01 : f32
    %166 = vector.broadcast %cst_54 : f32 to vector<8x384xf32>
    %167 = arith.addf %165, %166 : vector<8x384xf32>
    %168 = vector.extract_strided_slice %159 {offsets = [0, 384], sizes = [8, 128], strides = [1, 1]} : vector<8x512xf32> to vector<8x128xf32>
    %169 = math.tanh %168 : vector<8x128xf32>
    %170 = vector.extract_strided_slice %167 {offsets = [0, 0], sizes = [8, 128], strides = [1, 1]} : vector<8x384xf32> to vector<8x128xf32>
    %171 = vector.extract_strided_slice %167 {offsets = [0, 128], sizes = [8, 128], strides = [1, 1]} : vector<8x384xf32> to vector<8x128xf32>
    %172 = vector.extract_strided_slice %167 {offsets = [0, 256], sizes = [8, 128], strides = [1, 1]} : vector<8x384xf32> to vector<8x128xf32>
    %173 = arith.mulf %171, %147 : vector<8x128xf32>
    %174 = arith.mulf %170, %169 : vector<8x128xf32>
    %175 = arith.addf %173, %174 : vector<8x128xf32>
    %176 = math.tanh %175 : vector<8x128xf32>
    %177 = arith.mulf %172, %176 : vector<8x128xf32>
    %178 = arith.truncf %177 : vector<8x128xf32> to vector<8x128xbf16>
    %179 = arith.index_cast %154 : i32 to index
    %c0_55 = arith.constant 0 : index
    %180 = vector.load %arg5[%179, %c0_55] : memref<64x128xbf16, #tpu.memory_space<vmem>>, vector<8x128xbf16>
    tpu.vector_store %arg5[%179, %c0_55], %178 {strides = array<i32>} : memref<64x128xbf16, #tpu.memory_space<vmem>>, vector<8x128xbf16>,
    %c6_i32 = arith.constant 6 : i32
    %c8_i32_56 = arith.constant 8 : i32
    %181 = arith.muli %c6_i32, %c8_i32_56 : i32
    %182 = tpu.assume_multiple %181, 8 : i32
    %183 = arith.index_cast %182 : i32 to index
    %c0_57 = arith.constant 0 : index
    %184 = vector.load %arg8[%183, %c0_57] : memref<64x512xf32, #tpu.memory_space<vmem>>, vector<8x512xf32>
    %185 = arith.truncf %177 : vector<8x128xf32> to vector<8x128xbf16>
    %cst_58 = arith.constant dense<0.000000e+00> : vector<8x512xf32>
    %186 = tpu.matmul %185, %10, %cst_58 {dimension_numbers = #tpu.dot_dimension_numbers<[1], [0], [0], [1], [0, 0, 1, 1], [], []>} : vector<8x128xbf16>, vector<128x512xbf16>, vector<8x512xf32> -> vector<8x512xf32>
    %187 = arith.addf %184, %186 : vector<8x512xf32>
    %188 = vector.extract_strided_slice %187 {offsets = [0, 0], sizes = [8, 384], strides = [1, 1]} : vector<8x512xf32> to vector<8x384xf32>
    %cst_59 = arith.constant 5.000000e-01 : f32
    %189 = vector.broadcast %cst_59 : f32 to vector<8x384xf32>
    %190 = arith.mulf %189, %188 : vector<8x384xf32>
    %191 = math.tanh %190 : vector<8x384xf32>
    %cst_60 = arith.constant 5.000000e-01 : f32
    %192 = vector.broadcast %cst_60 : f32 to vector<8x384xf32>
    %193 = arith.mulf %192, %191 : vector<8x384xf32>
    %cst_61 = arith.constant 5.000000e-01 : f32
    %194 = vector.broadcast %cst_61 : f32 to vector<8x384xf32>
    %195 = arith.addf %193, %194 : vector<8x384xf32>
    %196 = vector.extract_strided_slice %187 {offsets = [0, 384], sizes = [8, 128], strides = [1, 1]} : vector<8x512xf32> to vector<8x128xf32>
    %197 = math.tanh %196 : vector<8x128xf32>
    %198 = vector.extract_strided_slice %195 {offsets = [0, 0], sizes = [8, 128], strides = [1, 1]} : vector<8x384xf32> to vector<8x128xf32>
    %199 = vector.extract_strided_slice %195 {offsets = [0, 128], sizes = [8, 128], strides = [1, 1]} : vector<8x384xf32> to vector<8x128xf32>
    %200 = vector.extract_strided_slice %195 {offsets = [0, 256], sizes = [8, 128], strides = [1, 1]} : vector<8x384xf32> to vector<8x128xf32>
    %201 = arith.mulf %199, %175 : vector<8x128xf32>
    %202 = arith.mulf %198, %197 : vector<8x128xf32>
    %203 = arith.addf %201, %202 : vector<8x128xf32>
    %204 = math.tanh %203 : vector<8x128xf32>
    %205 = arith.mulf %200, %204 : vector<8x128xf32>
    %206 = arith.truncf %205 : vector<8x128xf32> to vector<8x128xbf16>
    %207 = arith.index_cast %182 : i32 to index
    %c0_62 = arith.constant 0 : index
    %208 = vector.load %arg5[%207, %c0_62] : memref<64x128xbf16, #tpu.memory_space<vmem>>, vector<8x128xbf16>
    tpu.vector_store %arg5[%207, %c0_62], %206 {strides = array<i32>} : memref<64x128xbf16, #tpu.memory_space<vmem>>, vector<8x128xbf16>,
    %c7_i32 = arith.constant 7 : i32
    %c8_i32_63 = arith.constant 8 : i32
    %209 = arith.muli %c7_i32, %c8_i32_63 : i32
    %210 = tpu.assume_multiple %209, 8 : i32
    %211 = arith.index_cast %210 : i32 to index
    %c0_64 = arith.constant 0 : index
    %212 = vector.load %arg8[%211, %c0_64] : memref<64x512xf32, #tpu.memory_space<vmem>>, vector<8x512xf32>
    %213 = arith.truncf %205 : vector<8x128xf32> to vector<8x128xbf16>
    %cst_65 = arith.constant dense<0.000000e+00> : vector<8x512xf32>
    %214 = tpu.matmul %213, %10, %cst_65 {dimension_numbers = #tpu.dot_dimension_numbers<[1], [0], [0], [1], [0, 0, 1, 1], [], []>} : vector<8x128xbf16>, vector<128x512xbf16>, vector<8x512xf32> -> vector<8x512xf32>
    %215 = arith.addf %212, %214 : vector<8x512xf32>
    %216 = vector.extract_strided_slice %215 {offsets = [0, 0], sizes = [8, 384], strides = [1, 1]} : vector<8x512xf32> to vector<8x384xf32>
    %cst_66 = arith.constant 5.000000e-01 : f32
    %217 = vector.broadcast %cst_66 : f32 to vector<8x384xf32>
    %218 = arith.mulf %217, %216 : vector<8x384xf32>
    %219 = math.tanh %218 : vector<8x384xf32>
    %cst_67 = arith.constant 5.000000e-01 : f32
    %220 = vector.broadcast %cst_67 : f32 to vector<8x384xf32>
    %221 = arith.mulf %220, %219 : vector<8x384xf32>
    %cst_68 = arith.constant 5.000000e-01 : f32
    %222 = vector.broadcast %cst_68 : f32 to vector<8x384xf32>
    %223 = arith.addf %221, %222 : vector<8x384xf32>
    %224 = vector.extract_strided_slice %215 {offsets = [0, 384], sizes = [8, 128], strides = [1, 1]} : vector<8x512xf32> to vector<8x128xf32>
    %225 = math.tanh %224 : vector<8x128xf32>
    %226 = vector.extract_strided_slice %223 {offsets = [0, 0], sizes = [8, 128], strides = [1, 1]} : vector<8x384xf32> to vector<8x128xf32>
    %227 = vector.extract_strided_slice %223 {offsets = [0, 128], sizes = [8, 128], strides = [1, 1]} : vector<8x384xf32> to vector<8x128xf32>
    %228 = vector.extract_strided_slice %223 {offsets = [0, 256], sizes = [8, 128], strides = [1, 1]} : vector<8x384xf32> to vector<8x128xf32>
    %229 = arith.mulf %227, %203 : vector<8x128xf32>
    %230 = arith.mulf %226, %225 : vector<8x128xf32>
    %231 = arith.addf %229, %230 : vector<8x128xf32>
    %232 = math.tanh %231 : vector<8x128xf32>
    %233 = arith.mulf %228, %232 : vector<8x128xf32>
    %234 = arith.truncf %233 : vector<8x128xf32> to vector<8x128xbf16>
    %235 = arith.index_cast %210 : i32 to index
    %c0_69 = arith.constant 0 : index
    %236 = vector.load %arg5[%235, %c0_69] : memref<64x128xbf16, #tpu.memory_space<vmem>>, vector<8x128xbf16>
    tpu.vector_store %arg5[%235, %c0_69], %234 {strides = array<i32>} : memref<64x128xbf16, #tpu.memory_space<vmem>>, vector<8x128xbf16>,
    %c8_i32_70 = arith.constant 8 : i32
    %c0_71 = arith.constant 0 : index
    %c0_72 = arith.constant 0 : index
    %237 = vector.load %arg9[%c0_71, %c0_72] : memref<8x128xf32, #tpu.memory_space<vmem>>, vector<8x128xf32>
    tpu.vector_store %arg9[%c0_71, %c0_72], %233 {strides = array<i32>} : memref<8x128xf32, #tpu.memory_space<vmem>>, vector<8x128xf32>,
    %c0_73 = arith.constant 0 : index
    %c0_74 = arith.constant 0 : index
    %238 = vector.load %arg10[%c0_73, %c0_74] : memref<8x128xf32, #tpu.memory_space<vmem>>, vector<8x128xf32>
    tpu.vector_store %arg10[%c0_73, %c0_74], %231 {strides = array<i32>} : memref<8x128xf32, #tpu.memory_space<vmem>>, vector<8x128xf32>,
    return
  }
  func.func @transform_0(%arg0: i32) -> (i32, i32) {
    %c0_i32 = arith.constant 0 : i32
    %c0_i32_0 = arith.constant 0 : i32
    return %arg0, %c0_i32 : i32, i32
  }
  func.func @transform_3(%arg0: i32) -> (i32, i32) {
    %c0_i32 = arith.constant 0 : i32
    %c0_i32_0 = arith.constant 0 : i32
    %c0_i32_1 = arith.constant 0 : i32
    return %c0_i32, %c0_i32_0 : i32, i32
  }
  func.func @transform_4(%arg0: i32) -> (i32, i32) {
    %c0_i32 = arith.constant 0 : i32
    %c0_i32_0 = arith.constant 0 : i32
    return %arg0, %c0_i32 : i32, i32
  }
}

module attributes {stable_mosaic.version = 11 : i64} {
  func.func @_lstm_layer_kernel(%arg0: i32, %arg1: memref<64x128xbf16, #tpu.memory_space<vmem>>, %arg2: memref<128x512xbf16, #tpu.memory_space<any>>, %arg3: memref<128x512xbf16, #tpu.memory_space<any>>, %arg4: memref<1x512xf32, #tpu.memory_space<vmem>>, %arg5: memref<64x128xbf16, #tpu.memory_space<vmem>>, %arg6: memref<128x512xbf16, #tpu.memory_space<vmem>>, %arg7: memref<128x512xbf16, #tpu.memory_space<vmem>>, %arg8: memref<64x512xf32, #tpu.memory_space<vmem>>, %arg9: memref<8x128xf32, #tpu.memory_space<vmem>>, %arg10: memref<8x128xf32, #tpu.memory_space<vmem>>, %arg11: memref<2x!tpu.dma_semaphore, #tpu.memory_space<semaphore_mem>>) attributes {dimension_semantics = [#tpu.dimension_semantics<arbitrary>], iteration_bounds = array<i64: 1>, scalar_prefetch = 0 : i64, scratch_operands = 6 : i64, tpu.core_type = #tpu.core_type<tc>, window_params = [{transform_indices = @transform_0, window_bounds = array<i64: 64, 128>}, {}, {}, {pipeline_mode = #tpu.pipeline_mode<synchronous>, transform_indices = @transform_3, window_bounds = array<i64: 1, 512>}, {transform_indices = @transform_4, window_bounds = array<i64: 64, 128>}]} {
    %c0_i32 = arith.constant 0 : i32
    %0 = arith.cmpi eq, %arg0, %c0_i32 : i32
    %1 = arith.extui %0 : i1 to i32
    %c0_i32_0 = arith.constant 0 : i32
    %2 = arith.cmpi ne, %1, %c0_i32_0 : i32
    scf.if %2 {
      %c0_i32_75 = arith.constant 0 : i32
      %239 = tpu.memref_slice %arg11[%c0_i32_75] : memref<2x!tpu.dma_semaphore, #tpu.memory_space<semaphore_mem>> -> memref<1x!tpu.dma_semaphore, #tpu.memory_space<semaphore_mem>>
      %240 = tpu.memref_squeeze %239 : memref<1x!tpu.dma_semaphore, #tpu.memory_space<semaphore_mem>> -> memref<!tpu.dma_semaphore, #tpu.memory_space<semaphore_mem>>
      tpu.enqueue_dma source(%arg2 : memref<128x512xbf16, #tpu.memory_space<any>>) target(%arg6 : memref<128x512xbf16, #tpu.memory_space<vmem>>) target_semaphore(%240 : memref<!tpu.dma_semaphore, #tpu.memory_space<semaphore_mem>>)
      %c1_i32_76 = arith.constant 1 : i32
      %241 = tpu.memref_slice %arg11[%c1_i32_76] : memref<2x!tpu.dma_semaphore, #tpu.memory_space<semaphore_mem>> -> memref<1x!tpu.dma_semaphore, #tpu.memory_space<semaphore_mem>>
      %242 = tpu.memref_squeeze %241 : memref<1x!tpu.dma_semaphore, #tpu.memory_space<semaphore_mem>> -> memref<!tpu.dma_semaphore, #tpu.memory_space<semaphore_mem>>
      tpu.enqueue_dma source(%arg3 : memref<128x512xbf16, #tpu.memory_space<any>>) target(%arg7 : memref<128x512xbf16, #tpu.memory_space<vmem>>) target_semaphore(%242 : memref<!tpu.dma_semaphore, #tpu.memory_space<semaphore_mem>>)
      %cst_77 = arith.constant 0.000000e+00 : f32
      %243 = vector.broadcast %cst_77 : f32 to vector<8x128xf32>
      %c0_78 = arith.constant 0 : index
      %c0_79 = arith.constant 0 : index
      %244 = vector.load %arg9[%c0_78, %c0_79] : memref<8x128xf32, #tpu.memory_space<vmem>>, vector<8x128xf32>
      tpu.vector_store %arg9[%c0_78, %c0_79], %243 {strides = array<i32>} : memref<8x128xf32, #tpu.memory_space<vmem>>, vector<8x128xf32>,
      %cst_80 = arith.constant 0.000000e+00 : f32
      %245 = vector.broadcast %cst_80 : f32 to vector<8x128xf32>
      %c0_81 = arith.constant 0 : index
      %c0_82 = arith.constant 0 : index
      %246 = vector.load %arg10[%c0_81, %c0_82] : memref<8x128xf32, #tpu.memory_space<vmem>>, vector<8x128xf32>
      tpu.vector_store %arg10[%c0_81, %c0_82], %245 {strides = array<i32>} : memref<8x128xf32, #tpu.memory_space<vmem>>, vector<8x128xf32>,
      %c0_i32_83 = arith.constant 0 : i32
      %247 = tpu.memref_slice %arg11[%c0_i32_83] : memref<2x!tpu.dma_semaphore, #tpu.memory_space<semaphore_mem>> -> memref<1x!tpu.dma_semaphore, #tpu.memory_space<semaphore_mem>>
      %248 = tpu.memref_squeeze %247 : memref<1x!tpu.dma_semaphore, #tpu.memory_space<semaphore_mem>> -> memref<!tpu.dma_semaphore, #tpu.memory_space<semaphore_mem>>
      tpu.wait_dma2 semaphore(%248 : memref<!tpu.dma_semaphore, #tpu.memory_space<semaphore_mem>>) src(%arg2 : memref<128x512xbf16, #tpu.memory_space<any>>) dst(%arg6 : memref<128x512xbf16, #tpu.memory_space<vmem>>)
      %c1_i32_84 = arith.constant 1 : i32
      %249 = tpu.memref_slice %arg11[%c1_i32_84] : memref<2x!tpu.dma_semaphore, #tpu.memory_space<semaphore_mem>> -> memref<1x!tpu.dma_semaphore, #tpu.memory_space<semaphore_mem>>
      %250 = tpu.memref_squeeze %249 : memref<1x!tpu.dma_semaphore, #tpu.memory_space<semaphore_mem>> -> memref<!tpu.dma_semaphore, #tpu.memory_space<semaphore_mem>>
      tpu.wait_dma2 semaphore(%250 : memref<!tpu.dma_semaphore, #tpu.memory_space<semaphore_mem>>) src(%arg3 : memref<128x512xbf16, #tpu.memory_space<any>>) dst(%arg7 : memref<128x512xbf16, #tpu.memory_space<vmem>>)
    } else {
    }
    %c0 = arith.constant 0 : index
    %c0_1 = arith.constant 0 : index
    %3 = vector.load %arg1[%c0, %c0_1] : memref<64x128xbf16, #tpu.memory_space<vmem>>, vector<64x128xbf16>
    %c0_2 = arith.constant 0 : index
    %c0_3 = arith.constant 0 : index
    %4 = vector.load %arg6[%c0_2, %c0_3] : memref<128x512xbf16, #tpu.memory_space<vmem>>, vector<128x512xbf16>
    %cst = arith.constant dense<0.000000e+00> : vector<64x512xf32>
    %5 = tpu.matmul %3, %4, %cst {dimension_numbers = #tpu.dot_dimension_numbers<[1], [0], [0], [1], [0, 0, 1, 1], [], []>} : vector<64x128xbf16>, vector<128x512xbf16>, vector<64x512xf32> -> vector<64x512xf32>
    %c0_4 = arith.constant 0 : index
    %c0_5 = arith.constant 0 : index
    %6 = vector.load %arg4[%c0_4, %c0_5] : memref<1x512xf32, #tpu.memory_space<vmem>>, vector<1x512xf32>
    %7 = vector.broadcast %6 : vector<1x512xf32> to vector<64x512xf32>
    %8 = arith.addf %5, %7 : vector<64x512xf32>
    %c0_6 = arith.constant 0 : index
    %c0_7 = arith.constant 0 : index
    %9 = vector.load %arg8[%c0_6, %c0_7] : memref<64x512xf32, #tpu.memory_space<vmem>>, vector<64x512xf32>
    tpu.vector_store %arg8[%c0_6, %c0_7], %8 {strides = array<i32>} : memref<64x512xf32, #tpu.memory_space<vmem>>, vector<64x512xf32>,
    %c0_8 = arith.constant 0 : index
    %c0_9 = arith.constant 0 : index
    %10 = vector.load %arg7[%c0_8, %c0_9] : memref<128x512xbf16, #tpu.memory_space<vmem>>, vector<128x512xbf16>
    %c0_10 = arith.constant 0 : index
    %c0_11 = arith.constant 0 : index
    %11 = vector.load %arg9[%c0_10, %c0_11] : memref<8x128xf32, #tpu.memory_space<vmem>>, vector<8x128xf32>
    %c0_12 = arith.constant 0 : index
    %c0_13 = arith.constant 0 : index
    %12 = vector.load %arg10[%c0_12, %c0_13] : memref<8x128xf32, #tpu.memory_space<vmem>>, vector<8x128xf32>
    %c0_i32_14 = arith.constant 0 : i32
    %c8_i32 = arith.constant 8 : i32
    %13 = arith.muli %c0_i32_14, %c8_i32 : i32
    %14 = tpu.assume_multiple %13, 8 : i32
    %15 = arith.index_cast %14 : i32 to index
    %c0_15 = arith.constant 0 : index
    %16 = vector.load %arg8[%15, %c0_15] : memref<64x512xf32, #tpu.memory_space<vmem>>, vector<8x512xf32>
    %17 = arith.truncf %11 : vector<8x128xf32> to vector<8x128xbf16>
    %cst_16 = arith.constant dense<0.000000e+00> : vector<8x512xf32>
    %18 = tpu.matmul %17, %10, %cst_16 {dimension_numbers = #tpu.dot_dimension_numbers<[1], [0], [0], [1], [0, 0, 1, 1], [], []>} : vector<8x128xbf16>, vector<128x512xbf16>, vector<8x512xf32> -> vector<8x512xf32>
    %19 = arith.addf %16, %18 : vector<8x512xf32>
    %20 = vector.extract_strided_slice %19 {offsets = [0, 0], sizes = [8, 384], strides = [1, 1]} : vector<8x512xf32> to vector<8x384xf32>
    %cst_17 = arith.constant 5.000000e-01 : f32
    %21 = vector.broadcast %cst_17 : f32 to vector<8x384xf32>
    %22 = arith.mulf %21, %20 : vector<8x384xf32>
    %23 = math.tanh %22 : vector<8x384xf32>
    %cst_18 = arith.constant 5.000000e-01 : f32
    %24 = vector.broadcast %cst_18 : f32 to vector<8x384xf32>
    %25 = arith.mulf %24, %23 : vector<8x384xf32>
    %cst_19 = arith.constant 5.000000e-01 : f32
    %26 = vector.broadcast %cst_19 : f32 to vector<8x384xf32>
    %27 = arith.addf %25, %26 : vector<8x384xf32>
    %28 = vector.extract_strided_slice %19 {offsets = [0, 384], sizes = [8, 128], strides = [1, 1]} : vector<8x512xf32> to vector<8x128xf32>
    %29 = math.tanh %28 : vector<8x128xf32>
    %30 = vector.extract_strided_slice %27 {offsets = [0, 0], sizes = [8, 128], strides = [1, 1]} : vector<8x384xf32> to vector<8x128xf32>
    %31 = vector.extract_strided_slice %27 {offsets = [0, 128], sizes = [8, 128], strides = [1, 1]} : vector<8x384xf32> to vector<8x128xf32>
    %32 = vector.extract_strided_slice %27 {offsets = [0, 256], sizes = [8, 128], strides = [1, 1]} : vector<8x384xf32> to vector<8x128xf32>
    %33 = arith.mulf %31, %12 : vector<8x128xf32>
    %34 = arith.mulf %30, %29 : vector<8x128xf32>
    %35 = arith.addf %33, %34 : vector<8x128xf32>
    %36 = math.tanh %35 : vector<8x128xf32>
    %37 = arith.mulf %32, %36 : vector<8x128xf32>
    %38 = arith.truncf %37 : vector<8x128xf32> to vector<8x128xbf16>
    %39 = arith.index_cast %14 : i32 to index
    %c0_20 = arith.constant 0 : index
    %40 = vector.load %arg5[%39, %c0_20] : memref<64x128xbf16, #tpu.memory_space<vmem>>, vector<8x128xbf16>
    tpu.vector_store %arg5[%39, %c0_20], %38 {strides = array<i32>} : memref<64x128xbf16, #tpu.memory_space<vmem>>, vector<8x128xbf16>,
    %c1_i32 = arith.constant 1 : i32
    %c8_i32_21 = arith.constant 8 : i32
    %41 = arith.muli %c1_i32, %c8_i32_21 : i32
    %42 = tpu.assume_multiple %41, 8 : i32
    %43 = arith.index_cast %42 : i32 to index
    %c0_22 = arith.constant 0 : index
    %44 = vector.load %arg8[%43, %c0_22] : memref<64x512xf32, #tpu.memory_space<vmem>>, vector<8x512xf32>
    %45 = arith.truncf %37 : vector<8x128xf32> to vector<8x128xbf16>
    %cst_23 = arith.constant dense<0.000000e+00> : vector<8x512xf32>
    %46 = tpu.matmul %45, %10, %cst_23 {dimension_numbers = #tpu.dot_dimension_numbers<[1], [0], [0], [1], [0, 0, 1, 1], [], []>} : vector<8x128xbf16>, vector<128x512xbf16>, vector<8x512xf32> -> vector<8x512xf32>
    %47 = arith.addf %44, %46 : vector<8x512xf32>
    %48 = vector.extract_strided_slice %47 {offsets = [0, 0], sizes = [8, 384], strides = [1, 1]} : vector<8x512xf32> to vector<8x384xf32>
    %cst_24 = arith.constant 5.000000e-01 : f32
    %49 = vector.broadcast %cst_24 : f32 to vector<8x384xf32>
    %50 = arith.mulf %49, %48 : vector<8x384xf32>
    %51 = math.tanh %50 : vector<8x384xf32>
    %cst_25 = arith.constant 5.000000e-01 : f32
    %52 = vector.broadcast %cst_25 : f32 to vector<8x384xf32>
    %53 = arith.mulf %52, %51 : vector<8x384xf32>
    %cst_26 = arith.constant 5.000000e-01 : f32
    %54 = vector.broadcast %cst_26 : f32 to vector<8x384xf32>
    %55 = arith.addf %53, %54 : vector<8x384xf32>
    %56 = vector.extract_strided_slice %47 {offsets = [0, 384], sizes = [8, 128], strides = [1, 1]} : vector<8x512xf32> to vector<8x128xf32>
    %57 = math.tanh %56 : vector<8x128xf32>
    %58 = vector.extract_strided_slice %55 {offsets = [0, 0], sizes = [8, 128], strides = [1, 1]} : vector<8x384xf32> to vector<8x128xf32>
    %59 = vector.extract_strided_slice %55 {offsets = [0, 128], sizes = [8, 128], strides = [1, 1]} : vector<8x384xf32> to vector<8x128xf32>
    %60 = vector.extract_strided_slice %55 {offsets = [0, 256], sizes = [8, 128], strides = [1, 1]} : vector<8x384xf32> to vector<8x128xf32>
    %61 = arith.mulf %59, %35 : vector<8x128xf32>
    %62 = arith.mulf %58, %57 : vector<8x128xf32>
    %63 = arith.addf %61, %62 : vector<8x128xf32>
    %64 = math.tanh %63 : vector<8x128xf32>
    %65 = arith.mulf %60, %64 : vector<8x128xf32>
    %66 = arith.truncf %65 : vector<8x128xf32> to vector<8x128xbf16>
    %67 = arith.index_cast %42 : i32 to index
    %c0_27 = arith.constant 0 : index
    %68 = vector.load %arg5[%67, %c0_27] : memref<64x128xbf16, #tpu.memory_space<vmem>>, vector<8x128xbf16>
    tpu.vector_store %arg5[%67, %c0_27], %66 {strides = array<i32>} : memref<64x128xbf16, #tpu.memory_space<vmem>>, vector<8x128xbf16>,
    %c2_i32 = arith.constant 2 : i32
    %c8_i32_28 = arith.constant 8 : i32
    %69 = arith.muli %c2_i32, %c8_i32_28 : i32
    %70 = tpu.assume_multiple %69, 8 : i32
    %71 = arith.index_cast %70 : i32 to index
    %c0_29 = arith.constant 0 : index
    %72 = vector.load %arg8[%71, %c0_29] : memref<64x512xf32, #tpu.memory_space<vmem>>, vector<8x512xf32>
    %73 = arith.truncf %65 : vector<8x128xf32> to vector<8x128xbf16>
    %cst_30 = arith.constant dense<0.000000e+00> : vector<8x512xf32>
    %74 = tpu.matmul %73, %10, %cst_30 {dimension_numbers = #tpu.dot_dimension_numbers<[1], [0], [0], [1], [0, 0, 1, 1], [], []>} : vector<8x128xbf16>, vector<128x512xbf16>, vector<8x512xf32> -> vector<8x512xf32>
    %75 = arith.addf %72, %74 : vector<8x512xf32>
    %76 = vector.extract_strided_slice %75 {offsets = [0, 0], sizes = [8, 384], strides = [1, 1]} : vector<8x512xf32> to vector<8x384xf32>
    %cst_31 = arith.constant 5.000000e-01 : f32
    %77 = vector.broadcast %cst_31 : f32 to vector<8x384xf32>
    %78 = arith.mulf %77, %76 : vector<8x384xf32>
    %79 = math.tanh %78 : vector<8x384xf32>
    %cst_32 = arith.constant 5.000000e-01 : f32
    %80 = vector.broadcast %cst_32 : f32 to vector<8x384xf32>
    %81 = arith.mulf %80, %79 : vector<8x384xf32>
    %cst_33 = arith.constant 5.000000e-01 : f32
    %82 = vector.broadcast %cst_33 : f32 to vector<8x384xf32>
    %83 = arith.addf %81, %82 : vector<8x384xf32>
    %84 = vector.extract_strided_slice %75 {offsets = [0, 384], sizes = [8, 128], strides = [1, 1]} : vector<8x512xf32> to vector<8x128xf32>
    %85 = math.tanh %84 : vector<8x128xf32>
    %86 = vector.extract_strided_slice %83 {offsets = [0, 0], sizes = [8, 128], strides = [1, 1]} : vector<8x384xf32> to vector<8x128xf32>
    %87 = vector.extract_strided_slice %83 {offsets = [0, 128], sizes = [8, 128], strides = [1, 1]} : vector<8x384xf32> to vector<8x128xf32>
    %88 = vector.extract_strided_slice %83 {offsets = [0, 256], sizes = [8, 128], strides = [1, 1]} : vector<8x384xf32> to vector<8x128xf32>
    %89 = arith.mulf %87, %63 : vector<8x128xf32>
    %90 = arith.mulf %86, %85 : vector<8x128xf32>
    %91 = arith.addf %89, %90 : vector<8x128xf32>
    %92 = math.tanh %91 : vector<8x128xf32>
    %93 = arith.mulf %88, %92 : vector<8x128xf32>
    %94 = arith.truncf %93 : vector<8x128xf32> to vector<8x128xbf16>
    %95 = arith.index_cast %70 : i32 to index
    %c0_34 = arith.constant 0 : index
    %96 = vector.load %arg5[%95, %c0_34] : memref<64x128xbf16, #tpu.memory_space<vmem>>, vector<8x128xbf16>
    tpu.vector_store %arg5[%95, %c0_34], %94 {strides = array<i32>} : memref<64x128xbf16, #tpu.memory_space<vmem>>, vector<8x128xbf16>,
    %c3_i32 = arith.constant 3 : i32
    %c8_i32_35 = arith.constant 8 : i32
    %97 = arith.muli %c3_i32, %c8_i32_35 : i32
    %98 = tpu.assume_multiple %97, 8 : i32
    %99 = arith.index_cast %98 : i32 to index
    %c0_36 = arith.constant 0 : index
    %100 = vector.load %arg8[%99, %c0_36] : memref<64x512xf32, #tpu.memory_space<vmem>>, vector<8x512xf32>
    %101 = arith.truncf %93 : vector<8x128xf32> to vector<8x128xbf16>
    %cst_37 = arith.constant dense<0.000000e+00> : vector<8x512xf32>
    %102 = tpu.matmul %101, %10, %cst_37 {dimension_numbers = #tpu.dot_dimension_numbers<[1], [0], [0], [1], [0, 0, 1, 1], [], []>} : vector<8x128xbf16>, vector<128x512xbf16>, vector<8x512xf32> -> vector<8x512xf32>
    %103 = arith.addf %100, %102 : vector<8x512xf32>
    %104 = vector.extract_strided_slice %103 {offsets = [0, 0], sizes = [8, 384], strides = [1, 1]} : vector<8x512xf32> to vector<8x384xf32>
    %cst_38 = arith.constant 5.000000e-01 : f32
    %105 = vector.broadcast %cst_38 : f32 to vector<8x384xf32>
    %106 = arith.mulf %105, %104 : vector<8x384xf32>
    %107 = math.tanh %106 : vector<8x384xf32>
    %cst_39 = arith.constant 5.000000e-01 : f32
    %108 = vector.broadcast %cst_39 : f32 to vector<8x384xf32>
    %109 = arith.mulf %108, %107 : vector<8x384xf32>
    %cst_40 = arith.constant 5.000000e-01 : f32
    %110 = vector.broadcast %cst_40 : f32 to vector<8x384xf32>
    %111 = arith.addf %109, %110 : vector<8x384xf32>
    %112 = vector.extract_strided_slice %103 {offsets = [0, 384], sizes = [8, 128], strides = [1, 1]} : vector<8x512xf32> to vector<8x128xf32>
    %113 = math.tanh %112 : vector<8x128xf32>
    %114 = vector.extract_strided_slice %111 {offsets = [0, 0], sizes = [8, 128], strides = [1, 1]} : vector<8x384xf32> to vector<8x128xf32>
    %115 = vector.extract_strided_slice %111 {offsets = [0, 128], sizes = [8, 128], strides = [1, 1]} : vector<8x384xf32> to vector<8x128xf32>
    %116 = vector.extract_strided_slice %111 {offsets = [0, 256], sizes = [8, 128], strides = [1, 1]} : vector<8x384xf32> to vector<8x128xf32>
    %117 = arith.mulf %115, %91 : vector<8x128xf32>
    %118 = arith.mulf %114, %113 : vector<8x128xf32>
    %119 = arith.addf %117, %118 : vector<8x128xf32>
    %120 = math.tanh %119 : vector<8x128xf32>
    %121 = arith.mulf %116, %120 : vector<8x128xf32>
    %122 = arith.truncf %121 : vector<8x128xf32> to vector<8x128xbf16>
    %123 = arith.index_cast %98 : i32 to index
    %c0_41 = arith.constant 0 : index
    %124 = vector.load %arg5[%123, %c0_41] : memref<64x128xbf16, #tpu.memory_space<vmem>>, vector<8x128xbf16>
    tpu.vector_store %arg5[%123, %c0_41], %122 {strides = array<i32>} : memref<64x128xbf16, #tpu.memory_space<vmem>>, vector<8x128xbf16>,
    %c4_i32 = arith.constant 4 : i32
    %c8_i32_42 = arith.constant 8 : i32
    %125 = arith.muli %c4_i32, %c8_i32_42 : i32
    %126 = tpu.assume_multiple %125, 8 : i32
    %127 = arith.index_cast %126 : i32 to index
    %c0_43 = arith.constant 0 : index
    %128 = vector.load %arg8[%127, %c0_43] : memref<64x512xf32, #tpu.memory_space<vmem>>, vector<8x512xf32>
    %129 = arith.truncf %121 : vector<8x128xf32> to vector<8x128xbf16>
    %cst_44 = arith.constant dense<0.000000e+00> : vector<8x512xf32>
    %130 = tpu.matmul %129, %10, %cst_44 {dimension_numbers = #tpu.dot_dimension_numbers<[1], [0], [0], [1], [0, 0, 1, 1], [], []>} : vector<8x128xbf16>, vector<128x512xbf16>, vector<8x512xf32> -> vector<8x512xf32>
    %131 = arith.addf %128, %130 : vector<8x512xf32>
    %132 = vector.extract_strided_slice %131 {offsets = [0, 0], sizes = [8, 384], strides = [1, 1]} : vector<8x512xf32> to vector<8x384xf32>
    %cst_45 = arith.constant 5.000000e-01 : f32
    %133 = vector.broadcast %cst_45 : f32 to vector<8x384xf32>
    %134 = arith.mulf %133, %132 : vector<8x384xf32>
    %135 = math.tanh %134 : vector<8x384xf32>
    %cst_46 = arith.constant 5.000000e-01 : f32
    %136 = vector.broadcast %cst_46 : f32 to vector<8x384xf32>
    %137 = arith.mulf %136, %135 : vector<8x384xf32>
    %cst_47 = arith.constant 5.000000e-01 : f32
    %138 = vector.broadcast %cst_47 : f32 to vector<8x384xf32>
    %139 = arith.addf %137, %138 : vector<8x384xf32>
    %140 = vector.extract_strided_slice %131 {offsets = [0, 384], sizes = [8, 128], strides = [1, 1]} : vector<8x512xf32> to vector<8x128xf32>
    %141 = math.tanh %140 : vector<8x128xf32>
    %142 = vector.extract_strided_slice %139 {offsets = [0, 0], sizes = [8, 128], strides = [1, 1]} : vector<8x384xf32> to vector<8x128xf32>
    %143 = vector.extract_strided_slice %139 {offsets = [0, 128], sizes = [8, 128], strides = [1, 1]} : vector<8x384xf32> to vector<8x128xf32>
    %144 = vector.extract_strided_slice %139 {offsets = [0, 256], sizes = [8, 128], strides = [1, 1]} : vector<8x384xf32> to vector<8x128xf32>
    %145 = arith.mulf %143, %119 : vector<8x128xf32>
    %146 = arith.mulf %142, %141 : vector<8x128xf32>
    %147 = arith.addf %145, %146 : vector<8x128xf32>
    %148 = math.tanh %147 : vector<8x128xf32>
    %149 = arith.mulf %144, %148 : vector<8x128xf32>
    %150 = arith.truncf %149 : vector<8x128xf32> to vector<8x128xbf16>
    %151 = arith.index_cast %126 : i32 to index
    %c0_48 = arith.constant 0 : index
    %152 = vector.load %arg5[%151, %c0_48] : memref<64x128xbf16, #tpu.memory_space<vmem>>, vector<8x128xbf16>
    tpu.vector_store %arg5[%151, %c0_48], %150 {strides = array<i32>} : memref<64x128xbf16, #tpu.memory_space<vmem>>, vector<8x128xbf16>,
    %c5_i32 = arith.constant 5 : i32
    %c8_i32_49 = arith.constant 8 : i32
    %153 = arith.muli %c5_i32, %c8_i32_49 : i32
    %154 = tpu.assume_multiple %153, 8 : i32
    %155 = arith.index_cast %154 : i32 to index
    %c0_50 = arith.constant 0 : index
    %156 = vector.load %arg8[%155, %c0_50] : memref<64x512xf32, #tpu.memory_space<vmem>>, vector<8x512xf32>
    %157 = arith.truncf %149 : vector<8x128xf32> to vector<8x128xbf16>
    %cst_51 = arith.constant dense<0.000000e+00> : vector<8x512xf32>
    %158 = tpu.matmul %157, %10, %cst_51 {dimension_numbers = #tpu.dot_dimension_numbers<[1], [0], [0], [1], [0, 0, 1, 1], [], []>} : vector<8x128xbf16>, vector<128x512xbf16>, vector<8x512xf32> -> vector<8x512xf32>
    %159 = arith.addf %156, %158 : vector<8x512xf32>
    %160 = vector.extract_strided_slice %159 {offsets = [0, 0], sizes = [8, 384], strides = [1, 1]} : vector<8x512xf32> to vector<8x384xf32>
    %cst_52 = arith.constant 5.000000e-01 : f32
    %161 = vector.broadcast %cst_52 : f32 to vector<8x384xf32>
    %162 = arith.mulf %161, %160 : vector<8x384xf32>
    %163 = math.tanh %162 : vector<8x384xf32>
    %cst_53 = arith.constant 5.000000e-01 : f32
    %164 = vector.broadcast %cst_53 : f32 to vector<8x384xf32>
    %165 = arith.mulf %164, %163 : vector<8x384xf32>
    %cst_54 = arith.constant 5.000000e-01 : f32
    %166 = vector.broadcast %cst_54 : f32 to vector<8x384xf32>
    %167 = arith.addf %165, %166 : vector<8x384xf32>
    %168 = vector.extract_strided_slice %159 {offsets = [0, 384], sizes = [8, 128], strides = [1, 1]} : vector<8x512xf32> to vector<8x128xf32>
    %169 = math.tanh %168 : vector<8x128xf32>
    %170 = vector.extract_strided_slice %167 {offsets = [0, 0], sizes = [8, 128], strides = [1, 1]} : vector<8x384xf32> to vector<8x128xf32>
    %171 = vector.extract_strided_slice %167 {offsets = [0, 128], sizes = [8, 128], strides = [1, 1]} : vector<8x384xf32> to vector<8x128xf32>
    %172 = vector.extract_strided_slice %167 {offsets = [0, 256], sizes = [8, 128], strides = [1, 1]} : vector<8x384xf32> to vector<8x128xf32>
    %173 = arith.mulf %171, %147 : vector<8x128xf32>
    %174 = arith.mulf %170, %169 : vector<8x128xf32>
    %175 = arith.addf %173, %174 : vector<8x128xf32>
    %176 = math.tanh %175 : vector<8x128xf32>
    %177 = arith.mulf %172, %176 : vector<8x128xf32>
    %178 = arith.truncf %177 : vector<8x128xf32> to vector<8x128xbf16>
    %179 = arith.index_cast %154 : i32 to index
    %c0_55 = arith.constant 0 : index
    %180 = vector.load %arg5[%179, %c0_55] : memref<64x128xbf16, #tpu.memory_space<vmem>>, vector<8x128xbf16>
    tpu.vector_store %arg5[%179, %c0_55], %178 {strides = array<i32>} : memref<64x128xbf16, #tpu.memory_space<vmem>>, vector<8x128xbf16>,
    %c6_i32 = arith.constant 6 : i32
    %c8_i32_56 = arith.constant 8 : i32
    %181 = arith.muli %c6_i32, %c8_i32_56 : i32
    %182 = tpu.assume_multiple %181, 8 : i32
    %183 = arith.index_cast %182 : i32 to index
    %c0_57 = arith.constant 0 : index
    %184 = vector.load %arg8[%183, %c0_57] : memref<64x512xf32, #tpu.memory_space<vmem>>, vector<8x512xf32>
    %185 = arith.truncf %177 : vector<8x128xf32> to vector<8x128xbf16>
    %cst_58 = arith.constant dense<0.000000e+00> : vector<8x512xf32>
    %186 = tpu.matmul %185, %10, %cst_58 {dimension_numbers = #tpu.dot_dimension_numbers<[1], [0], [0], [1], [0, 0, 1, 1], [], []>} : vector<8x128xbf16>, vector<128x512xbf16>, vector<8x512xf32> -> vector<8x512xf32>
    %187 = arith.addf %184, %186 : vector<8x512xf32>
    %188 = vector.extract_strided_slice %187 {offsets = [0, 0], sizes = [8, 384], strides = [1, 1]} : vector<8x512xf32> to vector<8x384xf32>
    %cst_59 = arith.constant 5.000000e-01 : f32
    %189 = vector.broadcast %cst_59 : f32 to vector<8x384xf32>
    %190 = arith.mulf %189, %188 : vector<8x384xf32>
    %191 = math.tanh %190 : vector<8x384xf32>
    %cst_60 = arith.constant 5.000000e-01 : f32
    %192 = vector.broadcast %cst_60 : f32 to vector<8x384xf32>
    %193 = arith.mulf %192, %191 : vector<8x384xf32>
    %cst_61 = arith.constant 5.000000e-01 : f32
    %194 = vector.broadcast %cst_61 : f32 to vector<8x384xf32>
    %195 = arith.addf %193, %194 : vector<8x384xf32>
    %196 = vector.extract_strided_slice %187 {offsets = [0, 384], sizes = [8, 128], strides = [1, 1]} : vector<8x512xf32> to vector<8x128xf32>
    %197 = math.tanh %196 : vector<8x128xf32>
    %198 = vector.extract_strided_slice %195 {offsets = [0, 0], sizes = [8, 128], strides = [1, 1]} : vector<8x384xf32> to vector<8x128xf32>
    %199 = vector.extract_strided_slice %195 {offsets = [0, 128], sizes = [8, 128], strides = [1, 1]} : vector<8x384xf32> to vector<8x128xf32>
    %200 = vector.extract_strided_slice %195 {offsets = [0, 256], sizes = [8, 128], strides = [1, 1]} : vector<8x384xf32> to vector<8x128xf32>
    %201 = arith.mulf %199, %175 : vector<8x128xf32>
    %202 = arith.mulf %198, %197 : vector<8x128xf32>
    %203 = arith.addf %201, %202 : vector<8x128xf32>
    %204 = math.tanh %203 : vector<8x128xf32>
    %205 = arith.mulf %200, %204 : vector<8x128xf32>
    %206 = arith.truncf %205 : vector<8x128xf32> to vector<8x128xbf16>
    %207 = arith.index_cast %182 : i32 to index
    %c0_62 = arith.constant 0 : index
    %208 = vector.load %arg5[%207, %c0_62] : memref<64x128xbf16, #tpu.memory_space<vmem>>, vector<8x128xbf16>
    tpu.vector_store %arg5[%207, %c0_62], %206 {strides = array<i32>} : memref<64x128xbf16, #tpu.memory_space<vmem>>, vector<8x128xbf16>,
    %c7_i32 = arith.constant 7 : i32
    %c8_i32_63 = arith.constant 8 : i32
    %209 = arith.muli %c7_i32, %c8_i32_63 : i32
    %210 = tpu.assume_multiple %209, 8 : i32
    %211 = arith.index_cast %210 : i32 to index
    %c0_64 = arith.constant 0 : index
    %212 = vector.load %arg8[%211, %c0_64] : memref<64x512xf32, #tpu.memory_space<vmem>>, vector<8x512xf32>
    %213 = arith.truncf %205 : vector<8x128xf32> to vector<8x128xbf16>
    %cst_65 = arith.constant dense<0.000000e+00> : vector<8x512xf32>
    %214 = tpu.matmul %213, %10, %cst_65 {dimension_numbers = #tpu.dot_dimension_numbers<[1], [0], [0], [1], [0, 0, 1, 1], [], []>} : vector<8x128xbf16>, vector<128x512xbf16>, vector<8x512xf32> -> vector<8x512xf32>
    %215 = arith.addf %212, %214 : vector<8x512xf32>
    %216 = vector.extract_strided_slice %215 {offsets = [0, 0], sizes = [8, 384], strides = [1, 1]} : vector<8x512xf32> to vector<8x384xf32>
    %cst_66 = arith.constant 5.000000e-01 : f32
    %217 = vector.broadcast %cst_66 : f32 to vector<8x384xf32>
    %218 = arith.mulf %217, %216 : vector<8x384xf32>
    %219 = math.tanh %218 : vector<8x384xf32>
    %cst_67 = arith.constant 5.000000e-01 : f32
    %220 = vector.broadcast %cst_67 : f32 to vector<8x384xf32>
    %221 = arith.mulf %220, %219 : vector<8x384xf32>
    %cst_68 = arith.constant 5.000000e-01 : f32
    %222 = vector.broadcast %cst_68 : f32 to vector<8x384xf32>
    %223 = arith.addf %221, %222 : vector<8x384xf32>
    %224 = vector.extract_strided_slice %215 {offsets = [0, 384], sizes = [8, 128], strides = [1, 1]} : vector<8x512xf32> to vector<8x128xf32>
    %225 = math.tanh %224 : vector<8x128xf32>
    %226 = vector.extract_strided_slice %223 {offsets = [0, 0], sizes = [8, 128], strides = [1, 1]} : vector<8x384xf32> to vector<8x128xf32>
    %227 = vector.extract_strided_slice %223 {offsets = [0, 128], sizes = [8, 128], strides = [1, 1]} : vector<8x384xf32> to vector<8x128xf32>
    %228 = vector.extract_strided_slice %223 {offsets = [0, 256], sizes = [8, 128], strides = [1, 1]} : vector<8x384xf32> to vector<8x128xf32>
    %229 = arith.mulf %227, %203 : vector<8x128xf32>
    %230 = arith.mulf %226, %225 : vector<8x128xf32>
    %231 = arith.addf %229, %230 : vector<8x128xf32>
    %232 = math.tanh %231 : vector<8x128xf32>
    %233 = arith.mulf %228, %232 : vector<8x128xf32>
    %234 = arith.truncf %233 : vector<8x128xf32> to vector<8x128xbf16>
    %235 = arith.index_cast %210 : i32 to index
    %c0_69 = arith.constant 0 : index
    %236 = vector.load %arg5[%235, %c0_69] : memref<64x128xbf16, #tpu.memory_space<vmem>>, vector<8x128xbf16>
    tpu.vector_store %arg5[%235, %c0_69], %234 {strides = array<i32>} : memref<64x128xbf16, #tpu.memory_space<vmem>>, vector<8x128xbf16>,
    %c8_i32_70 = arith.constant 8 : i32
    %c0_71 = arith.constant 0 : index
    %c0_72 = arith.constant 0 : index
    %237 = vector.load %arg9[%c0_71, %c0_72] : memref<8x128xf32, #tpu.memory_space<vmem>>, vector<8x128xf32>
    tpu.vector_store %arg9[%c0_71, %c0_72], %233 {strides = array<i32>} : memref<8x128xf32, #tpu.memory_space<vmem>>, vector<8x128xf32>,
    %c0_73 = arith.constant 0 : index
    %c0_74 = arith.constant 0 : index
    %238 = vector.load %arg10[%c0_73, %c0_74] : memref<8x128xf32, #tpu.memory_space<vmem>>, vector<8x128xf32>
    tpu.vector_store %arg10[%c0_73, %c0_74], %231 {strides = array<i32>} : memref<8x128xf32, #tpu.memory_space<vmem>>, vector<8x128xf32>,
    return
  }
  func.func @transform_0(%arg0: i32) -> (i32, i32) {
    %c0_i32 = arith.constant 0 : i32
    %c0_i32_0 = arith.constant 0 : i32
    return %arg0, %c0_i32 : i32, i32
  }
  func.func @transform_3(%arg0: i32) -> (i32, i32) {
    %c0_i32 = arith.constant 0 : i32
    %c0_i32_0 = arith.constant 0 : i32
    %c0_i32_1 = arith.constant 0 : i32
    return %c0_i32, %c0_i32_0 : i32, i32
  }
  func.func @transform_4(%arg0: i32) -> (i32, i32) {
    %c0_i32 = arith.constant 0 : i32
    %c0_i32_0 = arith.constant 0 : i32
    return %arg0, %c0_i32 : i32, i32
  }
}

</mosaic_0001>

<bundles_post_ra>
// kernel: lstm_module_forward.3
= control target key start
LH: loop header
LB: loop body
LE: loop exit
PB: predicated region body
PF: predicated region fallthrough
CT: control target
= control target key end

     0   :  { %s2924_s0 = inlined_call_operand.vmem [shape: bf16[64,128], index: 0, kind: input, shape index: {}]   ;;  %s2925_s1 = inlined_call_operand.vmem [shape: bf16[128,512], index: 1, kind: input, shape index: {}]   ;;  %s2926_s2 = inlined_call_operand.vmem [shape: bf16[128,512], index: 2, kind: input, shape index: {}]   ;;  %s2927_s3 = inlined_call_operand.vmem [shape: f32[1,512], index: 3, kind: input, shape index: {}]   ;;  %s2928_s4 = inlined_call_operand.vmem [shape: bf16[64,128], index: 4, kind: output, shape index: {}]  }
   0x1   :  { %v35_v0 = vld [vmem:[%s2925_s1] sm:$0xf]  ;;  %v37_v1 = vld [vmem:[%s2925_s1 + $0x10] sm:$0xf]  ;;  %v39_v2 = vld [vmem:[%s2925_s1 + $0x4] sm:$0xf] }
   0x2   :  { %36 = vst [vmem:[#allocation2] sm:$0xf] %v35_v0  ;;  %38 = vst [vmem:[#allocation2 + $0x4] sm:$0xf] %v37_v1  ;;  %v41_v3 = vld [vmem:[%s2925_s1 + $0x14] sm:$0xf] }
   0x3   :  { %40 = vst [vmem:[#allocation2 + $0x8] sm:$0xf] %v39_v2  ;;  %v43_v4 = vld [vmem:[%s2925_s1 + $0x8] sm:$0xf]  ;;  %v45_v5 = vld [vmem:[%s2925_s1 + $0x18] sm:$0xf] }
   0x4   :  { %42 = vst [vmem:[#allocation2 + $0xc] sm:$0xf] %v41_v3  ;;  %44 = vst [vmem:[#allocation2 + $0x10] sm:$0xf] %v43_v4  ;;  %v47_v6 = vld [vmem:[%s2925_s1 + $0xc] sm:$0xf] }
   0x5   :  { %46 = vst [vmem:[#allocation2 + $0x14] sm:$0xf] %v45_v5  ;;  %v49_v7 = vld [vmem:[%s2925_s1 + $0x1c] sm:$0xff]   ;;  %v53_v8 = vld [vmem:[%s2925_s1 + $0x30] sm:$0xf] }
   0x6   :  { %48 = vst [vmem:[#allocation2 + $0x18] sm:$0xf] %v47_v6  ;;  %50 = vst [vmem:[#allocation2 + $0x1c] sm:$0xff] %v49_v7   ;;  %v55_v9 = vld [vmem:[%s2925_s1 + $0x24] sm:$0xf]  ;;  %v65_v14 = vld [vmem:[%s2925_s1 + $0x3c] sm:$0xff]  }
   0x7   :  { %54 = vst [vmem:[#allocation2 + $0x24] sm:$0xf] %v53_v8  ;;  %v57_v10 = vld [vmem:[%s2925_s1 + $0x34] sm:$0xf]  ;;  %v59_v11 = vld [vmem:[%s2925_s1 + $0x28] sm:$0xf] }
   0x8   :  { %56 = vst [vmem:[#allocation2 + $0x28] sm:$0xf] %v55_v9  ;;  %58 = vst [vmem:[#allocation2 + $0x2c] sm:$0xf] %v57_v10  ;;  %v61_v12 = vld [vmem:[%s2925_s1 + $0x38] sm:$0xf] }
   0x9   :  { %60 = vst [vmem:[#allocation2 + $0x30] sm:$0xf] %v59_v11  ;;  %v63_v13 = vld [vmem:[%s2925_s1 + $0x2c] sm:$0xf]  ;;  %62 = vst [vmem:[#allocation2 + $0x34] sm:$0xf] %v61_v12 }
   0xa   :  { %64 = vst [vmem:[#allocation2 + $0x38] sm:$0xf] %v63_v13  ;;  %66 = vst [vmem:[#allocation2 + $0x3c] sm:$0xff] %v65_v14   ;;  %v69_v15 = vld [vmem:[%s2925_s1 + $0x50] sm:$0xf]  ;;  %v81_v21 = vld [vmem:[%s2925_s1 + $0x5c] sm:$0xff]  }
   0xb   :  { %v71_v16 = vld [vmem:[%s2925_s1 + $0x44] sm:$0xf]  ;;  %v73_v17 = vld [vmem:[%s2925_s1 + $0x54] sm:$0xf]  ;;  %70 = vst [vmem:[#allocation2 + $0x44] sm:$0xf] %v69_v15 }
   0xc   :  { %72 = vst [vmem:[#allocation2 + $0x48] sm:$0xf] %v71_v16  ;;  %74 = vst [vmem:[#allocation2 + $0x4c] sm:$0xf] %v73_v17  ;;  %v75_v18 = vld [vmem:[%s2925_s1 + $0x48] sm:$0xf] }
   0xd   :  { %v77_v19 = vld [vmem:[%s2925_s1 + $0x58] sm:$0xf]  ;;  %v79_v20 = vld [vmem:[%s2925_s1 + $0x4c] sm:$0xf]  ;;  %76 = vst [vmem:[#allocation2 + $0x50] sm:$0xf] %v75_v18 }
   0xe   :  { %78 = vst [vmem:[#allocation2 + $0x54] sm:$0xf] %v77_v19  ;;  %80 = vst [vmem:[#allocation2 + $0x58] sm:$0xf] %v79_v20  ;;  %v85_v22 = vld [vmem:[%s2925_s1 + $0x70] sm:$0xf] }
   0xf   :  { %v87_v23 = vld [vmem:[%s2925_s1 + $0x64] sm:$0xf]  ;;  %82 = vst [vmem:[#allocation2 + $0x5c] sm:$0xff] %v81_v21   ;;  %86 = vst [vmem:[#allocation2 + $0x64] sm:$0xf] %v85_v22  ;;  %v97_v28 = vld [vmem:[%s2925_s1 + $0x7c] sm:$0xff]  }
  0x10   :  { %88 = vst [vmem:[#allocation2 + $0x68] sm:$0xf] %v87_v23  ;;  %v89_v24 = vld [vmem:[%s2925_s1 + $0x74] sm:$0xf]  ;;  %v91_v25 = vld [vmem:[%s2925_s1 + $0x68] sm:$0xf] }
  0x11   :  { %v93_v26 = vld [vmem:[%s2925_s1 + $0x78] sm:$0xf]  ;;  %90 = vst [vmem:[#allocation2 + $0x6c] sm:$0xf] %v89_v24  ;;  %92 = vst [vmem:[#allocation2 + $0x70] sm:$0xf] %v91_v25 }
  0x12   :  { %94 = vst [vmem:[#allocation2 + $0x74] sm:$0xf] %v93_v26  ;;  %v95_v27 = vld [vmem:[%s2925_s1 + $0x6c] sm:$0xf]  ;;  %v101_v29 = vld [vmem:[%s2925_s1 + $0x90] sm:$0xf] }
  0x13   :  { %96 = vst [vmem:[#allocation2 + $0x78] sm:$0xf] %v95_v27  ;;  %98 = vst [vmem:[#allocation2 + $0x7c] sm:$0xff] %v97_v28   ;;  %v103_v30 = vld [vmem:[%s2925_s1 + $0x84] sm:$0xf]  ;;  %v113_v35 = vld [vmem:[%s2925_s1 + $0x9c] sm:$0xff]  }
  0x14   :  { %102 = vst [vmem:[#allocation2 + $0x84] sm:$0xf] %v101_v29  ;;  %v105_v31 = vld [vmem:[%s2925_s1 + $0x94] sm:$0xf]  ;;  %v107_v32 = vld [vmem:[%s2925_s1 + $0x88] sm:$0xf] }
  0x15   :  { %104 = vst [vmem:[#allocation2 + $0x88] sm:$0xf] %v103_v30  ;;  %106 = vst [vmem:[#allocation2 + $0x8c] sm:$0xf] %v105_v31  ;;  %v109_v33 = vld [vmem:[%s2925_s1 + $0x98] sm:$0xf] }
  0x16   :  { %108 = vst [vmem:[#allocation2 + $0x90] sm:$0xf] %v107_v32  ;;  %v111_v34 = vld [vmem:[%s2925_s1 + $0x8c] sm:$0xf]  ;;  %110 = vst [vmem:[#allocation2 + $0x94] sm:$0xf] %v109_v33 }
  0x17   :  { %112 = vst [vmem:[#allocation2 + $0x98] sm:$0xf] %v111_v34  ;;  %114 = vst [vmem:[#allocation2 + $0x9c] sm:$0xff] %v113_v35   ;;  %v117_v36 = vld [vmem:[%s2925_s1 + $0xb0] sm:$0xf]  ;;  %v129_v42 = vld [vmem:[%s2925_s1 + $0xbc] sm:$0xff]  }
  0x18   :  { %v119_v37 = vld [vmem:[%s2925_s1 + $0xa4] sm:$0xf]  ;;  %v121_v38 = vld [vmem:[%s2925_s1 + $0xb4] sm:$0xf]  ;;  %118 = vst [vmem:[#allocation2 + $0xa4] sm:$0xf] %v117_v36 }
  0x19   :  { %120 = vst [vmem:[#allocation2 + $0xa8] sm:$0xf] %v119_v37  ;;  %122 = vst [vmem:[#allocation2 + $0xac] sm:$0xf] %v121_v38  ;;  %v123_v39 = vld [vmem:[%s2925_s1 + $0xa8] sm:$0xf] }
  0x1a   :  { %v125_v40 = vld [vmem:[%s2925_s1 + $0xb8] sm:$0xf]  ;;  %v127_v41 = vld [vmem:[%s2925_s1 + $0xac] sm:$0xf]  ;;  %124 = vst [vmem:[#allocation2 + $0xb0] sm:$0xf] %v123_v39 }
  0x1b   :  { %126 = vst [vmem:[#allocation2 + $0xb4] sm:$0xf] %v125_v40  ;;  %128 = vst [vmem:[#allocation2 + $0xb8] sm:$0xf] %v127_v41  ;;  %v133_v43 = vld [vmem:[%s2925_s1 + $0xd0] sm:$0xf] }
  0x1c   :  { %v135_v44 = vld [vmem:[%s2925_s1 + $0xc4] sm:$0xf]  ;;  %130 = vst [vmem:[#allocation2 + $0xbc] sm:$0xff] %v129_v42   ;;  %134 = vst [vmem:[#allocation2 + $0xc4] sm:$0xf] %v133_v43  ;;  %v145_v49 = vld [vmem:[%s2925_s1 + $0xdc] sm:$0xff]  }
  0x1d   :  { %136 = vst [vmem:[#allocation2 + $0xc8] sm:$0xf] %v135_v44  ;;  %v137_v45 = vld [vmem:[%s2925_s1 + $0xd4] sm:$0xf]  ;;  %v139_v46 = vld [vmem:[%s2925_s1 + $0xc8] sm:$0xf] }
  0x1e   :  { %v141_v47 = vld [vmem:[%s2925_s1 + $0xd8] sm:$0xf]  ;;  %138 = vst [vmem:[#allocation2 + $0xcc] sm:$0xf] %v137_v45  ;;  %140 = vst [vmem:[#allocation2 + $0xd0] sm:$0xf] %v139_v46 }
  0x1f   :  { %142 = vst [vmem:[#allocation2 + $0xd4] sm:$0xf] %v141_v47  ;;  %v143_v48 = vld [vmem:[%s2925_s1 + $0xcc] sm:$0xf]  ;;  %v149_v50 = vld [vmem:[%s2925_s1 + $0xf0] sm:$0xf] }
  0x20   :  { %144 = vst [vmem:[#allocation2 + $0xd8] sm:$0xf] %v143_v48  ;;  %146 = vst [vmem:[#allocation2 + $0xdc] sm:$0xff] %v145_v49   ;;  %v151_v51 = vld [vmem:[%s2925_s1 + $0xe4] sm:$0xf] }
  0x21   :  { %150 = vst [vmem:[#allocation2 + $0xe4] sm:$0xf] %v149_v50  ;;  %v153_v52 = vld [vmem:[%s2925_s1 + $0xf4] sm:$0xf]  ;;  %v155_v53 = vld [vmem:[%s2925_s1 + $0xe8] sm:$0xf] }
  0x22   :  { %152 = vst [vmem:[#allocation2 + $0xe8] sm:$0xf] %v151_v51  ;;  %154 = vst [vmem:[#allocation2 + $0xec] sm:$0xf] %v153_v52  ;;  %v157_v54 = vld [vmem:[%s2925_s1 + $0xf8] sm:$0xf] }
  0x23   :  { %156 = vst [vmem:[#allocation2 + $0xf0] sm:$0xf] %v155_v53  ;;  %v159_v55 = vld [vmem:[%s2925_s1 + $0xec] sm:$0xf]  ;;  %v161_v56 = vld [vmem:[%s2925_s1 + $0xfc] sm:$0xf] }
  0x24   :  { %158 = vst [vmem:[#allocation2 + $0xf4] sm:$0xf] %v157_v54  ;;  %160 = vst [vmem:[#allocation2 + $0xf8] sm:$0xf] %v159_v55 }
  0x25   :  { %162 = vst [vmem:[#allocation2 + $0xfc] sm:$0xf] %v161_v56 }
  0x26   :  { %321 = vsyncadd [#allocation7], 4096  ;;  %v340_v57 = vld [vmem:[%s2926_s2] sm:$0xf]  ;;  %v342_v58 = vld [vmem:[%s2926_s2 + $0x10] sm:$0xf] }
  0x27   :  { %341 = vst [vmem:[#allocation3] sm:$0xf] %v340_v57  ;;  %343 = vst [vmem:[#allocation3 + $0x4] sm:$0xf] %v342_v58  ;;  %v344_v59 = vld [vmem:[%s2926_s2 + $0x4] sm:$0xf] }
  0x28   :  { %v346_v60 = vld [vmem:[%s2926_s2 + $0x14] sm:$0xf]  ;;  %v348_v61 = vld [vmem:[%s2926_s2 + $0x8] sm:$0xf]  ;;  %345 = vst [vmem:[#allocation3 + $0x8] sm:$0xf] %v344_v59 }
  0x29   :  { %347 = vst [vmem:[#allocation3 + $0xc] sm:$0xf] %v346_v60  ;;  %349 = vst [vmem:[#allocation3 + $0x10] sm:$0xf] %v348_v61  ;;  %v350_v62 = vld [vmem:[%s2926_s2 + $0x18] sm:$0xf] }
  0x2a   :  { %v352_v63 = vld [vmem:[%s2926_s2 + $0xc] sm:$0xf]  ;;  %v354_v0 = vld [vmem:[%s2926_s2 + $0x1c] sm:$0xff]   ;;  %351 = vst [vmem:[#allocation3 + $0x14] sm:$0xf] %v350_v62 }
  0x2b   :  { %353 = vst [vmem:[#allocation3 + $0x18] sm:$0xf] %v352_v63  ;;  %355 = vst [vmem:[#allocation3 + $0x1c] sm:$0xff] %v354_v0   ;;  %v358_v1 = vld [vmem:[%s2926_s2 + $0x30] sm:$0xf]  ;;  %v370_v7 = vld [vmem:[%s2926_s2 + $0x3c] sm:$0xff]  }
  0x2c   :  { %v360_v2 = vld [vmem:[%s2926_s2 + $0x24] sm:$0xf]  ;;  %v362_v3 = vld [vmem:[%s2926_s2 + $0x34] sm:$0xf]  ;;  %359 = vst [vmem:[#allocation3 + $0x24] sm:$0xf] %v358_v1 }
  0x2d   :  { %361 = vst [vmem:[#allocation3 + $0x28] sm:$0xf] %v360_v2  ;;  %363 = vst [vmem:[#allocation3 + $0x2c] sm:$0xf] %v362_v3  ;;  %v364_v4 = vld [vmem:[%s2926_s2 + $0x28] sm:$0xf] }
  0x2e   :  { %v366_v5 = vld [vmem:[%s2926_s2 + $0x38] sm:$0xf]  ;;  %v368_v6 = vld [vmem:[%s2926_s2 + $0x2c] sm:$0xf]  ;;  %365 = vst [vmem:[#allocation3 + $0x30] sm:$0xf] %v364_v4 }
  0x2f   :  { %367 = vst [vmem:[#allocation3 + $0x34] sm:$0xf] %v366_v5  ;;  %369 = vst [vmem:[#allocation3 + $0x38] sm:$0xf] %v368_v6  ;;  %v374_v8 = vld [vmem:[%s2926_s2 + $0x50] sm:$0xf] }
  0x30   :  { %v376_v9 = vld [vmem:[%s2926_s2 + $0x44] sm:$0xf]  ;;  %371 = vst [vmem:[#allocation3 + $0x3c] sm:$0xff] %v370_v7   ;;  %375 = vst [vmem:[#allocation3 + $0x44] sm:$0xf] %v374_v8  ;;  %v386_v14 = vld [vmem:[%s2926_s2 + $0x5c] sm:$0xff]  }
  0x31   :  { %377 = vst [vmem:[#allocation3 + $0x48] sm:$0xf] %v376_v9  ;;  %v378_v10 = vld [vmem:[%s2926_s2 + $0x54] sm:$0xf]  ;;  %v380_v11 = vld [vmem:[%s2926_s2 + $0x48] sm:$0xf] }
  0x32   :  { %v382_v12 = vld [vmem:[%s2926_s2 + $0x58] sm:$0xf]  ;;  %379 = vst [vmem:[#allocation3 + $0x4c] sm:$0xf] %v378_v10  ;;  %381 = vst [vmem:[#allocation3 + $0x50] sm:$0xf] %v380_v11 }
  0x33   :  { %383 = vst [vmem:[#allocation3 + $0x54] sm:$0xf] %v382_v12  ;;  %v384_v13 = vld [vmem:[%s2926_s2 + $0x4c] sm:$0xf]  ;;  %v390_v15 = vld [vmem:[%s2926_s2 + $0x70] sm:$0xf] }
  0x34   :  { %385 = vst [vmem:[#allocation3 + $0x58] sm:$0xf] %v384_v13  ;;  %387 = vst [vmem:[#allocation3 + $0x5c] sm:$0xff] %v386_v14   ;;  %v392_v16 = vld [vmem:[%s2926_s2 + $0x64] sm:$0xf]  ;;  %v402_v21 = vld [vmem:[%s2926_s2 + $0x7c] sm:$0xff]  }
  0x35   :  { %391 = vst [vmem:[#allocation3 + $0x64] sm:$0xf] %v390_v15  ;;  %v394_v17 = vld [vmem:[%s2926_s2 + $0x74] sm:$0xf]  ;;  %v396_v18 = vld [vmem:[%s2926_s2 + $0x68] sm:$0xf] }
  0x36   :  { %393 = vst [vmem:[#allocation3 + $0x68] sm:$0xf] %v392_v16  ;;  %395 = vst [vmem:[#allocation3 + $0x6c] sm:$0xf] %v394_v17  ;;  %v398_v19 = vld [vmem:[%s2926_s2 + $0x78] sm:$0xf] }
  0x37   :  { %397 = vst [vmem:[#allocation3 + $0x70] sm:$0xf] %v396_v18  ;;  %v400_v20 = vld [vmem:[%s2926_s2 + $0x6c] sm:$0xf]  ;;  %399 = vst [vmem:[#allocation3 + $0x74] sm:$0xf] %v398_v19 }
  0x38   :  { %401 = vst [vmem:[#allocation3 + $0x78] sm:$0xf] %v400_v20  ;;  %403 = vst [vmem:[#allocation3 + $0x7c] sm:$0xff] %v402_v21   ;;  %v406_v22 = vld [vmem:[%s2926_s2 + $0x90] sm:$0xf]  ;;  %v418_v28 = vld [vmem:[%s2926_s2 + $0x9c] sm:$0xff]  }
  0x39   :  { %v408_v23 = vld [vmem:[%s2926_s2 + $0x84] sm:$0xf]  ;;  %v410_v24 = vld [vmem:[%s2926_s2 + $0x94] sm:$0xf]  ;;  %407 = vst [vmem:[#allocation3 + $0x84] sm:$0xf] %v406_v22 }
  0x3a   :  { %409 = vst [vmem:[#allocation3 + $0x88] sm:$0xf] %v408_v23  ;;  %411 = vst [vmem:[#allocation3 + $0x8c] sm:$0xf] %v410_v24  ;;  %v412_v25 = vld [vmem:[%s2926_s2 + $0x88] sm:$0xf] }
  0x3b   :  { %v414_v26 = vld [vmem:[%s2926_s2 + $0x98] sm:$0xf]  ;;  %v416_v27 = vld [vmem:[%s2926_s2 + $0x8c] sm:$0xf]  ;;  %413 = vst [vmem:[#allocation3 + $0x90] sm:$0xf] %v412_v25 }
  0x3c   :  { %415 = vst [vmem:[#allocation3 + $0x94] sm:$0xf] %v414_v26  ;;  %417 = vst [vmem:[#allocation3 + $0x98] sm:$0xf] %v416_v27  ;;  %v422_v29 = vld [vmem:[%s2926_s2 + $0xb0] sm:$0xf] }
  0x3d   :  { %v424_v30 = vld [vmem:[%s2926_s2 + $0xa4] sm:$0xf]  ;;  %419 = vst [vmem:[#allocation3 + $0x9c] sm:$0xff] %v418_v28   ;;  %423 = vst [vmem:[#allocation3 + $0xa4] sm:$0xf] %v422_v29  ;;  %v434_v35 = vld [vmem:[%s2926_s2 + $0xbc] sm:$0xff]  }
  0x3e   :  { %425 = vst [vmem:[#allocation3 + $0xa8] sm:$0xf] %v424_v30  ;;  %v426_v31 = vld [vmem:[%s2926_s2 + $0xb4] sm:$0xf]  ;;  %v428_v32 = vld [vmem:[%s2926_s2 + $0xa8] sm:$0xf] }
  0x3f   :  { %v430_v33 = vld [vmem:[%s2926_s2 + $0xb8] sm:$0xf]  ;;  %427 = vst [vmem:[#allocation3 + $0xac] sm:$0xf] %v426_v31  ;;  %429 = vst [vmem:[#allocation3 + $0xb0] sm:$0xf] %v428_v32 }
  0x40   :  { %431 = vst [vmem:[#allocation3 + $0xb4] sm:$0xf] %v430_v33  ;;  %v432_v34 = vld [vmem:[%s2926_s2 + $0xac] sm:$0xf]  ;;  %v438_v36 = vld [vmem:[%s2926_s2 + $0xd0] sm:$0xf] }
  0x41   :  { %433 = vst [vmem:[#allocation3 + $0xb8] sm:$0xf] %v432_v34  ;;  %435 = vst [vmem:[#allocation3 + $0xbc] sm:$0xff] %v434_v35   ;;  %v440_v37 = vld [vmem:[%s2926_s2 + $0xc4] sm:$0xf]  ;;  %v450_v42 = vld [vmem:[%s2926_s2 + $0xdc] sm:$0xff]  }
  0x42   :  { %439 = vst [vmem:[#allocation3 + $0xc4] sm:$0xf] %v438_v36  ;;  %v442_v38 = vld [vmem:[%s2926_s2 + $0xd4] sm:$0xf]  ;;  %v444_v39 = vld [vmem:[%s2926_s2 + $0xc8] sm:$0xf] }
  0x43   :  { %441 = vst [vmem:[#allocation3 + $0xc8] sm:$0xf] %v440_v37  ;;  %443 = vst [vmem:[#allocation3 + $0xcc] sm:$0xf] %v442_v38  ;;  %v446_v40 = vld [vmem:[%s2926_s2 + $0xd8] sm:$0xf] }
  0x44   :  { %445 = vst [vmem:[#allocation3 + $0xd0] sm:$0xf] %v444_v39  ;;  %v448_v41 = vld [vmem:[%s2926_s2 + $0xcc] sm:$0xf]  ;;  %447 = vst [vmem:[#allocation3 + $0xd4] sm:$0xf] %v446_v40 }
  0x45   :  { %449 = vst [vmem:[#allocation3 + $0xd8] sm:$0xf] %v448_v41  ;;  %451 = vst [vmem:[#allocation3 + $0xdc] sm:$0xff] %v450_v42   ;;  %v454_v43 = vld [vmem:[%s2926_s2 + $0xf0] sm:$0xf] }
  0x46   :  { %v456_v44 = vld [vmem:[%s2926_s2 + $0xe4] sm:$0xf]  ;;  %v458_v45 = vld [vmem:[%s2926_s2 + $0xf4] sm:$0xf]  ;;  %455 = vst [vmem:[#allocation3 + $0xe4] sm:$0xf] %v454_v43 }
  0x47   :  { %457 = vst [vmem:[#allocation3 + $0xe8] sm:$0xf] %v456_v44  ;;  %459 = vst [vmem:[#allocation3 + $0xec] sm:$0xf] %v458_v45  ;;  %v460_v46 = vld [vmem:[%s2926_s2 + $0xe8] sm:$0xf] }
  0x48   :  { %v462_v47 = vld [vmem:[%s2926_s2 + $0xf8] sm:$0xf]  ;;  %v464_v48 = vld [vmem:[%s2926_s2 + $0xec] sm:$0xf]  ;;  %461 = vst [vmem:[#allocation3 + $0xf0] sm:$0xf] %v460_v46 }
  0x49   :  { %463 = vst [vmem:[#allocation3 + $0xf4] sm:$0xf] %v462_v47  ;;  %465 = vst [vmem:[#allocation3 + $0xf8] sm:$0xf] %v464_v48  ;;  %v466_v49 = vld [vmem:[%s2926_s2 + $0xfc] sm:$0xf] }
  0x4a   :  { %467 = vst [vmem:[#allocation3 + $0xfc] sm:$0xf] %v466_v49 }
  0x4b   :  { %626 = vsyncadd [#allocation7 + $0x1], 4096 }
  0x4c   :  { %2030 = dma.done.wait [#allocation7], 4096 }
  0x4d   :  { %2031 = vsyncadd [#allocation7], 4294963200 }
  0x4e   :  { %2032 = dma.done.wait [#allocation7 + $0x1], 4096 }
  0x4f   :  { %2033 = vsyncadd [#allocation7 + $0x1], 4294963200  ;;  %v2929_v50 = vmov 0   ;;  %v644_v51 = vld [vmem:[#allocation2 + $0x8] sm:$0xff]  ;;  %v646_v52 = vld [vmem:[#allocation2 + $0x18] sm:$0xff] }
  0x50   :  { %753 = vmatprep.mubr.bf16.mxu0 %v2929_v50  ;;  %826 = vmatprep.mubr.bf16.mxu1 %v2929_v50  ;;  %v643_v53 = vld [vmem:[#allocation2] sm:$0xff]  ;;  %v645_v54 = vld [vmem:[#allocation2 + $0x10] sm:$0xff]  ;;  %v648_v55 = vld [vmem:[#allocation2 + $0x28] sm:$0xff] }
  0x51   :  { %721 = vmatprep.subr.bf16.mxu0 %v644_v51  ;;  %794 = vmatprep.subr.bf16.mxu1 %v646_v52  ;;  %v650_v56 = vld [vmem:[#allocation2 + $0x38] sm:$0xff]  ;;  %v647_v57 = vld [vmem:[#allocation2 + $0x20] sm:$0xff]  ;;  %v649_v58 = vld [vmem:[#allocation2 + $0x30] sm:$0xff] }
  0x52   :  { %722 = vmatpush1.bf16.msra.mxu0 %v643_v53  ;;  %795 = vmatpush1.bf16.msra.mxu1 %v645_v54  ;;  %v652_v59 = vld [vmem:[#allocation2 + $0x48] sm:$0xff]  ;;  %v654_v60 = vld [vmem:[#allocation2 + $0x58] sm:$0xff]  ;;  %v651_v61 = vld [vmem:[#allocation2 + $0x40] sm:$0xff] }
  0x53   :  { %723 = vmatprep.subr.bf16.mxu0 %v648_v55  ;;  %796 = vmatprep.subr.bf16.mxu1 %v650_v56  ;;  %v653_v62 = vld [vmem:[#allocation2 + $0x50] sm:$0xff]  ;;  %v656_v63 = vld [vmem:[#allocation2 + $0x68] sm:$0xff]  ;;  %v658_v0 = vld [vmem:[#allocation2 + $0x78] sm:$0xff]  ;;  %v2035_v56 = vmov 0.0|0.0  }
  0x54   :  { %v655_v1 = vld [vmem:[#allocation2 + $0x60] sm:$0xff]  ;;  %v657_v2 = vld [vmem:[#allocation2 + $0x70] sm:$0xff]  ;;  %v660_v3 = vld [vmem:[#allocation2 + $0x88] sm:$0xff] }
  0x55   :  { %v662_v4 = vld [vmem:[#allocation2 + $0x98] sm:$0xff]  ;;  %v659_v5 = vld [vmem:[#allocation2 + $0x80] sm:$0xff]  ;;  %v661_v6 = vld [vmem:[#allocation2 + $0x90] sm:$0xff] }
  0x56   :  { %724 = vmatpush1.bf16.msra.mxu0 %v647_v57  ;;  %797 = vmatpush1.bf16.msra.mxu1 %v649_v58  ;;  %v664_v7 = vld [vmem:[#allocation2 + $0xa8] sm:$0xff]  ;;  %v666_v8 = vld [vmem:[#allocation2 + $0xb8] sm:$0xff]  ;;  %v663_v9 = vld [vmem:[#allocation2 + $0xa0] sm:$0xff]  ;;  %v677_v57 = vlaneseq }
  0x57   :  { %725 = vmatprep.subr.bf16.mxu0 %v652_v59  ;;  %798 = vmatprep.subr.bf16.mxu1 %v654_v60  ;;  %v665_v10 = vld [vmem:[#allocation2 + $0xb0] sm:$0xff]  ;;  %v668_v11 = vld [vmem:[#allocation2 + $0xc8] sm:$0xff]  ;;  %v670_v12 = vld [vmem:[#allocation2 + $0xd8] sm:$0xff] }
  0x58   :  { %v667_v13 = vld [vmem:[#allocation2 + $0xc0] sm:$0xff]  ;;  %v669_v14 = vld [vmem:[#allocation2 + $0xd0] sm:$0xff]  ;;  %v672_v15 = vld [vmem:[#allocation2 + $0xe8] sm:$0xff]  ;;  %v678_v58 = vshrl.u32 %v677_v57, 7 }
  0x59   :  { %v674_v16 = vld [vmem:[#allocation2 + $0xf8] sm:$0xff]  ;;  %v671_v17 = vld [vmem:[#allocation2 + $0xe0] sm:$0xff]  ;;  %v673_v18 = vld [vmem:[#allocation2 + $0xf0] sm:$0xff] }
  0x5a   :  { %726 = vmatpush1.bf16.msra.mxu0 %v651_v61  ;;  %799 = vmatpush1.bf16.msra.mxu1 %v653_v62  ;;  %v2405_v19 = vld [vmem:[#allocation3 + $0x8] sm:$0xff]  ;;  %v2407_v20 = vld [vmem:[#allocation3 + $0x18] sm:$0xff]  ;;  %v1914_v21 = vld [vmem:[%s2924_s0] sm:$0xff]   ;;  %v687_v59 = vsub.s32 2, %v678_v58  ;;  %v691_v60 = vsub.s32 3, %v678_v58  ;;  %v679_v61 = vsub.s32 0, %v678_v58 }
  0x5b   :  { %727 = vmatprep.subr.bf16.mxu0 %v656_v63  ;;  %800 = vmatprep.subr.bf16.mxu1 %v658_v0  ;;  %v2414_v22 = vld [vmem:[#allocation3] sm:$0xff]  ;;  %v2416_v23 = vld [vmem:[#allocation3 + $0x10] sm:$0xff]  ;;  %v2418_v24 = vld [vmem:[#allocation3 + $0x28] sm:$0xff]  ;;  %v683_v63 = vsub.s32 1, %v678_v58 }
  0x5c   :  { %v2420_v25 = vld [vmem:[#allocation3 + $0x38] sm:$0xff]  ;;  %v2426_v26 = vld [vmem:[#allocation3 + $0x20] sm:$0xff]  ;;  %v2428_v27 = vld [vmem:[#allocation3 + $0x30] sm:$0xff] }
  0x5d   :  { %v2432_v28 = vld [vmem:[#allocation3 + $0x48] sm:$0xff]  ;;  %v2434_v29 = vld [vmem:[#allocation3 + $0x58] sm:$0xff]  ;;  %v2443_v31 = vld [vmem:[#allocation3 + $0x40] sm:$0xff] }
  0x5e   :  { %728 = vmatpush1.bf16.msra.mxu0 %v655_v1  ;;  %801 = vmatpush1.bf16.msra.mxu1 %v657_v2  ;;  %v1915_v30 = vld [vmem:[%s2924_s0 + $0x8] sm:$0xff]   ;;  %v2445_v32 = vld [vmem:[#allocation3 + $0x50] sm:$0xff]  ;;  %v2449_v34 = vld [vmem:[#allocation3 + $0x78] sm:$0xff] }
  0x5f   :  { %729 = vmatprep.subr.bf16.mxu0 %v660_v3  ;;  %802 = vmatprep.subr.bf16.mxu1 %v662_v4  ;;  %v2447_v33 = vld [vmem:[#allocation3 + $0x68] sm:$0xff]  ;;  %v2455_v35 = vld [vmem:[#allocation3 + $0x60] sm:$0xff]  ;;  %v2457_v36 = vld [vmem:[#allocation3 + $0x70] sm:$0xff] }
  0x60   :  { %v2461_v37 = vld [vmem:[#allocation3 + $0x88] sm:$0xff]  ;;  %v2463_v38 = vld [vmem:[#allocation3 + $0x98] sm:$0xff]  ;;  %v1916_v39 = vld [vmem:[%s2924_s0 + $0x10] sm:$0xff]  }
  0x61   :  { %v2472_v40 = vld [vmem:[#allocation3 + $0x80] sm:$0xff]  ;;  %v2474_v41 = vld [vmem:[#allocation3 + $0x90] sm:$0xff]  ;;  %v2476_v42 = vld [vmem:[#allocation3 + $0xa8] sm:$0xff] }
  0x62   :  { %730 = vmatpush1.bf16.msra.mxu0 %v659_v5  ;;  %803 = vmatpush1.bf16.msra.mxu1 %v661_v6  ;;  %v2478_v43 = vld [vmem:[#allocation3 + $0xb8] sm:$0xff]  ;;  %v2484_v44 = vld [vmem:[#allocation3 + $0xa0] sm:$0xff]  ;;  %v2486_v45 = vld [vmem:[#allocation3 + $0xb0] sm:$0xff] }
  0x63   :  { %731 = vmatprep.subr.bf16.mxu0 %v664_v7  ;;  %804 = vmatprep.subr.bf16.mxu1 %v666_v8  ;;  %v2490_v46 = vld [vmem:[#allocation3 + $0xc8] sm:$0xff]  ;;  %v2492_v47 = vld [vmem:[#allocation3 + $0xd8] sm:$0xff]  ;;  %v2501_v49 = vld [vmem:[#allocation3 + $0xc0] sm:$0xff] }
  0x64   :  { %v1917_v48 = vld [vmem:[%s2924_s0 + $0x18] sm:$0xff]   ;;  %v2503_v51 = vld [vmem:[#allocation3 + $0xd0] sm:$0xff]  ;;  %v2505_v52 = vld [vmem:[#allocation3 + $0xe8] sm:$0xff] }
  0x65   :  { %v2507_v53 = vld [vmem:[#allocation3 + $0xf8] sm:$0xff]  ;;  %v2513_v54 = vld [vmem:[#allocation3 + $0xe0] sm:$0xff]  ;;  %v2515_v55 = vld [vmem:[#allocation3 + $0xf0] sm:$0xff] }
  0x66   :  { %732 = vmatpush1.bf16.msra.mxu0 %v663_v9  ;;  %805 = vmatpush1.bf16.msra.mxu1 %v665_v10  ;;  %v675_v62 = vld [vmem:[%s2927_s3] sm:$0xf] }
  0x67   :  { %733 = vmatprep.subr.bf16.mxu0 %v668_v11  ;;  %806 = vmatprep.subr.bf16.mxu1 %v670_v12  ;;  %v2560_v0 = vrot.slane %v675_v62, %v687_v59  ;;  %v2566_v3 = vrot.slane %v675_v62, %v691_v60  ;;  %v680_v4 = vrot.slane %v675_v62, %v679_v61 }
  0x68   :  { %v684_v7 = vrot.slane %v675_v62, %v683_v63 }
  0x6a   :  { %734 = vmatpush1.bf16.msra.mxu0 %v667_v13  ;;  %807 = vmatpush1.bf16.msra.mxu1 %v669_v14 }
  0x6b   :  { %735 = vmatprep.subr.bf16.mxu0 %v672_v15  ;;  %808 = vmatprep.subr.bf16.mxu1 %v674_v16 }
  0x6e   :  { %736 = vmatpush1.bf16.msra.mxu0 %v671_v17  ;;  %809 = vmatpush1.bf16.msra.mxu1 %v673_v18 }
  0x6f   :  { %941 = vmatprep.subr.bf16.mxu0 %v2405_v19  ;;  %982 = vmatprep.subr.bf16.mxu1 %v2407_v20 }
  0x71   :  { %754 = vmatmul.mubr.bf16.vlgmr.msra.gmra.mrb[0].mxu0 %v1914_v21  ;;  %827 = vmatmul.mubr.bf16.vlgmr.msra.gmra.mrb[0].mxu1 %v1914_v21 }
  0x72   :  { %942 = vmatpush1.bf16.msra.mxu0 %v2414_v22  ;;  %983 = vmatpush1.bf16.msra.mxu1 %v2416_v23 }
  0x73   :  { %943 = vmatprep.subr.bf16.mxu0 %v2418_v24  ;;  %984 = vmatprep.subr.bf16.mxu1 %v2420_v25 }
  0x74   :  { %763 = vmatprep.mubr.bf16.mxu0 %v2929_v50  ;;  %836 = vmatprep.mubr.bf16.mxu1 %v2929_v50 }
  0x76   :  { %944 = vmatpush1.bf16.msra.mxu0 %v2426_v26  ;;  %985 = vmatpush1.bf16.msra.mxu1 %v2428_v27 }
  0x77   :  { %945 = vmatprep.subr.bf16.mxu0 %v2432_v28  ;;  %986 = vmatprep.subr.bf16.mxu1 %v2434_v29 }
  0x79   :  { %764 = vmatmul.mubr.bf16.gmra.mrb[4].mxu0 %v1915_v30  ;;  %837 = vmatmul.mubr.bf16.gmra.mrb[4].mxu1 %v1915_v30 }
  0x7a   :  { %946 = vmatpush1.bf16.msra.mxu0 %v2443_v31  ;;  %987 = vmatpush1.bf16.msra.mxu1 %v2445_v32 }
  0x7b   :  { %947 = vmatprep.subr.bf16.mxu0 %v2447_v33  ;;  %988 = vmatprep.subr.bf16.mxu1 %v2449_v34 }
  0x7c   :  { %773 = vmatprep.mubr.bf16.mxu0 %v2929_v50  ;;  %846 = vmatprep.mubr.bf16.mxu1 %v2929_v50 }
  0x7e   :  { %948 = vmatpush1.bf16.msra.mxu0 %v2455_v35  ;;  %989 = vmatpush1.bf16.msra.mxu1 %v2457_v36 }
  0x7f   :  { %949 = vmatprep.subr.bf16.mxu0 %v2461_v37  ;;  %990 = vmatprep.subr.bf16.mxu1 %v2463_v38 }
  0x81   :  { %774 = vmatmul.mubr.bf16.gmra.mrb[8].mxu0 %v1916_v39  ;;  %847 = vmatmul.mubr.bf16.gmra.mrb[8].mxu1 %v1916_v39 }
  0x82   :  { %950 = vmatpush1.bf16.msra.mxu0 %v2472_v40  ;;  %991 = vmatpush1.bf16.msra.mxu1 %v2474_v41 }
  0x83   :  { %951 = vmatprep.subr.bf16.mxu0 %v2476_v42  ;;  %992 = vmatprep.subr.bf16.mxu1 %v2478_v43 }
  0x84   :  { %783 = vmatprep.mubr.bf16.mxu0 %v2929_v50  ;;  %856 = vmatprep.mubr.bf16.mxu1 %v2929_v50 }
  0x86   :  { %952 = vmatpush1.bf16.msra.mxu0 %v2484_v44  ;;  %993 = vmatpush1.bf16.msra.mxu1 %v2486_v45 }
  0x87   :  { %953 = vmatprep.subr.bf16.mxu0 %v2490_v46  ;;  %994 = vmatprep.subr.bf16.mxu1 %v2492_v47 }
  0x89   :  { %784 = vmatmul.mubr.bf16.gmra.mrb[12].mxu0 %v1917_v48  ;;  %857 = vmatmul.mubr.bf16.gmra.mrb[12].mxu1 %v1917_v48 }
  0x8a   :  { %954 = vmatpush1.bf16.msra.mxu0 %v2501_v49  ;;  %995 = vmatpush1.bf16.msra.mxu1 %v2503_v51 }
  0x8b   :  { %955 = vmatprep.subr.bf16.mxu0 %v2505_v52  ;;  %996 = vmatprep.subr.bf16.mxu1 %v2507_v53 }
  0x8c   :  { %973 = vmatprep.mubr.bf16.mxu0 %v2929_v50  ;;  %1014 = vmatprep.mubr.bf16.mxu1 %v2929_v50 }
  0x8e   :  { %956 = vmatpush1.bf16.msra.mxu0 %v2513_v54  ;;  %997 = vmatpush1.bf16.msra.mxu1 %v2515_v55 }
  0x8f   :  { %1054 = vmatprep.subr.bf16.mxu0 %v2405_v19  ;;  %1095 = vmatprep.subr.bf16.mxu1 %v2407_v20 }
  0x91   :  { %974 = vmatmul.mubr.bf16.vlgmr.msra.gmra.mrb[16].mxu0 %v2035_v56  ;;  %1015 = vmatmul.mubr.bf16.vlgmr.msra.gmra.mrb[16].mxu1 %v2035_v56 }
  0x92   :  { %1055 = vmatpush1.bf16.msra.mxu0 %v2414_v22  ;;  %1096 = vmatpush1.bf16.msra.mxu1 %v2416_v23 }
  0x93   :  { %1056 = vmatprep.subr.bf16.mxu0 %v2418_v24  ;;  %1097 = vmatprep.subr.bf16.mxu1 %v2420_v25 }
  0x94   :  { %1086 = vmatprep.mubr.bf16.mxu0 %v2929_v50  ;;  %1127 = vmatprep.mubr.bf16.mxu1 %v2929_v50 }
  0x96   :  { %1057 = vmatpush1.bf16.msra.mxu0 %v2426_v26  ;;  %1098 = vmatpush1.bf16.msra.mxu1 %v2428_v27 }
  0x97   :  { %1058 = vmatprep.subr.bf16.mxu0 %v2432_v28  ;;  %1099 = vmatprep.subr.bf16.mxu1 %v2434_v29 }
  0x9a   :  { %1059 = vmatpush1.bf16.msra.mxu0 %v2443_v31  ;;  %1100 = vmatpush1.bf16.msra.mxu1 %v2445_v32 }
  0x9b   :  { %1060 = vmatprep.subr.bf16.mxu0 %v2447_v33  ;;  %1101 = vmatprep.subr.bf16.mxu1 %v2449_v34 }
  0x9e   :  { %1061 = vmatpush1.bf16.msra.mxu0 %v2455_v35  ;;  %1102 = vmatpush1.bf16.msra.mxu1 %v2457_v36 }
  0x9f   :  { %1062 = vmatprep.subr.bf16.mxu0 %v2461_v37  ;;  %1103 = vmatprep.subr.bf16.mxu1 %v2463_v38 }
  0xa2   :  { %1063 = vmatpush1.bf16.msra.mxu0 %v2472_v40  ;;  %1104 = vmatpush1.bf16.msra.mxu1 %v2474_v41 }
  0xa3   :  { %1064 = vmatprep.subr.bf16.mxu0 %v2476_v42  ;;  %1105 = vmatprep.subr.bf16.mxu1 %v2478_v43 }
  0xa6   :  { %1065 = vmatpush1.bf16.msra.mxu0 %v2484_v44  ;;  %1106 = vmatpush1.bf16.msra.mxu1 %v2486_v45 }
  0xa7   :  { %1066 = vmatprep.subr.bf16.mxu0 %v2490_v46  ;;  %1107 = vmatprep.subr.bf16.mxu1 %v2492_v47 }
  0xaa   :  { %1067 = vmatpush1.bf16.msra.mxu0 %v2501_v49  ;;  %1108 = vmatpush1.bf16.msra.mxu1 %v2503_v51 }
  0xab   :  { %1068 = vmatprep.subr.bf16.mxu0 %v2505_v52  ;;  %1109 = vmatprep.subr.bf16.mxu1 %v2507_v53 }
  0xae   :  { %1069 = vmatpush1.bf16.msra.mxu0 %v2513_v54  ;;  %1110 = vmatpush1.bf16.msra.mxu1 %v2515_v55 }
  0xaf   :  { %1168 = vmatprep.subr.bf16.mxu0 %v2405_v19  ;;  %1209 = vmatprep.subr.bf16.mxu1 %v2407_v20 }
 0x144   :  { %v2562_v1 = vpop.f32.mrb[0].mxu0  ;;  %v2564_v2 = vpop.f32.mrb[0].mxu1 }
 0x145   :  { %v757_v5 = vpop.f32.mrb[1].mxu0  ;;  %v830_v6 = vpop.f32.mrb[1].mxu1 }
 0x146   :  { %v759_v8 = vpop.f32.mrb[2].mxu0  ;;  %v832_v9 = vpop.f32.mrb[2].mxu1 }
 0x147   :  { %v2568_v10 = vadd.f32 %v759_v8, %v680_v4  ;;  %v761_v11 = vpop.f32.mrb[3].mxu0  ;;  %v2571_v12 = vadd.f32 %v832_v9, %v2560_v0  ;;  %v834_v13 = vpop.f32.mrb[3].mxu1 }
 0x148   :  { %v2573_v14 = vadd.f32 %v761_v11, %v684_v7  ;;  %v2576_v15 = vadd.f32 %v834_v13, %v2566_v3 }
 0x14c   :  { %v765_v16 = vpop.f32.mrb[4].mxu0  ;;  %v838_v17 = vpop.f32.mrb[4].mxu1 }
 0x14d   :  { %v2578_v18 = vadd.f32 %v765_v16, %v680_v4  ;;  %v767_v21 = vpop.f32.mrb[5].mxu0  ;;  %v2581_v30 = vadd.f32 %v838_v17, %v2560_v0  ;;  %v840_v39 = vpop.f32.mrb[5].mxu1 }
 0x14e   :  { %v2583_v48 = vadd.f32 %v767_v21, %v684_v7  ;;  %v769_v56 = vpop.f32.mrb[6].mxu0  ;;  %v2586_v57 = vadd.f32 %v840_v39, %v2566_v3  ;;  %v842_v58 = vpop.f32.mrb[6].mxu1 }
 0x14f   :  { %v2588_v59 = vadd.f32 %v769_v56, %v680_v4  ;;  %v771_v60 = vpop.f32.mrb[7].mxu0  ;;  %v2591_v61 = vadd.f32 %v842_v58, %v2560_v0  ;;  %v844_v62 = vpop.f32.mrb[7].mxu1 }
 0x150   :  { %2931 = vst [vmem:[#allocation12_spill] sm:$0xff] %v2586_v57  ;;  %v2593_v63 = vadd.f32 %v771_v60, %v684_v7  ;;  %v2596_v8 = vadd.f32 %v844_v62, %v2566_v3 }
 0x151   :  { %2932 = vst [vmem:[#allocation13_spill] sm:$0xff] %v2588_v59  ;;  %2933 = vst [vmem:[#allocation14_spill] sm:$0xff] %v2591_v61 }
 0x152   :  { %2934 = vst [vmem:[#allocation15_spill] sm:$0xff] %v2593_v63  ;;  %2935 = vst [vmem:[#allocation16_spill] sm:$0xff] %v2596_v8 }
 0x154   :  { %v775_v9 = vpop.f32.mrb[8].mxu0  ;;  %v848_v11 = vpop.f32.mrb[8].mxu1 }
 0x155   :  { %v2598_v13 = vadd.f32 %v775_v9, %v680_v4  ;;  %v777_v16 = vpop.f32.mrb[9].mxu0  ;;  %v2601_v17 = vadd.f32 %v848_v11, %v2560_v0  ;;  %v850_v21 = vpop.f32.mrb[9].mxu1 }
 0x156   :  { %v2603_v39 = vadd.f32 %v777_v16, %v684_v7  ;;  %v779_v56 = vpop.f32.mrb[10].mxu0  ;;  %v2606_v58 = vadd.f32 %v850_v21, %v2566_v3  ;;  %v852_v60 = vpop.f32.mrb[10].mxu1 }
 0x157   :  { %2936 = vst [vmem:[#allocation17_spill] sm:$0xff] %v2598_v13  ;;  %2937 = vst [vmem:[#allocation18_spill] sm:$0xff] %v2601_v17  ;;  %v2608_v50 = vadd.f32 %v779_v56, %v680_v4  ;;  %v781_v62 = vpop.f32.mrb[11].mxu0  ;;  %v2611_v8 = vadd.f32 %v852_v60, %v2560_v0  ;;  %v854_v9 = vpop.f32.mrb[11].mxu1 }
 0x158   :  { %2938 = vst [vmem:[#allocation19_spill] sm:$0xff] %v2603_v39  ;;  %2939 = vst [vmem:[#allocation20_spill] sm:$0xff] %v2606_v58  ;;  %v2613_v13 = vadd.f32 %v781_v62, %v684_v7  ;;  %v2616_v11 = vadd.f32 %v854_v9, %v2566_v3 }
 0x159   :  { %2940 = vst [vmem:[#allocation21_spill] sm:$0xff] %v2608_v50  ;;  %2941 = vst [vmem:[#allocation22_spill] sm:$0xff] %v2611_v8 }
 0x15a   :  { %2942 = vst [vmem:[#allocation23_spill] sm:$0xff] %v2613_v13  ;;  %2943 = vst [vmem:[#allocation24_spill] sm:$0xff] %v2616_v11 }
 0x15c   :  { %v785_v17 = vpop.f32.mrb[12].mxu0  ;;  %v858_v16 = vpop.f32.mrb[12].mxu1 }
 0x15d   :  { %v2618_v39 = vadd.f32 %v785_v17, %v680_v4  ;;  %v787_v63 = vpop.f32.mrb[13].mxu0  ;;  %v2621_v21 = vadd.f32 %v858_v16, %v2560_v0  ;;  %v860_v56 = vpop.f32.mrb[13].mxu1 }
 0x15e   :  { %v2623_v50 = vadd.f32 %v787_v63, %v684_v7  ;;  %v789_v58 = vpop.f32.mrb[14].mxu0  ;;  %v2626_v60 = vadd.f32 %v860_v56, %v2566_v3  ;;  %v862_v62 = vpop.f32.mrb[14].mxu1  ;;  %v756_v63 = vadd.f32 %v2562_v1, %v680_v4  ;;  %v758_v56 = vadd.f32 %v757_v5, %v684_v7 }
 0x15f   :  { %2944 = vst [vmem:[#allocation25_spill] sm:$0xff] %v2618_v39  ;;  %2945 = vst [vmem:[#allocation26_spill] sm:$0xff] %v2621_v21  ;;  %v2628_v13 = vadd.f32 %v789_v58, %v680_v4  ;;  %v791_v9 = vpop.f32.mrb[15].mxu0  ;;  %v2631_v11 = vadd.f32 %v862_v62, %v2560_v0  ;;  %v864_v17 = vpop.f32.mrb[15].mxu1 }
 0x160   :  { %2946 = vst [vmem:[#allocation27_spill] sm:$0xff] %v2623_v50  ;;  %2947 = vst [vmem:[#allocation28_spill] sm:$0xff] %v2626_v60  ;;  %v2633_v39 = vadd.f32 %v791_v9, %v684_v7  ;;  %v2636_v16 = vadd.f32 %v864_v17, %v2566_v3  ;;  %v829_v50 = vadd.f32 %v2564_v2, %v2560_v0 }
 0x161   :  { %2948 = vst [vmem:[#allocation29_spill] sm:$0xff] %v2628_v13  ;;  %2949 = vst [vmem:[#allocation30_spill] sm:$0xff] %v2631_v11  ;;  %v831_v60 = vadd.f32 %v830_v6, %v2566_v3 }
 0x162   :  { %2950 = vst [vmem:[#allocation31_spill] sm:$0xff] %v2633_v39  ;;  %2951 = vst [vmem:[#allocation32_spill] sm:$0xff] %v2636_v16 }
 0x164   :  { %v975_v58 = vpop.f32.mrb[16].mxu0  ;;  %v1016_v13 = vpop.f32.mrb[16].mxu1 }
 0x165   :  { %v1023_v21 = vadd.f32 %v975_v58, %v756_v63  ;;  %v1025_v8 = vadd.f32 %v1016_v13, %v829_v50  ;;  %v977_v62 = vpop.f32.mrb[17].mxu0  ;;  %v1018_v11 = vpop.f32.mrb[17].mxu1 }
 0x166   :  { %v1024_v61 = vadd.f32 %v977_v62, %v758_v56  ;;  %v1026_v9 = vadd.f32 %v1018_v11, %v831_v60  ;;  %v979_v39 = vpop.f32.mrb[18].mxu0  ;;  %v1020_v59 = vpop.f32.mrb[18].mxu1 }
 0x167   :  { %v1027_v17 = vmul.f32 0.5, %v1023_v21  ;;  %v980_v16 = vpop.f32.mrb[19].mxu0  ;;  %v1021_v57 = vpop.f32.mrb[19].mxu1  ;;  %v1029_v0 = vmul.f32 0.5, %v1025_v8 }
 0x168   :  { %v1028_v1 = vmul.f32 0.5, %v1024_v61  ;;  %v2952_v16 = vmov 0  }
 0x169   :  { %1918 = vtanh.f32 %v1027_v17 }
 0x16a   :  { %1920 = vtanh.f32 %v1028_v1 }
 0x16b   :  { %1922 = vtanh.f32 %v1026_v9 }
 0x16c   :  { %1924 = vtanh.f32 %v1029_v0 }
 0x173   :  { %v1919_v2 = vpop.eup %1918 }
 0x174   :  { %v1033_v3 = vmul.f32 0.5, %v1919_v2  ;;  %v1921_v4 = vpop.eup %1920 }
 0x175   :  { %v1034_v50 = vmul.f32 0.5, %v1921_v4  ;;  %v1923_v6 = vpop.eup %1922 }
 0x176   :  { %v1036_v5 = vadd.f32 0.5, %v1033_v3  ;;  %v1925_v57 = vpop.eup %1924 }
 0x177   :  { %v1037_v7 = vadd.f32 0.5, %v1034_v50  ;;  %v1035_v59 = vmul.f32 0.5, %v1925_v57 }
 0x178   :  { %v1041_v13 = vmul.f32 %v1923_v6, %v1036_v5 }
 0x179   :  { %v1040_v11 = vmul.f32 0.0, %v1037_v7  ;;  %v1038_v61 = vadd.f32 0.5, %v1035_v59 }
 0x17b   :  { %v2642_v39 = vadd.f32 %v1041_v13, %v1040_v11 }
 0x17d   :  { %1926 = vtanh.f32 %v2642_v39 }
 0x187   :  { %v1927_v21 = vpop.eup %1926 }
 0x188   :  { %v1044_v60 = vmul.f32 %v1927_v21, %v1038_v61 }
 0x18a   :  { %v1045_v8 = vpack.c.bf16 %v1044_v60, %v1044_v60 }
 0x18c   :  { %1046 = vst [vmem:[%s2928_s4] sm:$0xf] %v1045_v8  ;;  %1087 = vmatmul.mubr.bf16.vlgmr.msra.gmra.mrb[20].mxu0 %v1045_v8  ;;  %1128 = vmatmul.mubr.bf16.vlgmr.msra.gmra.mrb[20].mxu1 %v1045_v8 }
 0x18d   :  { %1169 = vmatpush1.bf16.msra.mxu0 %v2414_v22  ;;  %1210 = vmatpush1.bf16.msra.mxu1 %v2416_v23 }
 0x18e   :  { %1170 = vmatprep.subr.bf16.mxu0 %v2418_v24  ;;  %1211 = vmatprep.subr.bf16.mxu1 %v2420_v25 }
 0x18f   :  { %1200 = vmatprep.mubr.bf16.mxu0 %v2952_v16  ;;  %1241 = vmatprep.mubr.bf16.mxu1 %v2952_v16 }
 0x191   :  { %1171 = vmatpush1.bf16.msra.mxu0 %v2426_v26  ;;  %1212 = vmatpush1.bf16.msra.mxu1 %v2428_v27 }
 0x192   :  { %1172 = vmatprep.subr.bf16.mxu0 %v2432_v28  ;;  %1213 = vmatprep.subr.bf16.mxu1 %v2434_v29 }
 0x195   :  { %1173 = vmatpush1.bf16.msra.mxu0 %v2443_v31  ;;  %1214 = vmatpush1.bf16.msra.mxu1 %v2445_v32 }
 0x196   :  { %1174 = vmatprep.subr.bf16.mxu0 %v2447_v33  ;;  %1215 = vmatprep.subr.bf16.mxu1 %v2449_v34 }
 0x199   :  { %1175 = vmatpush1.bf16.msra.mxu0 %v2455_v35  ;;  %1216 = vmatpush1.bf16.msra.mxu1 %v2457_v36 }
 0x19a   :  { %1176 = vmatprep.subr.bf16.mxu0 %v2461_v37  ;;  %1217 = vmatprep.subr.bf16.mxu1 %v2463_v38 }
 0x19d   :  { %1177 = vmatpush1.bf16.msra.mxu0 %v2472_v40  ;;  %1218 = vmatpush1.bf16.msra.mxu1 %v2474_v41 }
 0x19e   :  { %1178 = vmatprep.subr.bf16.mxu0 %v2476_v42  ;;  %1219 = vmatprep.subr.bf16.mxu1 %v2478_v43 }
 0x1a1   :  { %1179 = vmatpush1.bf16.msra.mxu0 %v2484_v44  ;;  %1220 = vmatpush1.bf16.msra.mxu1 %v2486_v45 }
 0x1a2   :  { %1180 = vmatprep.subr.bf16.mxu0 %v2490_v46  ;;  %1221 = vmatprep.subr.bf16.mxu1 %v2492_v47 }
 0x1a5   :  { %1181 = vmatpush1.bf16.msra.mxu0 %v2501_v49  ;;  %1222 = vmatpush1.bf16.msra.mxu1 %v2503_v51 }
 0x1a6   :  { %1182 = vmatprep.subr.bf16.mxu0 %v2505_v52  ;;  %1223 = vmatprep.subr.bf16.mxu1 %v2507_v53 }
 0x1a9   :  { %1183 = vmatpush1.bf16.msra.mxu0 %v2513_v54  ;;  %1224 = vmatpush1.bf16.msra.mxu1 %v2515_v55 }
 0x1aa   :  { %1282 = vmatprep.subr.bf16.mxu0 %v2405_v19  ;;  %1323 = vmatprep.subr.bf16.mxu1 %v2407_v20 }
 0x25f   :  { %v1088_v63 = vpop.f32.mrb[20].mxu0  ;;  %v1129_v56 = vpop.f32.mrb[20].mxu1 }
 0x260   :  { %v1136_v58 = vadd.f32 %v1088_v63, %v2568_v10  ;;  %v1138_v62 = vadd.f32 %v1129_v56, %v2571_v12  ;;  %v1090_v9 = vpop.f32.mrb[21].mxu0  ;;  %v1131_v17 = vpop.f32.mrb[21].mxu1 }
 0x261   :  { %v1137_v1 = vadd.f32 %v1090_v9, %v2573_v14  ;;  %v1139_v0 = vadd.f32 %v1131_v17, %v2576_v15  ;;  %v1092_v2 = vpop.f32.mrb[22].mxu0  ;;  %v1133_v3 = vpop.f32.mrb[22].mxu1 }
 0x262   :  { %v1140_v4 = vmul.f32 0.5, %v1136_v58  ;;  %v1093_v5 = vpop.f32.mrb[23].mxu0  ;;  %v1134_v50 = vpop.f32.mrb[23].mxu1  ;;  %v1142_v7 = vmul.f32 0.5, %v1138_v62 }
 0x263   :  { %v1141_v6 = vmul.f32 0.5, %v1137_v1 }
 0x264   :  { %1928 = vtanh.f32 %v1140_v4  ;;  %v2953_v4 = vld [vmem:[#allocation12_spill] sm:$0xff] }
 0x265   :  { %1930 = vtanh.f32 %v1141_v6 }
 0x266   :  { %1932 = vtanh.f32 %v1139_v0 }
 0x267   :  { %1934 = vtanh.f32 %v1142_v7 }
 0x26e   :  { %v1929_v13 = vpop.eup %1928 }
 0x26f   :  { %v1146_v10 = vmul.f32 0.5, %v1929_v13  ;;  %v1931_v11 = vpop.eup %1930 }
 0x270   :  { %v1147_v57 = vmul.f32 0.5, %v1931_v11  ;;  %v1933_v59 = vpop.eup %1932 }
 0x271   :  { %v1149_v12 = vadd.f32 0.5, %v1146_v10  ;;  %v1935_v60 = vpop.eup %1934 }
 0x272   :  { %v1150_v14 = vadd.f32 0.5, %v1147_v57  ;;  %v1148_v8 = vmul.f32 0.5, %v1935_v60 }
 0x273   :  { %v1154_v61 = vmul.f32 %v1933_v59, %v1149_v12 }
 0x274   :  { %v1153_v15 = vmul.f32 %v1150_v14, %v2642_v39  ;;  %v1151_v63 = vadd.f32 0.5, %v1148_v8 }
 0x276   :  { %v2687_v21 = vadd.f32 %v1154_v61, %v1153_v15 }
 0x278   :  { %1936 = vtanh.f32 %v2687_v21 }
 0x282   :  { %v1937_v56 = vpop.eup %1936 }
 0x283   :  { %v1157_v58 = vmul.f32 %v1937_v56, %v1151_v63 }
 0x285   :  { %v1158_v62 = vpack.c.bf16 %v1157_v58, %v1157_v58 }
 0x287   :  { %1903 = vst [vmem:[%s2928_s4 + $0x4] sm:$0xf] %v1158_v62  ;;  %1201 = vmatmul.mubr.bf16.vlgmr.msra.gmra.mrb[24].mxu0 %v1158_v62  ;;  %1242 = vmatmul.mubr.bf16.vlgmr.msra.gmra.mrb[24].mxu1 %v1158_v62 }
 0x288   :  { %1283 = vmatpush1.bf16.msra.mxu0 %v2414_v22  ;;  %1324 = vmatpush1.bf16.msra.mxu1 %v2416_v23 }
 0x289   :  { %1284 = vmatprep.subr.bf16.mxu0 %v2418_v24  ;;  %1325 = vmatprep.subr.bf16.mxu1 %v2420_v25 }
 0x28a   :  { %1314 = vmatprep.mubr.bf16.mxu0 %v2952_v16  ;;  %1355 = vmatprep.mubr.bf16.mxu1 %v2952_v16 }
 0x28c   :  { %1285 = vmatpush1.bf16.msra.mxu0 %v2426_v26  ;;  %1326 = vmatpush1.bf16.msra.mxu1 %v2428_v27 }
 0x28d   :  { %1286 = vmatprep.subr.bf16.mxu0 %v2432_v28  ;;  %1327 = vmatprep.subr.bf16.mxu1 %v2434_v29 }
 0x290   :  { %1287 = vmatpush1.bf16.msra.mxu0 %v2443_v31  ;;  %1328 = vmatpush1.bf16.msra.mxu1 %v2445_v32 }
 0x291   :  { %1288 = vmatprep.subr.bf16.mxu0 %v2447_v33  ;;  %1329 = vmatprep.subr.bf16.mxu1 %v2449_v34 }
 0x294   :  { %1289 = vmatpush1.bf16.msra.mxu0 %v2455_v35  ;;  %1330 = vmatpush1.bf16.msra.mxu1 %v2457_v36 }
 0x295   :  { %1290 = vmatprep.subr.bf16.mxu0 %v2461_v37  ;;  %1331 = vmatprep.subr.bf16.mxu1 %v2463_v38 }
 0x298   :  { %1291 = vmatpush1.bf16.msra.mxu0 %v2472_v40  ;;  %1332 = vmatpush1.bf16.msra.mxu1 %v2474_v41 }
 0x299   :  { %1292 = vmatprep.subr.bf16.mxu0 %v2476_v42  ;;  %1333 = vmatprep.subr.bf16.mxu1 %v2478_v43 }
 0x29c   :  { %1293 = vmatpush1.bf16.msra.mxu0 %v2484_v44  ;;  %1334 = vmatpush1.bf16.msra.mxu1 %v2486_v45 }
 0x29d   :  { %1294 = vmatprep.subr.bf16.mxu0 %v2490_v46  ;;  %1335 = vmatprep.subr.bf16.mxu1 %v2492_v47 }
 0x2a0   :  { %1295 = vmatpush1.bf16.msra.mxu0 %v2501_v49  ;;  %1336 = vmatpush1.bf16.msra.mxu1 %v2503_v51 }
 0x2a1   :  { %1296 = vmatprep.subr.bf16.mxu0 %v2505_v52  ;;  %1337 = vmatprep.subr.bf16.mxu1 %v2507_v53 }
 0x2a4   :  { %1297 = vmatpush1.bf16.msra.mxu0 %v2513_v54  ;;  %1338 = vmatpush1.bf16.msra.mxu1 %v2515_v55 }
 0x2a5   :  { %1396 = vmatprep.subr.bf16.mxu0 %v2405_v19  ;;  %1437 = vmatprep.subr.bf16.mxu1 %v2407_v20 }
 0x35a   :  { %v1202_v39 = vpop.f32.mrb[24].mxu0  ;;  %v1243_v9 = vpop.f32.mrb[24].mxu1 }
 0x35b   :  { %v1250_v17 = vadd.f32 %v1202_v39, %v2578_v18  ;;  %v1252_v1 = vadd.f32 %v1243_v9, %v2581_v30  ;;  %v1204_v0 = vpop.f32.mrb[25].mxu0  ;;  %v1245_v2 = vpop.f32.mrb[25].mxu1 }
 0x35c   :  { %v1251_v3 = vadd.f32 %v1204_v0, %v2583_v48  ;;  %v1253_v5 = vadd.f32 %v1245_v2, %v2953_v4  ;;  %v1206_v50 = vpop.f32.mrb[26].mxu0  ;;  %v1247_v6 = vpop.f32.mrb[26].mxu1  ;;  %v2955_v2 = vld [vmem:[#allocation14_spill] sm:$0xff] }
 0x35d   :  { %v1254_v7 = vmul.f32 0.5, %v1250_v17  ;;  %v1207_v13 = vpop.f32.mrb[27].mxu0  ;;  %v1248_v10 = vpop.f32.mrb[27].mxu1  ;;  %v1256_v12 = vmul.f32 0.5, %v1252_v1  ;;  %v2954_v1 = vld [vmem:[#allocation13_spill] sm:$0xff]  ;;  %v2956_v50 = vld [vmem:[#allocation15_spill] sm:$0xff] }
 0x35e   :  { %v1255_v11 = vmul.f32 0.5, %v1251_v3 }
 0x35f   :  { %1938 = vtanh.f32 %v1254_v7  ;;  %v2957_v7 = vld [vmem:[#allocation16_spill] sm:$0xff] }
 0x360   :  { %1940 = vtanh.f32 %v1255_v11 }
 0x361   :  { %1942 = vtanh.f32 %v1253_v5 }
 0x362   :  { %1944 = vtanh.f32 %v1256_v12 }
 0x369   :  { %v1939_v57 = vpop.eup %1938 }
 0x36a   :  { %v1260_v18 = vmul.f32 0.5, %v1939_v57  ;;  %v1941_v59 = vpop.eup %1940 }
 0x36b   :  { %v1261_v14 = vmul.f32 0.5, %v1941_v59  ;;  %v1943_v61 = vpop.eup %1942 }
 0x36c   :  { %v1263_v30 = vadd.f32 0.5, %v1260_v18  ;;  %v1945_v63 = vpop.eup %1944 }
 0x36d   :  { %v1264_v48 = vadd.f32 0.5, %v1261_v14  ;;  %v1262_v56 = vmul.f32 0.5, %v1945_v63 }
 0x36e   :  { %v1268_v15 = vmul.f32 %v1943_v61, %v1263_v30 }
 0x36f   :  { %v1267_v60 = vmul.f32 %v1264_v48, %v2687_v21  ;;  %v1265_v58 = vadd.f32 0.5, %v1262_v56 }
 0x371   :  { %v2732_v8 = vadd.f32 %v1268_v15, %v1267_v60 }
 0x373   :  { %1946 = vtanh.f32 %v2732_v8 }
 0x37d   :  { %v1947_v62 = vpop.eup %1946 }
 0x37e   :  { %v1271_v39 = vmul.f32 %v1947_v62, %v1265_v58 }
 0x380   :  { %v1272_v9 = vpack.c.bf16 %v1271_v39, %v1271_v39 }
 0x382   :  { %1904 = vst [vmem:[%s2928_s4 + $0x8] sm:$0xf] %v1272_v9  ;;  %1315 = vmatmul.mubr.bf16.vlgmr.msra.gmra.mrb[28].mxu0 %v1272_v9  ;;  %1356 = vmatmul.mubr.bf16.vlgmr.msra.gmra.mrb[28].mxu1 %v1272_v9 }
 0x383   :  { %1397 = vmatpush1.bf16.msra.mxu0 %v2414_v22  ;;  %1438 = vmatpush1.bf16.msra.mxu1 %v2416_v23 }
 0x384   :  { %1398 = vmatprep.subr.bf16.mxu0 %v2418_v24  ;;  %1439 = vmatprep.subr.bf16.mxu1 %v2420_v25 }
 0x385   :  { %1428 = vmatprep.mubr.bf16.mxu0 %v2952_v16  ;;  %1469 = vmatprep.mubr.bf16.mxu1 %v2952_v16 }
 0x387   :  { %1399 = vmatpush1.bf16.msra.mxu0 %v2426_v26  ;;  %1440 = vmatpush1.bf16.msra.mxu1 %v2428_v27 }
 0x388   :  { %1400 = vmatprep.subr.bf16.mxu0 %v2432_v28  ;;  %1441 = vmatprep.subr.bf16.mxu1 %v2434_v29 }
 0x38b   :  { %1401 = vmatpush1.bf16.msra.mxu0 %v2443_v31  ;;  %1442 = vmatpush1.bf16.msra.mxu1 %v2445_v32 }
 0x38c   :  { %1402 = vmatprep.subr.bf16.mxu0 %v2447_v33  ;;  %1443 = vmatprep.subr.bf16.mxu1 %v2449_v34 }
 0x38f   :  { %1403 = vmatpush1.bf16.msra.mxu0 %v2455_v35  ;;  %1444 = vmatpush1.bf16.msra.mxu1 %v2457_v36 }
 0x390   :  { %1404 = vmatprep.subr.bf16.mxu0 %v2461_v37  ;;  %1445 = vmatprep.subr.bf16.mxu1 %v2463_v38 }
 0x393   :  { %1405 = vmatpush1.bf16.msra.mxu0 %v2472_v40  ;;  %1446 = vmatpush1.bf16.msra.mxu1 %v2474_v41 }
 0x394   :  { %1406 = vmatprep.subr.bf16.mxu0 %v2476_v42  ;;  %1447 = vmatprep.subr.bf16.mxu1 %v2478_v43 }
 0x397   :  { %1407 = vmatpush1.bf16.msra.mxu0 %v2484_v44  ;;  %1448 = vmatpush1.bf16.msra.mxu1 %v2486_v45 }
 0x398   :  { %1408 = vmatprep.subr.bf16.mxu0 %v2490_v46  ;;  %1449 = vmatprep.subr.bf16.mxu1 %v2492_v47 }
 0x39b   :  { %1409 = vmatpush1.bf16.msra.mxu0 %v2501_v49  ;;  %1450 = vmatpush1.bf16.msra.mxu1 %v2503_v51 }
 0x39c   :  { %1410 = vmatprep.subr.bf16.mxu0 %v2505_v52  ;;  %1451 = vmatprep.subr.bf16.mxu1 %v2507_v53 }
 0x39f   :  { %1411 = vmatpush1.bf16.msra.mxu0 %v2513_v54  ;;  %1452 = vmatpush1.bf16.msra.mxu1 %v2515_v55 }
 0x3a0   :  { %1510 = vmatprep.subr.bf16.mxu0 %v2405_v19  ;;  %1551 = vmatprep.subr.bf16.mxu1 %v2407_v20 }
 0x455   :  { %v1316_v21 = vpop.f32.mrb[28].mxu0  ;;  %v1357_v17 = vpop.f32.mrb[28].mxu1 }
 0x456   :  { %v1364_v0 = vadd.f32 %v1316_v21, %v2954_v1  ;;  %v1366_v3 = vadd.f32 %v1357_v17, %v2955_v2  ;;  %v1318_v4 = vpop.f32.mrb[29].mxu0  ;;  %v1359_v5 = vpop.f32.mrb[29].mxu1 }
 0x457   :  { %v1365_v6 = vadd.f32 %v1318_v4, %v2956_v50  ;;  %v1367_v13 = vadd.f32 %v1359_v5, %v2957_v7  ;;  %v1320_v10 = vpop.f32.mrb[30].mxu0  ;;  %v1361_v11 = vpop.f32.mrb[30].mxu1 }
 0x458   :  { %v1368_v12 = vmul.f32 0.5, %v1364_v0  ;;  %v1321_v57 = vpop.f32.mrb[31].mxu0  ;;  %v1362_v18 = vpop.f32.mrb[31].mxu1  ;;  %v1370_v30 = vmul.f32 0.5, %v1366_v3 }
 0x459   :  { %v1369_v59 = vmul.f32 0.5, %v1365_v6 }
 0x45a   :  { %1948 = vtanh.f32 %v1368_v12 }
 0x45b   :  { %1950 = vtanh.f32 %v1369_v59 }
 0x45c   :  { %1952 = vtanh.f32 %v1367_v13 }
 0x45d   :  { %1954 = vtanh.f32 %v1370_v30 }
 0x464   :  { %v1949_v14 = vpop.eup %1948 }
 0x465   :  { %v1374_v61 = vmul.f32 0.5, %v1949_v14  ;;  %v1951_v48 = vpop.eup %1950 }
 0x466   :  { %v1375_v60 = vmul.f32 0.5, %v1951_v48  ;;  %v1953_v63 = vpop.eup %1952 }
 0x467   :  { %v1377_v15 = vadd.f32 0.5, %v1374_v61  ;;  %v1955_v9 = vpop.eup %1954 }
 0x468   :  { %v1378_v56 = vadd.f32 0.5, %v1375_v60  ;;  %v1376_v21 = vmul.f32 0.5, %v1955_v9  ;;  %v2842_v9 = vld [vmem:[#allocation3 + $0x20] sm:$0xff] }
 0x469   :  { %v1382_v58 = vmul.f32 %v1953_v63, %v1377_v15 }
 0x46a   :  { %v1381_v62 = vmul.f32 %v1378_v56, %v2732_v8  ;;  %v1379_v17 = vadd.f32 0.5, %v1376_v21  ;;  %v2828_v56 = vld [vmem:[#allocation3] sm:$0xff]  ;;  %v2845_v21 = vld [vmem:[#allocation3 + $0x30] sm:$0xff] }
 0x46c   :  { %v2777_v39 = vadd.f32 %v1382_v58, %v1381_v62  ;;  %v2831_v58 = vld [vmem:[#allocation3 + $0x10] sm:$0xff]  ;;  %v2834_v62 = vld [vmem:[#allocation3 + $0x28] sm:$0xff] }
 0x46e   :  { %1956 = vtanh.f32 %v2777_v39 }
 0x478   :  { %v1957_v1 = vpop.eup %1956 }
 0x479   :  { %v1385_v0 = vmul.f32 %v1957_v1, %v1379_v17  ;;  %v2848_v17 = vld [vmem:[#allocation3 + $0x48] sm:$0xff]  ;;  %v2851_v1 = vld [vmem:[#allocation3 + $0x58] sm:$0xff] }
 0x47b   :  { %v1386_v2 = vpack.c.bf16 %v1385_v0, %v1385_v0  ;;  %v2854_v0 = vld [vmem:[#allocation3 + $0x40] sm:$0xff] }
 0x47d   :  { %1905 = vst [vmem:[%s2928_s4 + $0xc] sm:$0xf] %v1386_v2  ;;  %1429 = vmatmul.mubr.bf16.vlgmr.msra.gmra.mrb[32].mxu0 %v1386_v2  ;;  %1470 = vmatmul.mubr.bf16.vlgmr.msra.gmra.mrb[32].mxu1 %v1386_v2  ;;  %v2857_v2 = vld [vmem:[#allocation3 + $0x50] sm:$0xff] }
 0x47e   :  { %1511 = vmatpush1.bf16.msra.mxu0 %v2414_v22  ;;  %1552 = vmatpush1.bf16.msra.mxu1 %v2416_v23 }
 0x47f   :  { %1512 = vmatprep.subr.bf16.mxu0 %v2418_v24  ;;  %1553 = vmatprep.subr.bf16.mxu1 %v2420_v25  ;;  %v2958_v24 = vld [vmem:[#allocation17_spill] sm:$0xff] }
 0x480   :  { %1542 = vmatprep.mubr.bf16.mxu0 %v2952_v16  ;;  %1583 = vmatprep.mubr.bf16.mxu1 %v2952_v16 }
 0x482   :  { %1513 = vmatpush1.bf16.msra.mxu0 %v2426_v26  ;;  %1554 = vmatpush1.bf16.msra.mxu1 %v2428_v27  ;;  %v2959_v26 = vld [vmem:[#allocation18_spill] sm:$0xff] }
 0x483   :  { %1514 = vmatprep.subr.bf16.mxu0 %v2432_v28  ;;  %1555 = vmatprep.subr.bf16.mxu1 %v2434_v29 }
 0x486   :  { %1515 = vmatpush1.bf16.msra.mxu0 %v2443_v31  ;;  %1556 = vmatpush1.bf16.msra.mxu1 %v2445_v32  ;;  %v2960_v31 = vld [vmem:[#allocation19_spill] sm:$0xff] }
 0x487   :  { %1516 = vmatprep.subr.bf16.mxu0 %v2447_v33  ;;  %1557 = vmatprep.subr.bf16.mxu1 %v2449_v34  ;;  %v2961_v33 = vld [vmem:[#allocation20_spill] sm:$0xff] }
 0x48a   :  { %1517 = vmatpush1.bf16.msra.mxu0 %v2455_v35  ;;  %1558 = vmatpush1.bf16.msra.mxu1 %v2457_v36 }
 0x48b   :  { %1518 = vmatprep.subr.bf16.mxu0 %v2461_v37  ;;  %1559 = vmatprep.subr.bf16.mxu1 %v2463_v38 }
 0x48e   :  { %1519 = vmatpush1.bf16.msra.mxu0 %v2472_v40  ;;  %1560 = vmatpush1.bf16.msra.mxu1 %v2474_v41 }
 0x48f   :  { %1520 = vmatprep.subr.bf16.mxu0 %v2476_v42  ;;  %1561 = vmatprep.subr.bf16.mxu1 %v2478_v43 }
 0x492   :  { %1521 = vmatpush1.bf16.msra.mxu0 %v2484_v44  ;;  %1562 = vmatpush1.bf16.msra.mxu1 %v2486_v45 }
 0x493   :  { %1522 = vmatprep.subr.bf16.mxu0 %v2490_v46  ;;  %1563 = vmatprep.subr.bf16.mxu1 %v2492_v47 }
 0x496   :  { %1523 = vmatpush1.bf16.msra.mxu0 %v2501_v49  ;;  %1564 = vmatpush1.bf16.msra.mxu1 %v2503_v51 }
 0x497   :  { %1524 = vmatprep.subr.bf16.mxu0 %v2505_v52  ;;  %1565 = vmatprep.subr.bf16.mxu1 %v2507_v53 }
 0x49a   :  { %1525 = vmatpush1.bf16.msra.mxu0 %v2513_v54  ;;  %1566 = vmatpush1.bf16.msra.mxu1 %v2515_v55 }
 0x49b   :  { %1624 = vmatprep.subr.bf16.mxu0 %v2405_v19  ;;  %1665 = vmatprep.subr.bf16.mxu1 %v2407_v20 }
 0x550   :  { %v1430_v22 = vpop.f32.mrb[32].mxu0  ;;  %v1471_v23 = vpop.f32.mrb[32].mxu1 }
 0x551   :  { %v1478_v25 = vadd.f32 %v1430_v22, %v2958_v24  ;;  %v1480_v27 = vadd.f32 %v1471_v23, %v2959_v26  ;;  %v1432_v28 = vpop.f32.mrb[33].mxu0  ;;  %v1473_v29 = vpop.f32.mrb[33].mxu1  ;;  %v2860_v22 = vld [vmem:[#allocation3 + $0x68] sm:$0xff]  ;;  %v2863_v23 = vld [vmem:[#allocation3 + $0x78] sm:$0xff] }
 0x552   :  { %v1479_v32 = vadd.f32 %v1432_v28, %v2960_v31  ;;  %v1481_v34 = vadd.f32 %v1473_v29, %v2961_v33  ;;  %v1434_v8 = vpop.f32.mrb[34].mxu0  ;;  %v1475_v3 = vpop.f32.mrb[34].mxu1 }
 0x553   :  { %v1482_v4 = vmul.f32 0.5, %v1478_v25  ;;  %v1435_v5 = vpop.f32.mrb[35].mxu0  ;;  %v1476_v50 = vpop.f32.mrb[35].mxu1  ;;  %v1484_v20 = vmul.f32 0.5, %v1480_v27 }
 0x554   :  { %v1483_v19 = vmul.f32 0.5, %v1479_v32 }
 0x555   :  { %1958 = vtanh.f32 %v1482_v4 }
 0x556   :  { %1960 = vtanh.f32 %v1483_v19 }
 0x557   :  { %1962 = vtanh.f32 %v1481_v34 }
 0x558   :  { %1964 = vtanh.f32 %v1484_v20 }
 0x55f   :  { %v1959_v6 = vpop.eup %1958 }
 0x560   :  { %v1488_v7 = vmul.f32 0.5, %v1959_v6  ;;  %v1961_v13 = vpop.eup %1960 }
 0x561   :  { %v1489_v11 = vmul.f32 0.5, %v1961_v13  ;;  %v1963_v12 = vpop.eup %1962  ;;  %v2012_v13 = vld [vmem:[#allocation3 + $0x60] sm:$0xff] }
 0x562   :  { %v1491_v10 = vadd.f32 0.5, %v1488_v7  ;;  %v1965_v14 = vpop.eup %1964 }
 0x563   :  { %v1492_v57 = vadd.f32 0.5, %v1489_v11  ;;  %v1490_v61 = vmul.f32 0.5, %v1965_v14  ;;  %v2015_v11 = vld [vmem:[#allocation3 + $0x98] sm:$0xff]  ;;  %v2021_v14 = vld [vmem:[#allocation3 + $0xb0] sm:$0xff] }
 0x564   :  { %v1496_v18 = vmul.f32 %v1963_v12, %v1491_v10  ;;  %v2013_v10 = vld [vmem:[#allocation3 + $0x70] sm:$0xff]  ;;  %v2016_v12 = vld [vmem:[#allocation3 + $0x80] sm:$0xff] }
 0x565   :  { %v1495_v59 = vmul.f32 %v1492_v57, %v2777_v39  ;;  %v1493_v48 = vadd.f32 0.5, %v1490_v61  ;;  %v2837_v39 = vld [vmem:[#allocation3 + $0x38] sm:$0xff]  ;;  %v2017_v57 = vld [vmem:[#allocation3 + $0x90] sm:$0xff]  ;;  %v2022_v61 = vld [vmem:[#allocation3 + $0xc8] sm:$0xff] }
 0x567   :  { %v2822_v30 = vadd.f32 %v1496_v18, %v1495_v59  ;;  %v2018_v18 = vld [vmem:[#allocation3 + $0xa8] sm:$0xff]  ;;  %v2019_v59 = vld [vmem:[#allocation3 + $0xb8] sm:$0xff] }
 0x569   :  { %1966 = vtanh.f32 %v2822_v30 }
 0x573   :  { %v1967_v15 = vpop.eup %1966 }
 0x574   :  { %v1499_v60 = vmul.f32 %v1967_v15, %v1493_v48  ;;  %v2023_v48 = vld [vmem:[#allocation3 + $0xd8] sm:$0xff]  ;;  %v2024_v15 = vld [vmem:[#allocation3 + $0xc0] sm:$0xff] }
 0x576   :  { %v1500_v63 = vpack.c.bf16 %v1499_v60, %v1499_v60  ;;  %v2025_v60 = vld [vmem:[#allocation3 + $0xd0] sm:$0xff] }
 0x578   :  { %1906 = vst [vmem:[%s2928_s4 + $0x10] sm:$0xf] %v1500_v63  ;;  %1543 = vmatmul.mubr.bf16.vlgmr.msra.gmra.mrb[36].mxu0 %v1500_v63  ;;  %1584 = vmatmul.mubr.bf16.vlgmr.msra.gmra.mrb[36].mxu1 %v1500_v63  ;;  %v2026_v63 = vld [vmem:[#allocation3 + $0xe8] sm:$0xff] }
 0x579   :  { %1625 = vmatpush1.bf16.msra.mxu0 %v2828_v56  ;;  %1666 = vmatpush1.bf16.msra.mxu1 %v2831_v58 }
 0x57a   :  { %1626 = vmatprep.subr.bf16.mxu0 %v2834_v62  ;;  %1667 = vmatprep.subr.bf16.mxu1 %v2837_v39 }
 0x57b   :  { %1656 = vmatprep.mubr.bf16.mxu0 %v2952_v16  ;;  %1697 = vmatprep.mubr.bf16.mxu1 %v2952_v16 }
 0x57d   :  { %1627 = vmatpush1.bf16.msra.mxu0 %v2842_v9  ;;  %1668 = vmatpush1.bf16.msra.mxu1 %v2845_v21 }
 0x57e   :  { %1628 = vmatprep.subr.bf16.mxu0 %v2848_v17  ;;  %1669 = vmatprep.subr.bf16.mxu1 %v2851_v1 }
 0x581   :  { %1629 = vmatpush1.bf16.msra.mxu0 %v2854_v0  ;;  %1670 = vmatpush1.bf16.msra.mxu1 %v2857_v2 }
 0x582   :  { %1630 = vmatprep.subr.bf16.mxu0 %v2860_v22  ;;  %1671 = vmatprep.subr.bf16.mxu1 %v2863_v23 }
 0x585   :  { %1631 = vmatpush1.bf16.msra.mxu0 %v2455_v35  ;;  %1672 = vmatpush1.bf16.msra.mxu1 %v2457_v36  ;;  %v2010_v35 = vld [vmem:[#allocation3 + $0x8] sm:$0xff]  ;;  %v2011_v36 = vld [vmem:[#allocation3 + $0x18] sm:$0xff] }
 0x586   :  { %1632 = vmatprep.subr.bf16.mxu0 %v2461_v37  ;;  %1673 = vmatprep.subr.bf16.mxu1 %v2463_v38 }
 0x589   :  { %1633 = vmatpush1.bf16.msra.mxu0 %v2472_v40  ;;  %1674 = vmatpush1.bf16.msra.mxu1 %v2474_v41  ;;  %v2962_v40 = vld [vmem:[#allocation21_spill] sm:$0xff] }
 0x58a   :  { %1634 = vmatprep.subr.bf16.mxu0 %v2476_v42  ;;  %1675 = vmatprep.subr.bf16.mxu1 %v2478_v43  ;;  %v2963_v42 = vld [vmem:[#allocation22_spill] sm:$0xff] }
 0x58d   :  { %1635 = vmatpush1.bf16.msra.mxu0 %v2484_v44  ;;  %1676 = vmatpush1.bf16.msra.mxu1 %v2486_v45 }
 0x58e   :  { %1636 = vmatprep.subr.bf16.mxu0 %v2490_v46  ;;  %1677 = vmatprep.subr.bf16.mxu1 %v2492_v47  ;;  %v2964_v46 = vld [vmem:[#allocation23_spill] sm:$0xff] }
 0x591   :  { %1637 = vmatpush1.bf16.msra.mxu0 %v2501_v49  ;;  %1678 = vmatpush1.bf16.msra.mxu1 %v2503_v51  ;;  %v2965_v49 = vld [vmem:[#allocation24_spill] sm:$0xff] }
 0x592   :  { %1638 = vmatprep.subr.bf16.mxu0 %v2505_v52  ;;  %1679 = vmatprep.subr.bf16.mxu1 %v2507_v53 }
 0x595   :  { %1639 = vmatpush1.bf16.msra.mxu0 %v2513_v54  ;;  %1680 = vmatpush1.bf16.msra.mxu1 %v2515_v55 }
 0x596   :  { %1738 = vmatprep.subr.bf16.mxu0 %v2010_v35  ;;  %1779 = vmatprep.subr.bf16.mxu1 %v2011_v36  ;;  %v2969_v36 = vld [vmem:[#allocation28_spill] sm:$0xff] }
 0x64b   :  { %v1544_v37 = vpop.f32.mrb[36].mxu0  ;;  %v1585_v38 = vpop.f32.mrb[36].mxu1 }
 0x64c   :  { %v1592_v41 = vadd.f32 %v1544_v37, %v2962_v40  ;;  %v1594_v43 = vadd.f32 %v1585_v38, %v2963_v42  ;;  %v1546_v44 = vpop.f32.mrb[37].mxu0  ;;  %v1587_v45 = vpop.f32.mrb[37].mxu1 }
 0x64d   :  { %v1593_v47 = vadd.f32 %v1546_v44, %v2964_v46  ;;  %v1595_v51 = vadd.f32 %v1587_v45, %v2965_v49  ;;  %v1548_v52 = vpop.f32.mrb[38].mxu0  ;;  %v1589_v53 = vpop.f32.mrb[38].mxu1 }
 0x64e   :  { %v1596_v54 = vmul.f32 0.5, %v1592_v41  ;;  %v1549_v55 = vpop.f32.mrb[39].mxu0  ;;  %v1590_v24 = vpop.f32.mrb[39].mxu1  ;;  %v1598_v26 = vmul.f32 0.5, %v1594_v43 }
 0x64f   :  { %v1597_v25 = vmul.f32 0.5, %v1593_v47 }
 0x650   :  { %1968 = vtanh.f32 %v1596_v54 }
 0x651   :  { %1970 = vtanh.f32 %v1597_v25 }
 0x652   :  { %1972 = vtanh.f32 %v1595_v51 }
 0x653   :  { %1974 = vtanh.f32 %v1598_v26 }
 0x65a   :  { %v1969_v27 = vpop.eup %1968 }
 0x65b   :  { %v1602_v28 = vmul.f32 0.5, %v1969_v27  ;;  %v1971_v29 = vpop.eup %1970 }
 0x65c   :  { %v1603_v32 = vmul.f32 0.5, %v1971_v29  ;;  %v1973_v33 = vpop.eup %1972 }
 0x65d   :  { %v1605_v31 = vadd.f32 0.5, %v1602_v28  ;;  %v1975_v5 = vpop.eup %1974 }
 0x65e   :  { %v1606_v34 = vadd.f32 0.5, %v1603_v32  ;;  %v1604_v50 = vmul.f32 0.5, %v1975_v5  ;;  %v2971_v5 = vld [vmem:[#allocation30_spill] sm:$0xff] }
 0x65f   :  { %v1610_v8 = vmul.f32 %v1973_v33, %v1605_v31 }
 0x660   :  { %v1609_v3 = vmul.f32 %v1606_v34, %v2822_v30  ;;  %v1607_v19 = vadd.f32 0.5, %v1604_v50  ;;  %v2020_v30 = vld [vmem:[#allocation3 + $0xa0] sm:$0xff] }
 0x662   :  { %v2889_v4 = vadd.f32 %v1610_v8, %v1609_v3  ;;  %v2970_v8 = vld [vmem:[#allocation29_spill] sm:$0xff] }
 0x664   :  { %1976 = vtanh.f32 %v2889_v4 }
 0x66e   :  { %v1977_v20 = vpop.eup %1976 }
 0x66f   :  { %v1613_v6 = vmul.f32 %v1977_v20, %v1607_v19  ;;  %v2972_v20 = vld [vmem:[#allocation31_spill] sm:$0xff] }
 0x671   :  { %v1614_v7 = vpack.c.bf16 %v1613_v6, %v1613_v6 }
 0x673   :  { %1907 = vst [vmem:[%s2928_s4 + $0x14] sm:$0xf] %v1614_v7  ;;  %1657 = vmatmul.mubr.bf16.vlgmr.msra.gmra.mrb[40].mxu0 %v1614_v7  ;;  %1698 = vmatmul.mubr.bf16.vlgmr.msra.gmra.mrb[40].mxu1 %v1614_v7  ;;  %v2973_v7 = vld [vmem:[#allocation32_spill] sm:$0xff] }
 0x674   :  { %1739 = vmatpush1.bf16.msra.mxu0 %v2828_v56  ;;  %1780 = vmatpush1.bf16.msra.mxu1 %v2831_v58  ;;  %v2027_v56 = vld [vmem:[#allocation3 + $0xf8] sm:$0xff]  ;;  %v2028_v58 = vld [vmem:[#allocation3 + $0xe0] sm:$0xff] }
 0x675   :  { %1740 = vmatprep.subr.bf16.mxu0 %v2834_v62  ;;  %1781 = vmatprep.subr.bf16.mxu1 %v2837_v39  ;;  %v2029_v62 = vld [vmem:[#allocation3 + $0xf0] sm:$0xff] }
 0x676   :  { %1770 = vmatprep.mubr.bf16.mxu0 %v2952_v16  ;;  %1811 = vmatprep.mubr.bf16.mxu1 %v2952_v16  ;;  %v2014_v16 = vld [vmem:[#allocation3 + $0x88] sm:$0xff] }
 0x678   :  { %1741 = vmatpush1.bf16.msra.mxu0 %v2842_v9  ;;  %1782 = vmatpush1.bf16.msra.mxu1 %v2845_v21  ;;  %v2966_v21 = vld [vmem:[#allocation25_spill] sm:$0xff] }
 0x679   :  { %1742 = vmatprep.subr.bf16.mxu0 %v2848_v17  ;;  %1783 = vmatprep.subr.bf16.mxu1 %v2851_v1  ;;  %v2967_v1 = vld [vmem:[#allocation26_spill] sm:$0xff] }
 0x67c   :  { %1743 = vmatpush1.bf16.msra.mxu0 %v2854_v0  ;;  %1784 = vmatpush1.bf16.msra.mxu1 %v2857_v2 }
 0x67d   :  { %1744 = vmatprep.subr.bf16.mxu0 %v2860_v22  ;;  %1785 = vmatprep.subr.bf16.mxu1 %v2863_v23  ;;  %v2968_v23 = vld [vmem:[#allocation27_spill] sm:$0xff] }
 0x680   :  { %1745 = vmatpush1.bf16.msra.mxu0 %v2012_v13  ;;  %1786 = vmatpush1.bf16.msra.mxu1 %v2013_v10 }
 0x681   :  { %1746 = vmatprep.subr.bf16.mxu0 %v2014_v16  ;;  %1787 = vmatprep.subr.bf16.mxu1 %v2015_v11 }
 0x684   :  { %1747 = vmatpush1.bf16.msra.mxu0 %v2016_v12  ;;  %1788 = vmatpush1.bf16.msra.mxu1 %v2017_v57 }
 0x685   :  { %1748 = vmatprep.subr.bf16.mxu0 %v2018_v18  ;;  %1789 = vmatprep.subr.bf16.mxu1 %v2019_v59 }
 0x688   :  { %1749 = vmatpush1.bf16.msra.mxu0 %v2020_v30  ;;  %1790 = vmatpush1.bf16.msra.mxu1 %v2021_v14 }
 0x689   :  { %1750 = vmatprep.subr.bf16.mxu0 %v2022_v61  ;;  %1791 = vmatprep.subr.bf16.mxu1 %v2023_v48 }
 0x68c   :  { %1751 = vmatpush1.bf16.msra.mxu0 %v2024_v15  ;;  %1792 = vmatpush1.bf16.msra.mxu1 %v2025_v60 }
 0x68d   :  { %1752 = vmatprep.subr.bf16.mxu0 %v2026_v63  ;;  %1793 = vmatprep.subr.bf16.mxu1 %v2027_v56 }
 0x690   :  { %1753 = vmatpush1.bf16.msra.mxu0 %v2028_v58  ;;  %1794 = vmatpush1.bf16.msra.mxu1 %v2029_v62 }
 0x746   :  { %v1658_v39 = vpop.f32.mrb[40].mxu0  ;;  %v1699_v9 = vpop.f32.mrb[40].mxu1 }
 0x747   :  { %v1706_v17 = vadd.f32 %v1658_v39, %v2966_v21  ;;  %v1708_v0 = vadd.f32 %v1699_v9, %v2967_v1  ;;  %v1660_v2 = vpop.f32.mrb[41].mxu0  ;;  %v1701_v22 = vpop.f32.mrb[41].mxu1 }
 0x748   :  { %v1707_v35 = vadd.f32 %v1660_v2, %v2968_v23  ;;  %v1709_v37 = vadd.f32 %v1701_v22, %v2969_v36  ;;  %v1662_v38 = vpop.f32.mrb[42].mxu0  ;;  %v1703_v40 = vpop.f32.mrb[42].mxu1 }
 0x749   :  { %v1710_v41 = vmul.f32 0.5, %v1706_v17  ;;  %v1663_v42 = vpop.f32.mrb[43].mxu0  ;;  %v1704_v43 = vpop.f32.mrb[43].mxu1  ;;  %v1712_v45 = vmul.f32 0.5, %v1708_v0 }
 0x74a   :  { %v1711_v44 = vmul.f32 0.5, %v1707_v35 }
 0x74b   :  { %1978 = vtanh.f32 %v1710_v41 }
 0x74c   :  { %1980 = vtanh.f32 %v1711_v44 }
 0x74d   :  { %1982 = vtanh.f32 %v1709_v37 }
 0x74e   :  { %1984 = vtanh.f32 %v1712_v45 }
 0x755   :  { %v1979_v46 = vpop.eup %1978 }
 0x756   :  { %v1716_v47 = vmul.f32 0.5, %v1979_v46  ;;  %v1981_v49 = vpop.eup %1980 }
 0x757   :  { %v1717_v52 = vmul.f32 0.5, %v1981_v49  ;;  %v1983_v53 = vpop.eup %1982 }
 0x758   :  { %v1719_v51 = vadd.f32 0.5, %v1716_v47  ;;  %v1985_v26 = vpop.eup %1984 }
 0x759   :  { %v1720_v54 = vadd.f32 0.5, %v1717_v52  ;;  %v1718_v27 = vmul.f32 0.5, %v1985_v26 }
 0x75a   :  { %v1724_v55 = vmul.f32 %v1983_v53, %v1719_v51 }
 0x75b   :  { %v1723_v24 = vmul.f32 %v1720_v54, %v2889_v4  ;;  %v1721_v28 = vadd.f32 0.5, %v1718_v27 }
 0x75d   :  { %v1725_v25 = vadd.f32 %v1724_v55, %v1723_v24 }
 0x75f   :  { %1986 = vtanh.f32 %v1725_v25 }
 0x769   :  { %v1987_v29 = vpop.eup %1986 }
 0x76a   :  { %v1727_v31 = vmul.f32 %v1987_v29, %v1721_v28 }
 0x76c   :  { %v1728_v32 = vpack.c.bf16 %v1727_v31, %v1727_v31 }
 0x76e   :  { %1908 = vst [vmem:[%s2928_s4 + $0x18] sm:$0xf] %v1728_v32  ;;  %1771 = vmatmul.mubr.bf16.vlgmr.msra.gmra.mrb[44].mxu0 %v1728_v32  ;;  %1812 = vmatmul.mubr.bf16.vlgmr.msra.gmra.mrb[44].mxu1 %v1728_v32 }
 0x841   :  { %v1772_v33 = vpop.f32.mrb[44].mxu0  ;;  %v1813_v34 = vpop.f32.mrb[44].mxu1 }
 0x842   :  { %v1820_v3 = vadd.f32 %v1772_v33, %v2970_v8  ;;  %v1822_v4 = vadd.f32 %v1813_v34, %v2971_v5  ;;  %v1774_v50 = vpop.f32.mrb[45].mxu0  ;;  %v1815_v19 = vpop.f32.mrb[45].mxu1 }
 0x843   :  { %v1821_v6 = vadd.f32 %v1774_v50, %v2972_v20  ;;  %v1823_v13 = vadd.f32 %v1815_v19, %v2973_v7  ;;  %v1776_v10 = vpop.f32.mrb[46].mxu0  ;;  %v1817_v16 = vpop.f32.mrb[46].mxu1 }
 0x844   :  { %v1824_v11 = vmul.f32 0.5, %v1820_v3  ;;  %v1777_v12 = vpop.f32.mrb[47].mxu0  ;;  %v1818_v57 = vpop.f32.mrb[47].mxu1  ;;  %v1826_v59 = vmul.f32 0.5, %v1822_v4 }
 0x845   :  { %v1825_v18 = vmul.f32 0.5, %v1821_v6 }
 0x846   :  { %1988 = vtanh.f32 %v1824_v11 }
 0x847   :  { %1990 = vtanh.f32 %v1825_v18 }
 0x848   :  { %1992 = vtanh.f32 %v1823_v13 }
 0x849   :  { %1994 = vtanh.f32 %v1826_v59 }
 0x850   :  { %v1989_v30 = vpop.eup %1988 }
 0x851   :  { %v1830_v14 = vmul.f32 0.5, %v1989_v30  ;;  %v1991_v61 = vpop.eup %1990 }
 0x852   :  { %v1831_v15 = vmul.f32 0.5, %v1991_v61  ;;  %v1993_v60 = vpop.eup %1992 }
 0x853   :  { %v1833_v48 = vadd.f32 0.5, %v1830_v14  ;;  %v1995_v39 = vpop.eup %1994 }
 0x854   :  { %v1834_v63 = vadd.f32 0.5, %v1831_v15  ;;  %v1832_v9 = vmul.f32 0.5, %v1995_v39 }
 0x855   :  { %v1838_v56 = vmul.f32 %v1993_v60, %v1833_v48 }
 0x856   :  { %v1837_v58 = vmul.f32 %v1834_v63, %v1725_v25  ;;  %v1835_v21 = vadd.f32 0.5, %v1832_v9 }
 0x858   :  { %v1839_v62 = vadd.f32 %v1838_v56, %v1837_v58 }
 0x85a   :  { %1996 = vtanh.f32 %v1839_v62 }
 0x864   :  { %v1997_v17 = vpop.eup %1996 }
 0x865   :  { %v1841_v1 = vmul.f32 %v1997_v17, %v1835_v21 }
 0x867   :  { %v1842_v0 = vpack.c.bf16 %v1841_v1, %v1841_v1 }
 0x869   :  { %1909 = vst [vmem:[%s2928_s4 + $0x1c] sm:$0xf] %v1842_v0 }
 0x86a   :  { %1851 = vsyncmov [#allocation7] }
 0x86d   :  { %s1852_s27 = vpop.sfrf %1851 }
 0x86e   :  { %p1910_p0 = scmp.ne.s32.totalorder %s1852_s27, 0 }
 0x870   :  { %1856 = shalt.err (%p1910_p0)  }
 0x871   :  { %1858 = vsyncmov [#allocation7 + $0x1] }
 0x874   :  { %s1859_s28 = vpop.sfrf %1858 }
 0x875   :  { %p1911_p1 = scmp.ne.s32.totalorder %s1859_s28, 0 }
 0x877   :  { %1863 = shalt.err (%p1911_p1)  }

// kernel: lstm_module_forward.2
= control target key start
LH: loop header
LB: loop body
LE: loop exit
PB: predicated region body
PF: predicated region fallthrough
CT: control target
= control target key end

     0   :  { %s22_s15 = sld [smem:[#allocation0]]   ;;  %s1483_s16 = smov [#allocation2]   ;;  %s2049_s0 = inlined_call_operand.vmem [shape: bf16[64,128], index: 0, kind: input, shape index: {}]   ;;  %s2050_s1 = inlined_call_operand.hbm [shape: bf16[128,512], index: 1, kind: input, shape index: {}]   ;;  %s2051_s2 = inlined_call_operand.hbm [shape: bf16[128,512], index: 2, kind: input, shape index: {}]   ;;  %s2052_s3 = inlined_call_operand.vmem [shape: f32[1,512], index: 3, kind: input, shape index: {}]   ;;  %s2053_s4 = inlined_call_operand.vmem [shape: bf16[64,128], index: 4, kind: output, shape index: {}]  }
   0x1   :  { %s30_s17 = sshll.u32 %s1483_s16, 4  ;;  %s1484_s18 = smov 512   ;;  %s31_s17 = int_to_ptr.vmem [resolvable:$true] %s30_s17 }
   0x2   :  { %34 = sst [smem:[#allocation9]] %s1484_s18  ;;  %s1485_s19 = smov 4  }
   0x3   :  { %36 = sst [smem:[#allocation9 + $0x1]] %s1484_s18  ;;  %s1486_s20 = smov 64  }
   0x4   :  { %38 = sst [smem:[#allocation9 + $0x2]] %s1485_s19  ;;  %s1487_s22 = smov 128  }
   0x5   :  { %40 = sst [smem:[#allocation9 + $0x3]] %s1486_s20  ;;  %s1488_s24 = smov 2  }
   0x6   :  { %s1332_s21 = sshll.u32 %s22_s15, 26  ;;  %42 = sst [smem:[#allocation9 + $0x4]] %s1487_s22 }
   0x7   :  { %s1333_s23 = sadd.s32 134217728, %s1332_s21  ;;  %44 = sst [smem:[#allocation9 + $0x5]] %s1488_s24 }
   0x8   :  { %s1489_s25 = smov 256   ;;  %48 = sst [smem:[#allocation9 + $0x7]] %s1486_s20 }
   0x9   :  { %46 = sst [smem:[#allocation9 + $0x6]] %s1489_s25  ;;  %s1490_s26 = smov [#allocation7]  }
   0xa   :  { %50 = sst [smem:[#allocation9 + $0x8]] %s1485_s19  ;;  %s1491_s27 = smov [#allocation8]  }
   0xb   :  { %52 = dma.general %s2050_s1, 4096, %s31_s17, %s1490_s26, %s1491_s27, [#allocation9], %s1333_s23, 0  }
   0xc   :  { %69 = sst [smem:[#allocation11]] %s1484_s18  ;;  %s1492_s30 = smov [#allocation3]  }
   0xd   :  { %71 = sst [smem:[#allocation11 + $0x1]] %s1484_s18  ;;  %s65_s5 = sshll.u32 %s1492_s30, 4  ;;  %s66_s5 = int_to_ptr.vmem [resolvable:$true] %s65_s5 }
   0xe   :  { %73 = sst [smem:[#allocation11 + $0x2]] %s1485_s19  ;;  %s1493_s6 = smov [#allocation7 + $0x1]  }
   0xf   :  { %75 = sst [smem:[#allocation11 + $0x3]] %s1486_s20  ;;  %s1494_s7 = smov [#allocation10]  }
  0x10   :  { %77 = sst [smem:[#allocation11 + $0x4]] %s1487_s22 }
  0x11   :  { %79 = sst [smem:[#allocation11 + $0x5]] %s1488_s24 }
  0x12   :  { %81 = sst [smem:[#allocation11 + $0x6]] %s1489_s25 }
  0x13   :  { %83 = sst [smem:[#allocation11 + $0x7]] %s1486_s20 }
  0x14   :  { %85 = sst [smem:[#allocation11 + $0x8]] %s1485_s19 }
  0x15   :  { %87 = dma.general %s2051_s2, 4096, %s66_s5, %s1493_s6, %s1494_s7, [#allocation11], %s1333_s23, 0  }
  0x16   :  { %1479 = dma.done.wait [#allocation7], 4096 }
  0x17   :  { %1480 = vsyncadd [#allocation7], 4294963200 }
  0x18   :  { %1481 = dma.done.wait [#allocation7 + $0x1], 4096 }
  0x19   :  { %1482 = vsyncadd [#allocation7 + $0x1], 4294963200  ;;  %v105_v0 = vld [vmem:[#allocation2 + $0x8] sm:$0xff]  ;;  %v107_v1 = vld [vmem:[#allocation2 + $0x18] sm:$0xff]  ;;  %v2054_v10 = vmov 0  }
  0x1a   :  { %v104_v2 = vld [vmem:[#allocation2] sm:$0xff]  ;;  %182 = vmatprep.subr.bf16.mxu0 %v105_v0  ;;  %255 = vmatprep.subr.bf16.mxu1 %v107_v1  ;;  %v106_v3 = vld [vmem:[#allocation2 + $0x10] sm:$0xff]  ;;  %v109_v4 = vld [vmem:[#allocation2 + $0x28] sm:$0xff] }
  0x1b   :  { %v111_v5 = vld [vmem:[#allocation2 + $0x38] sm:$0xff]  ;;  %183 = vmatpush1.bf16.msra.mxu0 %v104_v2  ;;  %256 = vmatpush1.bf16.msra.mxu1 %v106_v3  ;;  %v108_v6 = vld [vmem:[#allocation2 + $0x20] sm:$0xff]  ;;  %v110_v7 = vld [vmem:[#allocation2 + $0x30] sm:$0xff] }
  0x1c   :  { %184 = vmatprep.subr.bf16.mxu0 %v109_v4  ;;  %257 = vmatprep.subr.bf16.mxu1 %v111_v5  ;;  %v113_v8 = vld [vmem:[#allocation2 + $0x48] sm:$0xff]  ;;  %v115_v9 = vld [vmem:[#allocation2 + $0x58] sm:$0xff]  ;;  %v112_v11 = vld [vmem:[#allocation2 + $0x40] sm:$0xff]  ;;  %v1496_v5 = vmov 0.0|0.0  }
  0x1d   :  { %214 = vmatprep.mubr.bf16.mxu0 %v2054_v10  ;;  %287 = vmatprep.mubr.bf16.mxu1 %v2054_v10  ;;  %v114_v12 = vld [vmem:[#allocation2 + $0x50] sm:$0xff]  ;;  %v117_v13 = vld [vmem:[#allocation2 + $0x68] sm:$0xff]  ;;  %v119_v14 = vld [vmem:[#allocation2 + $0x78] sm:$0xff] }
  0x1e   :  { %v116_v15 = vld [vmem:[#allocation2 + $0x60] sm:$0xff]  ;;  %v118_v16 = vld [vmem:[#allocation2 + $0x70] sm:$0xff]  ;;  %v121_v17 = vld [vmem:[#allocation2 + $0x88] sm:$0xff] }
  0x1f   :  { %185 = vmatpush1.bf16.msra.mxu0 %v108_v6  ;;  %258 = vmatpush1.bf16.msra.mxu1 %v110_v7  ;;  %v123_v18 = vld [vmem:[#allocation2 + $0x98] sm:$0xff]  ;;  %v120_v19 = vld [vmem:[#allocation2 + $0x80] sm:$0xff]  ;;  %v122_v20 = vld [vmem:[#allocation2 + $0x90] sm:$0xff]  ;;  %v138_v6 = vlaneseq }
  0x20   :  { %186 = vmatprep.subr.bf16.mxu0 %v113_v8  ;;  %259 = vmatprep.subr.bf16.mxu1 %v115_v9  ;;  %v125_v21 = vld [vmem:[#allocation2 + $0xa8] sm:$0xff]  ;;  %v127_v22 = vld [vmem:[#allocation2 + $0xb8] sm:$0xff]  ;;  %v124_v23 = vld [vmem:[#allocation2 + $0xa0] sm:$0xff] }
  0x21   :  { %v126_v24 = vld [vmem:[#allocation2 + $0xb0] sm:$0xff]  ;;  %v129_v25 = vld [vmem:[#allocation2 + $0xc8] sm:$0xff]  ;;  %v131_v26 = vld [vmem:[#allocation2 + $0xd8] sm:$0xff]  ;;  %v139_v7 = vshrl.u32 %v138_v6, 7 }
  0x22   :  { %v128_v27 = vld [vmem:[#allocation2 + $0xc0] sm:$0xff]  ;;  %v130_v28 = vld [vmem:[#allocation2 + $0xd0] sm:$0xff]  ;;  %v133_v29 = vld [vmem:[#allocation2 + $0xe8] sm:$0xff] }
  0x23   :  { %187 = vmatpush1.bf16.msra.mxu0 %v112_v11  ;;  %260 = vmatpush1.bf16.msra.mxu1 %v114_v12  ;;  %v135_v30 = vld [vmem:[#allocation2 + $0xf8] sm:$0xff]  ;;  %v132_v31 = vld [vmem:[#allocation2 + $0xe0] sm:$0xff]  ;;  %v134_v32 = vld [vmem:[#allocation2 + $0xf0] sm:$0xff]  ;;  %v148_v8 = vsub.s32 2, %v139_v7  ;;  %v152_v9 = vsub.s32 3, %v139_v7  ;;  %v140_v11 = vsub.s32 0, %v139_v7 }
  0x24   :  { %188 = vmatprep.subr.bf16.mxu0 %v117_v13  ;;  %261 = vmatprep.subr.bf16.mxu1 %v119_v14  ;;  %v1530_v33 = vld [vmem:[#allocation3 + $0x8] sm:$0xff]  ;;  %v1532_v34 = vld [vmem:[#allocation3 + $0x18] sm:$0xff]  ;;  %v1363_v35 = vld [vmem:[%s2049_s0] sm:$0xff]   ;;  %v144_v13 = vsub.s32 1, %v139_v7 }
  0x25   :  { %v1539_v36 = vld [vmem:[#allocation3] sm:$0xff]  ;;  %v1541_v37 = vld [vmem:[#allocation3 + $0x10] sm:$0xff]  ;;  %v1543_v38 = vld [vmem:[#allocation3 + $0x28] sm:$0xff] }
  0x26   :  { %v1545_v39 = vld [vmem:[#allocation3 + $0x38] sm:$0xff]  ;;  %v1551_v40 = vld [vmem:[#allocation3 + $0x20] sm:$0xff]  ;;  %v1553_v41 = vld [vmem:[#allocation3 + $0x30] sm:$0xff] }
  0x27   :  { %189 = vmatpush1.bf16.msra.mxu0 %v116_v15  ;;  %262 = vmatpush1.bf16.msra.mxu1 %v118_v16  ;;  %v1557_v42 = vld [vmem:[#allocation3 + $0x48] sm:$0xff]  ;;  %v1559_v43 = vld [vmem:[#allocation3 + $0x58] sm:$0xff]  ;;  %v1568_v45 = vld [vmem:[#allocation3 + $0x40] sm:$0xff] }
  0x28   :  { %190 = vmatprep.subr.bf16.mxu0 %v121_v17  ;;  %263 = vmatprep.subr.bf16.mxu1 %v123_v18  ;;  %v1364_v44 = vld [vmem:[%s2049_s0 + $0x8] sm:$0xff]   ;;  %v1570_v46 = vld [vmem:[#allocation3 + $0x50] sm:$0xff]  ;;  %v1574_v48 = vld [vmem:[#allocation3 + $0x78] sm:$0xff] }
  0x29   :  { %v1572_v47 = vld [vmem:[#allocation3 + $0x68] sm:$0xff]  ;;  %v1580_v49 = vld [vmem:[#allocation3 + $0x60] sm:$0xff]  ;;  %v1582_v50 = vld [vmem:[#allocation3 + $0x70] sm:$0xff] }
  0x2a   :  { %v1586_v51 = vld [vmem:[#allocation3 + $0x88] sm:$0xff]  ;;  %v1588_v52 = vld [vmem:[#allocation3 + $0x98] sm:$0xff]  ;;  %v1365_v53 = vld [vmem:[%s2049_s0 + $0x10] sm:$0xff]  }
  0x2b   :  { %191 = vmatpush1.bf16.msra.mxu0 %v120_v19  ;;  %264 = vmatpush1.bf16.msra.mxu1 %v122_v20  ;;  %v1597_v54 = vld [vmem:[#allocation3 + $0x80] sm:$0xff]  ;;  %v1599_v55 = vld [vmem:[#allocation3 + $0x90] sm:$0xff]  ;;  %v1601_v56 = vld [vmem:[#allocation3 + $0xa8] sm:$0xff] }
  0x2c   :  { %192 = vmatprep.subr.bf16.mxu0 %v125_v21  ;;  %265 = vmatprep.subr.bf16.mxu1 %v127_v22  ;;  %v1603_v57 = vld [vmem:[#allocation3 + $0xb8] sm:$0xff]  ;;  %v1609_v58 = vld [vmem:[#allocation3 + $0xa0] sm:$0xff]  ;;  %v1611_v59 = vld [vmem:[#allocation3 + $0xb0] sm:$0xff] }
  0x2d   :  { %v1615_v60 = vld [vmem:[#allocation3 + $0xc8] sm:$0xff]  ;;  %v1617_v61 = vld [vmem:[#allocation3 + $0xd8] sm:$0xff]  ;;  %v1626_v63 = vld [vmem:[#allocation3 + $0xc0] sm:$0xff] }
  0x2e   :  { %v1366_v62 = vld [vmem:[%s2049_s0 + $0x18] sm:$0xff]   ;;  %v1628_v0 = vld [vmem:[#allocation3 + $0xd0] sm:$0xff]  ;;  %v1630_v1 = vld [vmem:[#allocation3 + $0xe8] sm:$0xff] }
  0x2f   :  { %193 = vmatpush1.bf16.msra.mxu0 %v124_v23  ;;  %266 = vmatpush1.bf16.msra.mxu1 %v126_v24  ;;  %v1632_v2 = vld [vmem:[#allocation3 + $0xf8] sm:$0xff]  ;;  %v1638_v3 = vld [vmem:[#allocation3 + $0xe0] sm:$0xff]  ;;  %v1640_v4 = vld [vmem:[#allocation3 + $0xf0] sm:$0xff] }
  0x30   :  { %194 = vmatprep.subr.bf16.mxu0 %v129_v25  ;;  %267 = vmatprep.subr.bf16.mxu1 %v131_v26  ;;  %v136_v12 = vld [vmem:[%s2052_s3] sm:$0xf] }
  0x31   :  { %v1685_v14 = vrot.slane %v136_v12, %v148_v8  ;;  %v1691_v17 = vrot.slane %v136_v12, %v152_v9  ;;  %v141_v18 = vrot.slane %v136_v12, %v140_v11  ;;  %v145_v21 = vrot.slane %v136_v12, %v144_v13 }
  0x33   :  { %195 = vmatpush1.bf16.msra.mxu0 %v128_v27  ;;  %268 = vmatpush1.bf16.msra.mxu1 %v130_v28 }
  0x34   :  { %196 = vmatprep.subr.bf16.mxu0 %v133_v29  ;;  %269 = vmatprep.subr.bf16.mxu1 %v135_v30 }
  0x37   :  { %197 = vmatpush1.bf16.msra.mxu0 %v132_v31  ;;  %270 = vmatpush1.bf16.msra.mxu1 %v134_v32 }
  0x38   :  { %402 = vmatprep.subr.bf16.mxu0 %v1530_v33  ;;  %443 = vmatprep.subr.bf16.mxu1 %v1532_v34 }
  0x3a   :  { %215 = vmatmul.mubr.bf16.vlgmr.msra.gmra.mrb[0].mxu0 %v1363_v35  ;;  %288 = vmatmul.mubr.bf16.vlgmr.msra.gmra.mrb[0].mxu1 %v1363_v35 }
  0x3b   :  { %403 = vmatpush1.bf16.msra.mxu0 %v1539_v36  ;;  %444 = vmatpush1.bf16.msra.mxu1 %v1541_v37 }
  0x3c   :  { %404 = vmatprep.subr.bf16.mxu0 %v1543_v38  ;;  %445 = vmatprep.subr.bf16.mxu1 %v1545_v39 }
  0x3d   :  { %224 = vmatprep.mubr.bf16.mxu0 %v2054_v10  ;;  %297 = vmatprep.mubr.bf16.mxu1 %v2054_v10 }
  0x3f   :  { %405 = vmatpush1.bf16.msra.mxu0 %v1551_v40  ;;  %446 = vmatpush1.bf16.msra.mxu1 %v1553_v41 }
  0x40   :  { %406 = vmatprep.subr.bf16.mxu0 %v1557_v42  ;;  %447 = vmatprep.subr.bf16.mxu1 %v1559_v43 }
  0x42   :  { %225 = vmatmul.mubr.bf16.gmra.mrb[4].mxu0 %v1364_v44  ;;  %298 = vmatmul.mubr.bf16.gmra.mrb[4].mxu1 %v1364_v44 }
  0x43   :  { %407 = vmatpush1.bf16.msra.mxu0 %v1568_v45  ;;  %448 = vmatpush1.bf16.msra.mxu1 %v1570_v46 }
  0x44   :  { %408 = vmatprep.subr.bf16.mxu0 %v1572_v47  ;;  %449 = vmatprep.subr.bf16.mxu1 %v1574_v48 }
  0x45   :  { %234 = vmatprep.mubr.bf16.mxu0 %v2054_v10  ;;  %307 = vmatprep.mubr.bf16.mxu1 %v2054_v10 }
  0x47   :  { %409 = vmatpush1.bf16.msra.mxu0 %v1580_v49  ;;  %450 = vmatpush1.bf16.msra.mxu1 %v1582_v50 }
  0x48   :  { %410 = vmatprep.subr.bf16.mxu0 %v1586_v51  ;;  %451 = vmatprep.subr.bf16.mxu1 %v1588_v52 }
  0x4a   :  { %235 = vmatmul.mubr.bf16.gmra.mrb[8].mxu0 %v1365_v53  ;;  %308 = vmatmul.mubr.bf16.gmra.mrb[8].mxu1 %v1365_v53 }
  0x4b   :  { %411 = vmatpush1.bf16.msra.mxu0 %v1597_v54  ;;  %452 = vmatpush1.bf16.msra.mxu1 %v1599_v55 }
  0x4c   :  { %412 = vmatprep.subr.bf16.mxu0 %v1601_v56  ;;  %453 = vmatprep.subr.bf16.mxu1 %v1603_v57 }
  0x4d   :  { %244 = vmatprep.mubr.bf16.mxu0 %v2054_v10  ;;  %317 = vmatprep.mubr.bf16.mxu1 %v2054_v10 }
  0x4f   :  { %413 = vmatpush1.bf16.msra.mxu0 %v1609_v58  ;;  %454 = vmatpush1.bf16.msra.mxu1 %v1611_v59 }
  0x50   :  { %414 = vmatprep.subr.bf16.mxu0 %v1615_v60  ;;  %455 = vmatprep.subr.bf16.mxu1 %v1617_v61 }
  0x52   :  { %245 = vmatmul.mubr.bf16.gmra.mrb[12].mxu0 %v1366_v62  ;;  %318 = vmatmul.mubr.bf16.gmra.mrb[12].mxu1 %v1366_v62 }
  0x53   :  { %415 = vmatpush1.bf16.msra.mxu0 %v1626_v63  ;;  %456 = vmatpush1.bf16.msra.mxu1 %v1628_v0 }
  0x54   :  { %416 = vmatprep.subr.bf16.mxu0 %v1630_v1  ;;  %457 = vmatprep.subr.bf16.mxu1 %v1632_v2 }
  0x55   :  { %434 = vmatprep.mubr.bf16.mxu0 %v2054_v10  ;;  %475 = vmatprep.mubr.bf16.mxu1 %v2054_v10 }
  0x57   :  { %417 = vmatpush1.bf16.msra.mxu0 %v1638_v3  ;;  %458 = vmatpush1.bf16.msra.mxu1 %v1640_v4 }
  0x58   :  { %515 = vmatprep.subr.bf16.mxu0 %v1530_v33  ;;  %556 = vmatprep.subr.bf16.mxu1 %v1532_v34 }
  0x5a   :  { %435 = vmatmul.mubr.bf16.vlgmr.msra.gmra.mrb[16].mxu0 %v1496_v5  ;;  %476 = vmatmul.mubr.bf16.vlgmr.msra.gmra.mrb[16].mxu1 %v1496_v5 }
  0x5b   :  { %516 = vmatpush1.bf16.msra.mxu0 %v1539_v36  ;;  %557 = vmatpush1.bf16.msra.mxu1 %v1541_v37 }
  0x5c   :  { %517 = vmatprep.subr.bf16.mxu0 %v1543_v38  ;;  %558 = vmatprep.subr.bf16.mxu1 %v1545_v39 }
  0x5d   :  { %547 = vmatprep.mubr.bf16.mxu0 %v2054_v10  ;;  %588 = vmatprep.mubr.bf16.mxu1 %v2054_v10 }
  0x5f   :  { %518 = vmatpush1.bf16.msra.mxu0 %v1551_v40  ;;  %559 = vmatpush1.bf16.msra.mxu1 %v1553_v41 }
  0x60   :  { %519 = vmatprep.subr.bf16.mxu0 %v1557_v42  ;;  %560 = vmatprep.subr.bf16.mxu1 %v1559_v43 }
  0x63   :  { %520 = vmatpush1.bf16.msra.mxu0 %v1568_v45  ;;  %561 = vmatpush1.bf16.msra.mxu1 %v1570_v46 }
  0x64   :  { %521 = vmatprep.subr.bf16.mxu0 %v1572_v47  ;;  %562 = vmatprep.subr.bf16.mxu1 %v1574_v48 }
  0x67   :  { %522 = vmatpush1.bf16.msra.mxu0 %v1580_v49  ;;  %563 = vmatpush1.bf16.msra.mxu1 %v1582_v50 }
  0x68   :  { %523 = vmatprep.subr.bf16.mxu0 %v1586_v51  ;;  %564 = vmatprep.subr.bf16.mxu1 %v1588_v52 }
  0x6b   :  { %524 = vmatpush1.bf16.msra.mxu0 %v1597_v54  ;;  %565 = vmatpush1.bf16.msra.mxu1 %v1599_v55 }
  0x6c   :  { %525 = vmatprep.subr.bf16.mxu0 %v1601_v56  ;;  %566 = vmatprep.subr.bf16.mxu1 %v1603_v57 }
  0x6f   :  { %526 = vmatpush1.bf16.msra.mxu0 %v1609_v58  ;;  %567 = vmatpush1.bf16.msra.mxu1 %v1611_v59 }
  0x70   :  { %527 = vmatprep.subr.bf16.mxu0 %v1615_v60  ;;  %568 = vmatprep.subr.bf16.mxu1 %v1617_v61 }
  0x73   :  { %528 = vmatpush1.bf16.msra.mxu0 %v1626_v63  ;;  %569 = vmatpush1.bf16.msra.mxu1 %v1628_v0 }
  0x74   :  { %529 = vmatprep.subr.bf16.mxu0 %v1630_v1  ;;  %570 = vmatprep.subr.bf16.mxu1 %v1632_v2 }
  0x77   :  { %530 = vmatpush1.bf16.msra.mxu0 %v1638_v3  ;;  %571 = vmatpush1.bf16.msra.mxu1 %v1640_v4 }
  0x78   :  { %629 = vmatprep.subr.bf16.mxu0 %v1530_v33  ;;  %670 = vmatprep.subr.bf16.mxu1 %v1532_v34 }
 0x10d   :  { %v1687_v15 = vpop.f32.mrb[0].mxu0  ;;  %v1689_v16 = vpop.f32.mrb[0].mxu1 }
 0x10e   :  { %v218_v19 = vpop.f32.mrb[1].mxu0  ;;  %v291_v20 = vpop.f32.mrb[1].mxu1 }
 0x10f   :  { %v220_v22 = vpop.f32.mrb[2].mxu0  ;;  %v293_v23 = vpop.f32.mrb[2].mxu1 }
 0x110   :  { %v1693_v24 = vadd.f32 %v220_v22, %v141_v18  ;;  %v222_v25 = vpop.f32.mrb[3].mxu0  ;;  %v1696_v26 = vadd.f32 %v293_v23, %v1685_v14  ;;  %v295_v27 = vpop.f32.mrb[3].mxu1 }
 0x111   :  { %v1698_v28 = vadd.f32 %v222_v25, %v145_v21  ;;  %v1701_v29 = vadd.f32 %v295_v27, %v1691_v17 }
 0x115   :  { %v226_v30 = vpop.f32.mrb[4].mxu0  ;;  %v299_v31 = vpop.f32.mrb[4].mxu1 }
 0x116   :  { %v1703_v32 = vadd.f32 %v226_v30, %v141_v18  ;;  %v228_v35 = vpop.f32.mrb[5].mxu0  ;;  %v1706_v44 = vadd.f32 %v299_v31, %v1685_v14  ;;  %v301_v53 = vpop.f32.mrb[5].mxu1 }
 0x117   :  { %v1708_v62 = vadd.f32 %v228_v35, %v145_v21  ;;  %v230_v5 = vpop.f32.mrb[6].mxu0  ;;  %v1711_v6 = vadd.f32 %v301_v53, %v1691_v17  ;;  %v303_v7 = vpop.f32.mrb[6].mxu1 }
 0x118   :  { %v1713_v8 = vadd.f32 %v230_v5, %v141_v18  ;;  %v232_v9 = vpop.f32.mrb[7].mxu0  ;;  %v1716_v11 = vadd.f32 %v303_v7, %v1685_v14  ;;  %v305_v12 = vpop.f32.mrb[7].mxu1 }
 0x119   :  { %2056 = vst [vmem:[#allocation14_spill] sm:$0xff] %v1711_v6  ;;  %v1718_v13 = vadd.f32 %v232_v9, %v145_v21  ;;  %v1721_v22 = vadd.f32 %v305_v12, %v1691_v17 }
 0x11a   :  { %2057 = vst [vmem:[#allocation15_spill] sm:$0xff] %v1713_v8  ;;  %2058 = vst [vmem:[#allocation16_spill] sm:$0xff] %v1716_v11 }
 0x11b   :  { %2059 = vst [vmem:[#allocation17_spill] sm:$0xff] %v1718_v13  ;;  %2060 = vst [vmem:[#allocation18_spill] sm:$0xff] %v1721_v22 }
 0x11d   :  { %v236_v23 = vpop.f32.mrb[8].mxu0  ;;  %v309_v25 = vpop.f32.mrb[8].mxu1 }
 0x11e   :  { %v1723_v27 = vadd.f32 %v236_v23, %v141_v18  ;;  %v238_v30 = vpop.f32.mrb[9].mxu0  ;;  %v1726_v31 = vadd.f32 %v309_v25, %v1685_v14  ;;  %v311_v35 = vpop.f32.mrb[9].mxu1 }
 0x11f   :  { %v1728_v53 = vadd.f32 %v238_v30, %v145_v21  ;;  %v240_v5 = vpop.f32.mrb[10].mxu0  ;;  %v1731_v7 = vadd.f32 %v311_v35, %v1691_v17  ;;  %v313_v9 = vpop.f32.mrb[10].mxu1 }
 0x120   :  { %2061 = vst [vmem:[#allocation19_spill] sm:$0xff] %v1723_v27  ;;  %2062 = vst [vmem:[#allocation20_spill] sm:$0xff] %v1726_v31  ;;  %v1733_v10 = vadd.f32 %v240_v5, %v141_v18  ;;  %v242_v12 = vpop.f32.mrb[11].mxu0  ;;  %v1736_v22 = vadd.f32 %v313_v9, %v1685_v14  ;;  %v315_v23 = vpop.f32.mrb[11].mxu1 }
 0x121   :  { %2063 = vst [vmem:[#allocation21_spill] sm:$0xff] %v1728_v53  ;;  %2064 = vst [vmem:[#allocation22_spill] sm:$0xff] %v1731_v7  ;;  %v1738_v27 = vadd.f32 %v242_v12, %v145_v21  ;;  %v1741_v25 = vadd.f32 %v315_v23, %v1691_v17 }
 0x122   :  { %2065 = vst [vmem:[#allocation23_spill] sm:$0xff] %v1733_v10  ;;  %2066 = vst [vmem:[#allocation24_spill] sm:$0xff] %v1736_v22 }
 0x123   :  { %2067 = vst [vmem:[#allocation25_spill] sm:$0xff] %v1738_v27  ;;  %2068 = vst [vmem:[#allocation26_spill] sm:$0xff] %v1741_v25 }
 0x125   :  { %v246_v31 = vpop.f32.mrb[12].mxu0  ;;  %v319_v30 = vpop.f32.mrb[12].mxu1 }
 0x126   :  { %v1743_v53 = vadd.f32 %v246_v31, %v141_v18  ;;  %v248_v13 = vpop.f32.mrb[13].mxu0  ;;  %v1746_v35 = vadd.f32 %v319_v30, %v1685_v14  ;;  %v321_v5 = vpop.f32.mrb[13].mxu1 }
 0x127   :  { %v1748_v10 = vadd.f32 %v248_v13, %v145_v21  ;;  %v250_v7 = vpop.f32.mrb[14].mxu0  ;;  %v1751_v9 = vadd.f32 %v321_v5, %v1691_v17  ;;  %v323_v12 = vpop.f32.mrb[14].mxu1  ;;  %v217_v13 = vadd.f32 %v1687_v15, %v141_v18  ;;  %v219_v5 = vadd.f32 %v218_v19, %v145_v21 }
 0x128   :  { %2069 = vst [vmem:[#allocation27_spill] sm:$0xff] %v1743_v53  ;;  %2070 = vst [vmem:[#allocation28_spill] sm:$0xff] %v1746_v35  ;;  %v1753_v27 = vadd.f32 %v250_v7, %v141_v18  ;;  %v252_v23 = vpop.f32.mrb[15].mxu0  ;;  %v1756_v25 = vadd.f32 %v323_v12, %v1685_v14  ;;  %v325_v31 = vpop.f32.mrb[15].mxu1 }
 0x129   :  { %2071 = vst [vmem:[#allocation29_spill] sm:$0xff] %v1748_v10  ;;  %2072 = vst [vmem:[#allocation30_spill] sm:$0xff] %v1751_v9  ;;  %v1758_v53 = vadd.f32 %v252_v23, %v145_v21  ;;  %v1761_v30 = vadd.f32 %v325_v31, %v1691_v17  ;;  %v290_v10 = vadd.f32 %v1689_v16, %v1685_v14 }
 0x12a   :  { %2073 = vst [vmem:[#allocation31_spill] sm:$0xff] %v1753_v27  ;;  %2074 = vst [vmem:[#allocation32_spill] sm:$0xff] %v1756_v25  ;;  %v292_v9 = vadd.f32 %v291_v20, %v1691_v17 }
 0x12b   :  { %2075 = vst [vmem:[#allocation33_spill] sm:$0xff] %v1758_v53  ;;  %2076 = vst [vmem:[#allocation34_spill] sm:$0xff] %v1761_v30 }
 0x12d   :  { %v436_v7 = vpop.f32.mrb[16].mxu0  ;;  %v477_v27 = vpop.f32.mrb[16].mxu1 }
 0x12e   :  { %v484_v35 = vadd.f32 %v436_v7, %v217_v13  ;;  %v486_v22 = vadd.f32 %v477_v27, %v290_v10  ;;  %v438_v12 = vpop.f32.mrb[17].mxu0  ;;  %v479_v25 = vpop.f32.mrb[17].mxu1 }
 0x12f   :  { %v485_v11 = vadd.f32 %v438_v12, %v219_v5  ;;  %v487_v23 = vadd.f32 %v479_v25, %v292_v9  ;;  %v440_v53 = vpop.f32.mrb[18].mxu0  ;;  %v481_v8 = vpop.f32.mrb[18].mxu1 }
 0x130   :  { %v488_v31 = vmul.f32 0.5, %v484_v35  ;;  %v441_v30 = vpop.f32.mrb[19].mxu0  ;;  %v482_v6 = vpop.f32.mrb[19].mxu1  ;;  %v490_v14 = vmul.f32 0.5, %v486_v22 }
 0x131   :  { %v489_v15 = vmul.f32 0.5, %v485_v11  ;;  %v2077_v30 = vmov 0  }
 0x132   :  { %1367 = vtanh.f32 %v488_v31 }
 0x133   :  { %1369 = vtanh.f32 %v489_v15 }
 0x134   :  { %1371 = vtanh.f32 %v487_v23 }
 0x135   :  { %1373 = vtanh.f32 %v490_v14 }
 0x13c   :  { %v1368_v16 = vpop.eup %1367 }
 0x13d   :  { %v494_v17 = vmul.f32 0.5, %v1368_v16  ;;  %v1370_v18 = vpop.eup %1369 }
 0x13e   :  { %v495_v10 = vmul.f32 0.5, %v1370_v18  ;;  %v1372_v20 = vpop.eup %1371 }
 0x13f   :  { %v497_v19 = vadd.f32 0.5, %v494_v17  ;;  %v1374_v6 = vpop.eup %1373 }
 0x140   :  { %v498_v21 = vadd.f32 0.5, %v495_v10  ;;  %v496_v8 = vmul.f32 0.5, %v1374_v6 }
 0x141   :  { %v502_v27 = vmul.f32 %v1372_v20, %v497_v19 }
 0x142   :  { %v501_v25 = vmul.f32 0.0, %v498_v21  ;;  %v499_v11 = vadd.f32 0.5, %v496_v8 }
 0x144   :  { %v1767_v53 = vadd.f32 %v502_v27, %v501_v25 }
 0x146   :  { %1375 = vtanh.f32 %v1767_v53 }
 0x150   :  { %v1376_v35 = vpop.eup %1375 }
 0x151   :  { %v505_v9 = vmul.f32 %v1376_v35, %v499_v11 }
 0x153   :  { %v506_v22 = vpack.c.bf16 %v505_v9, %v505_v9 }
 0x155   :  { %507 = vst [vmem:[%s2053_s4] sm:$0xf] %v506_v22  ;;  %548 = vmatmul.mubr.bf16.vlgmr.msra.gmra.mrb[20].mxu0 %v506_v22  ;;  %589 = vmatmul.mubr.bf16.vlgmr.msra.gmra.mrb[20].mxu1 %v506_v22 }
 0x156   :  { %630 = vmatpush1.bf16.msra.mxu0 %v1539_v36  ;;  %671 = vmatpush1.bf16.msra.mxu1 %v1541_v37 }
 0x157   :  { %631 = vmatprep.subr.bf16.mxu0 %v1543_v38  ;;  %672 = vmatprep.subr.bf16.mxu1 %v1545_v39 }
 0x158   :  { %661 = vmatprep.mubr.bf16.mxu0 %v2077_v30  ;;  %702 = vmatprep.mubr.bf16.mxu1 %v2077_v30 }
 0x15a   :  { %632 = vmatpush1.bf16.msra.mxu0 %v1551_v40  ;;  %673 = vmatpush1.bf16.msra.mxu1 %v1553_v41 }
 0x15b   :  { %633 = vmatprep.subr.bf16.mxu0 %v1557_v42  ;;  %674 = vmatprep.subr.bf16.mxu1 %v1559_v43 }
 0x15e   :  { %634 = vmatpush1.bf16.msra.mxu0 %v1568_v45  ;;  %675 = vmatpush1.bf16.msra.mxu1 %v1570_v46 }
 0x15f   :  { %635 = vmatprep.subr.bf16.mxu0 %v1572_v47  ;;  %676 = vmatprep.subr.bf16.mxu1 %v1574_v48 }
 0x162   :  { %636 = vmatpush1.bf16.msra.mxu0 %v1580_v49  ;;  %677 = vmatpush1.bf16.msra.mxu1 %v1582_v50 }
 0x163   :  { %637 = vmatprep.subr.bf16.mxu0 %v1586_v51  ;;  %678 = vmatprep.subr.bf16.mxu1 %v1588_v52 }
 0x166   :  { %638 = vmatpush1.bf16.msra.mxu0 %v1597_v54  ;;  %679 = vmatpush1.bf16.msra.mxu1 %v1599_v55 }
 0x167   :  { %639 = vmatprep.subr.bf16.mxu0 %v1601_v56  ;;  %680 = vmatprep.subr.bf16.mxu1 %v1603_v57 }
 0x16a   :  { %640 = vmatpush1.bf16.msra.mxu0 %v1609_v58  ;;  %681 = vmatpush1.bf16.msra.mxu1 %v1611_v59 }
 0x16b   :  { %641 = vmatprep.subr.bf16.mxu0 %v1615_v60  ;;  %682 = vmatprep.subr.bf16.mxu1 %v1617_v61 }
 0x16e   :  { %642 = vmatpush1.bf16.msra.mxu0 %v1626_v63  ;;  %683 = vmatpush1.bf16.msra.mxu1 %v1628_v0 }
 0x16f   :  { %643 = vmatprep.subr.bf16.mxu0 %v1630_v1  ;;  %684 = vmatprep.subr.bf16.mxu1 %v1632_v2 }
 0x172   :  { %644 = vmatpush1.bf16.msra.mxu0 %v1638_v3  ;;  %685 = vmatpush1.bf16.msra.mxu1 %v1640_v4 }
 0x173   :  { %743 = vmatprep.subr.bf16.mxu0 %v1530_v33  ;;  %784 = vmatprep.subr.bf16.mxu1 %v1532_v34 }
 0x228   :  { %v549_v13 = vpop.f32.mrb[20].mxu0  ;;  %v590_v5 = vpop.f32.mrb[20].mxu1 }
 0x229   :  { %v597_v7 = vadd.f32 %v549_v13, %v1693_v24  ;;  %v599_v12 = vadd.f32 %v590_v5, %v1696_v26  ;;  %v551_v23 = vpop.f32.mrb[21].mxu0  ;;  %v592_v31 = vpop.f32.mrb[21].mxu1 }
 0x22a   :  { %v598_v15 = vadd.f32 %v551_v23, %v1698_v28  ;;  %v600_v14 = vadd.f32 %v592_v31, %v1701_v29  ;;  %v553_v16 = vpop.f32.mrb[22].mxu0  ;;  %v594_v17 = vpop.f32.mrb[22].mxu1 }
 0x22b   :  { %v601_v18 = vmul.f32 0.5, %v597_v7  ;;  %v554_v19 = vpop.f32.mrb[23].mxu0  ;;  %v595_v10 = vpop.f32.mrb[23].mxu1  ;;  %v603_v21 = vmul.f32 0.5, %v599_v12 }
 0x22c   :  { %v602_v20 = vmul.f32 0.5, %v598_v15 }
 0x22d   :  { %1377 = vtanh.f32 %v601_v18  ;;  %v2078_v18 = vld [vmem:[#allocation14_spill] sm:$0xff] }
 0x22e   :  { %1379 = vtanh.f32 %v602_v20 }
 0x22f   :  { %1381 = vtanh.f32 %v600_v14 }
 0x230   :  { %1383 = vtanh.f32 %v603_v21 }
 0x237   :  { %v1378_v27 = vpop.eup %1377 }
 0x238   :  { %v607_v24 = vmul.f32 0.5, %v1378_v27  ;;  %v1380_v25 = vpop.eup %1379 }
 0x239   :  { %v608_v6 = vmul.f32 0.5, %v1380_v25  ;;  %v1382_v8 = vpop.eup %1381 }
 0x23a   :  { %v610_v26 = vadd.f32 0.5, %v607_v24  ;;  %v1384_v9 = vpop.eup %1383 }
 0x23b   :  { %v611_v28 = vadd.f32 0.5, %v608_v6  ;;  %v609_v22 = vmul.f32 0.5, %v1384_v9 }
 0x23c   :  { %v615_v11 = vmul.f32 %v1382_v8, %v610_v26 }
 0x23d   :  { %v614_v29 = vmul.f32 %v611_v28, %v1767_v53  ;;  %v612_v13 = vadd.f32 0.5, %v609_v22 }
 0x23f   :  { %v1812_v35 = vadd.f32 %v615_v11, %v614_v29 }
 0x241   :  { %1385 = vtanh.f32 %v1812_v35 }
 0x24b   :  { %v1386_v5 = vpop.eup %1385 }
 0x24c   :  { %v618_v7 = vmul.f32 %v1386_v5, %v612_v13 }
 0x24e   :  { %v619_v12 = vpack.c.bf16 %v618_v7, %v618_v7 }
 0x250   :  { %1340 = vst [vmem:[%s2053_s4 + $0x4] sm:$0xf] %v619_v12  ;;  %662 = vmatmul.mubr.bf16.vlgmr.msra.gmra.mrb[24].mxu0 %v619_v12  ;;  %703 = vmatmul.mubr.bf16.vlgmr.msra.gmra.mrb[24].mxu1 %v619_v12 }
 0x251   :  { %744 = vmatpush1.bf16.msra.mxu0 %v1539_v36  ;;  %785 = vmatpush1.bf16.msra.mxu1 %v1541_v37 }
 0x252   :  { %745 = vmatprep.subr.bf16.mxu0 %v1543_v38  ;;  %786 = vmatprep.subr.bf16.mxu1 %v1545_v39 }
 0x253   :  { %775 = vmatprep.mubr.bf16.mxu0 %v2077_v30  ;;  %816 = vmatprep.mubr.bf16.mxu1 %v2077_v30 }
 0x255   :  { %746 = vmatpush1.bf16.msra.mxu0 %v1551_v40  ;;  %787 = vmatpush1.bf16.msra.mxu1 %v1553_v41 }
 0x256   :  { %747 = vmatprep.subr.bf16.mxu0 %v1557_v42  ;;  %788 = vmatprep.subr.bf16.mxu1 %v1559_v43 }
 0x259   :  { %748 = vmatpush1.bf16.msra.mxu0 %v1568_v45  ;;  %789 = vmatpush1.bf16.msra.mxu1 %v1570_v46 }
 0x25a   :  { %749 = vmatprep.subr.bf16.mxu0 %v1572_v47  ;;  %790 = vmatprep.subr.bf16.mxu1 %v1574_v48 }
 0x25d   :  { %750 = vmatpush1.bf16.msra.mxu0 %v1580_v49  ;;  %791 = vmatpush1.bf16.msra.mxu1 %v1582_v50 }
 0x25e   :  { %751 = vmatprep.subr.bf16.mxu0 %v1586_v51  ;;  %792 = vmatprep.subr.bf16.mxu1 %v1588_v52 }
 0x261   :  { %752 = vmatpush1.bf16.msra.mxu0 %v1597_v54  ;;  %793 = vmatpush1.bf16.msra.mxu1 %v1599_v55 }
 0x262   :  { %753 = vmatprep.subr.bf16.mxu0 %v1601_v56  ;;  %794 = vmatprep.subr.bf16.mxu1 %v1603_v57 }
 0x265   :  { %754 = vmatpush1.bf16.msra.mxu0 %v1609_v58  ;;  %795 = vmatpush1.bf16.msra.mxu1 %v1611_v59 }
 0x266   :  { %755 = vmatprep.subr.bf16.mxu0 %v1615_v60  ;;  %796 = vmatprep.subr.bf16.mxu1 %v1617_v61 }
 0x269   :  { %756 = vmatpush1.bf16.msra.mxu0 %v1626_v63  ;;  %797 = vmatpush1.bf16.msra.mxu1 %v1628_v0 }
 0x26a   :  { %757 = vmatprep.subr.bf16.mxu0 %v1630_v1  ;;  %798 = vmatprep.subr.bf16.mxu1 %v1632_v2 }
 0x26d   :  { %758 = vmatpush1.bf16.msra.mxu0 %v1638_v3  ;;  %799 = vmatpush1.bf16.msra.mxu1 %v1640_v4 }
 0x26e   :  { %857 = vmatprep.subr.bf16.mxu0 %v1530_v33  ;;  %898 = vmatprep.subr.bf16.mxu1 %v1532_v34 }
 0x323   :  { %v663_v53 = vpop.f32.mrb[24].mxu0  ;;  %v704_v23 = vpop.f32.mrb[24].mxu1 }
 0x324   :  { %v711_v31 = vadd.f32 %v663_v53, %v1703_v32  ;;  %v713_v15 = vadd.f32 %v704_v23, %v1706_v44  ;;  %v665_v14 = vpop.f32.mrb[25].mxu0  ;;  %v706_v16 = vpop.f32.mrb[25].mxu1 }
 0x325   :  { %v712_v17 = vadd.f32 %v665_v14, %v1708_v62  ;;  %v714_v19 = vadd.f32 %v706_v16, %v2078_v18  ;;  %v667_v10 = vpop.f32.mrb[26].mxu0  ;;  %v708_v20 = vpop.f32.mrb[26].mxu1  ;;  %v2080_v16 = vld [vmem:[#allocation16_spill] sm:$0xff] }
 0x326   :  { %v715_v21 = vmul.f32 0.5, %v711_v31  ;;  %v668_v27 = vpop.f32.mrb[27].mxu0  ;;  %v709_v24 = vpop.f32.mrb[27].mxu1  ;;  %v717_v26 = vmul.f32 0.5, %v713_v15  ;;  %v2079_v15 = vld [vmem:[#allocation15_spill] sm:$0xff]  ;;  %v2081_v10 = vld [vmem:[#allocation17_spill] sm:$0xff] }
 0x327   :  { %v716_v25 = vmul.f32 0.5, %v712_v17 }
 0x328   :  { %1387 = vtanh.f32 %v715_v21  ;;  %v2082_v21 = vld [vmem:[#allocation18_spill] sm:$0xff] }
 0x329   :  { %1389 = vtanh.f32 %v716_v25 }
 0x32a   :  { %1391 = vtanh.f32 %v714_v19 }
 0x32b   :  { %1393 = vtanh.f32 %v717_v26 }
 0x332   :  { %v1388_v6 = vpop.eup %1387 }
 0x333   :  { %v721_v32 = vmul.f32 0.5, %v1388_v6  ;;  %v1390_v8 = vpop.eup %1389 }
 0x334   :  { %v722_v28 = vmul.f32 0.5, %v1390_v8  ;;  %v1392_v11 = vpop.eup %1391 }
 0x335   :  { %v724_v44 = vadd.f32 0.5, %v721_v32  ;;  %v1394_v13 = vpop.eup %1393 }
 0x336   :  { %v725_v62 = vadd.f32 0.5, %v722_v28  ;;  %v723_v5 = vmul.f32 0.5, %v1394_v13 }
 0x337   :  { %v729_v29 = vmul.f32 %v1392_v11, %v724_v44 }
 0x338   :  { %v728_v9 = vmul.f32 %v725_v62, %v1812_v35  ;;  %v726_v7 = vadd.f32 0.5, %v723_v5 }
 0x33a   :  { %v1857_v22 = vadd.f32 %v729_v29, %v728_v9 }
 0x33c   :  { %1395 = vtanh.f32 %v1857_v22 }
 0x346   :  { %v1396_v12 = vpop.eup %1395 }
 0x347   :  { %v732_v53 = vmul.f32 %v1396_v12, %v726_v7 }
 0x349   :  { %v733_v23 = vpack.c.bf16 %v732_v53, %v732_v53 }
 0x34b   :  { %1341 = vst [vmem:[%s2053_s4 + $0x8] sm:$0xf] %v733_v23  ;;  %776 = vmatmul.mubr.bf16.vlgmr.msra.gmra.mrb[28].mxu0 %v733_v23  ;;  %817 = vmatmul.mubr.bf16.vlgmr.msra.gmra.mrb[28].mxu1 %v733_v23 }
 0x34c   :  { %858 = vmatpush1.bf16.msra.mxu0 %v1539_v36  ;;  %899 = vmatpush1.bf16.msra.mxu1 %v1541_v37 }
 0x34d   :  { %859 = vmatprep.subr.bf16.mxu0 %v1543_v38  ;;  %900 = vmatprep.subr.bf16.mxu1 %v1545_v39 }
 0x34e   :  { %889 = vmatprep.mubr.bf16.mxu0 %v2077_v30  ;;  %930 = vmatprep.mubr.bf16.mxu1 %v2077_v30 }
 0x350   :  { %860 = vmatpush1.bf16.msra.mxu0 %v1551_v40  ;;  %901 = vmatpush1.bf16.msra.mxu1 %v1553_v41 }
 0x351   :  { %861 = vmatprep.subr.bf16.mxu0 %v1557_v42  ;;  %902 = vmatprep.subr.bf16.mxu1 %v1559_v43 }
 0x354   :  { %862 = vmatpush1.bf16.msra.mxu0 %v1568_v45  ;;  %903 = vmatpush1.bf16.msra.mxu1 %v1570_v46 }
 0x355   :  { %863 = vmatprep.subr.bf16.mxu0 %v1572_v47  ;;  %904 = vmatprep.subr.bf16.mxu1 %v1574_v48 }
 0x358   :  { %864 = vmatpush1.bf16.msra.mxu0 %v1580_v49  ;;  %905 = vmatpush1.bf16.msra.mxu1 %v1582_v50 }
 0x359   :  { %865 = vmatprep.subr.bf16.mxu0 %v1586_v51  ;;  %906 = vmatprep.subr.bf16.mxu1 %v1588_v52 }
 0x35c   :  { %866 = vmatpush1.bf16.msra.mxu0 %v1597_v54  ;;  %907 = vmatpush1.bf16.msra.mxu1 %v1599_v55 }
 0x35d   :  { %867 = vmatprep.subr.bf16.mxu0 %v1601_v56  ;;  %908 = vmatprep.subr.bf16.mxu1 %v1603_v57 }
 0x360   :  { %868 = vmatpush1.bf16.msra.mxu0 %v1609_v58  ;;  %909 = vmatpush1.bf16.msra.mxu1 %v1611_v59 }
 0x361   :  { %869 = vmatprep.subr.bf16.mxu0 %v1615_v60  ;;  %910 = vmatprep.subr.bf16.mxu1 %v1617_v61 }
 0x364   :  { %870 = vmatpush1.bf16.msra.mxu0 %v1626_v63  ;;  %911 = vmatpush1.bf16.msra.mxu1 %v1628_v0 }
 0x365   :  { %871 = vmatprep.subr.bf16.mxu0 %v1630_v1  ;;  %912 = vmatprep.subr.bf16.mxu1 %v1632_v2 }
 0x368   :  { %872 = vmatpush1.bf16.msra.mxu0 %v1638_v3  ;;  %913 = vmatpush1.bf16.msra.mxu1 %v1640_v4 }
 0x369   :  { %971 = vmatprep.subr.bf16.mxu0 %v1530_v33  ;;  %1012 = vmatprep.subr.bf16.mxu1 %v1532_v34 }
 0x41e   :  { %v777_v35 = vpop.f32.mrb[28].mxu0  ;;  %v818_v31 = vpop.f32.mrb[28].mxu1 }
 0x41f   :  { %v825_v14 = vadd.f32 %v777_v35, %v2079_v15  ;;  %v827_v17 = vadd.f32 %v818_v31, %v2080_v16  ;;  %v779_v18 = vpop.f32.mrb[29].mxu0  ;;  %v820_v19 = vpop.f32.mrb[29].mxu1 }
 0x420   :  { %v826_v20 = vadd.f32 %v779_v18, %v2081_v10  ;;  %v828_v27 = vadd.f32 %v820_v19, %v2082_v21  ;;  %v781_v24 = vpop.f32.mrb[30].mxu0  ;;  %v822_v25 = vpop.f32.mrb[30].mxu1 }
 0x421   :  { %v829_v26 = vmul.f32 0.5, %v825_v14  ;;  %v782_v6 = vpop.f32.mrb[31].mxu0  ;;  %v823_v32 = vpop.f32.mrb[31].mxu1  ;;  %v831_v44 = vmul.f32 0.5, %v827_v17 }
 0x422   :  { %v830_v8 = vmul.f32 0.5, %v826_v20 }
 0x423   :  { %1397 = vtanh.f32 %v829_v26 }
 0x424   :  { %1399 = vtanh.f32 %v830_v8 }
 0x425   :  { %1401 = vtanh.f32 %v828_v27 }
 0x426   :  { %1403 = vtanh.f32 %v831_v44 }
 0x42d   :  { %v1398_v28 = vpop.eup %1397 }
 0x42e   :  { %v835_v11 = vmul.f32 0.5, %v1398_v28  ;;  %v1400_v62 = vpop.eup %1399 }
 0x42f   :  { %v836_v9 = vmul.f32 0.5, %v1400_v62  ;;  %v1402_v13 = vpop.eup %1401 }
 0x430   :  { %v838_v29 = vadd.f32 0.5, %v835_v11  ;;  %v1404_v23 = vpop.eup %1403 }
 0x431   :  { %v839_v5 = vadd.f32 0.5, %v836_v9  ;;  %v837_v35 = vmul.f32 0.5, %v1404_v23  ;;  %v1967_v23 = vld [vmem:[#allocation3 + $0x20] sm:$0xff] }
 0x432   :  { %v843_v7 = vmul.f32 %v1402_v13, %v838_v29 }
 0x433   :  { %v842_v12 = vmul.f32 %v839_v5, %v1857_v22  ;;  %v840_v31 = vadd.f32 0.5, %v837_v35  ;;  %v1953_v5 = vld [vmem:[#allocation3] sm:$0xff]  ;;  %v1970_v35 = vld [vmem:[#allocation3 + $0x30] sm:$0xff] }
 0x435   :  { %v1902_v53 = vadd.f32 %v843_v7, %v842_v12  ;;  %v1956_v7 = vld [vmem:[#allocation3 + $0x10] sm:$0xff]  ;;  %v1959_v12 = vld [vmem:[#allocation3 + $0x28] sm:$0xff] }
 0x437   :  { %1405 = vtanh.f32 %v1902_v53 }
 0x441   :  { %v1406_v15 = vpop.eup %1405 }
 0x442   :  { %v846_v14 = vmul.f32 %v1406_v15, %v840_v31  ;;  %v1973_v31 = vld [vmem:[#allocation3 + $0x48] sm:$0xff]  ;;  %v1976_v15 = vld [vmem:[#allocation3 + $0x58] sm:$0xff] }
 0x444   :  { %v847_v16 = vpack.c.bf16 %v846_v14, %v846_v14  ;;  %v1979_v14 = vld [vmem:[#allocation3 + $0x40] sm:$0xff] }
 0x446   :  { %1342 = vst [vmem:[%s2053_s4 + $0xc] sm:$0xf] %v847_v16  ;;  %890 = vmatmul.mubr.bf16.vlgmr.msra.gmra.mrb[32].mxu0 %v847_v16  ;;  %931 = vmatmul.mubr.bf16.vlgmr.msra.gmra.mrb[32].mxu1 %v847_v16  ;;  %v1982_v16 = vld [vmem:[#allocation3 + $0x50] sm:$0xff] }
 0x447   :  { %972 = vmatpush1.bf16.msra.mxu0 %v1539_v36  ;;  %1013 = vmatpush1.bf16.msra.mxu1 %v1541_v37 }
 0x448   :  { %973 = vmatprep.subr.bf16.mxu0 %v1543_v38  ;;  %1014 = vmatprep.subr.bf16.mxu1 %v1545_v39  ;;  %v2083_v38 = vld [vmem:[#allocation19_spill] sm:$0xff] }
 0x449   :  { %1003 = vmatprep.mubr.bf16.mxu0 %v2077_v30  ;;  %1044 = vmatprep.mubr.bf16.mxu1 %v2077_v30 }
 0x44b   :  { %974 = vmatpush1.bf16.msra.mxu0 %v1551_v40  ;;  %1015 = vmatpush1.bf16.msra.mxu1 %v1553_v41  ;;  %v2084_v40 = vld [vmem:[#allocation20_spill] sm:$0xff] }
 0x44c   :  { %975 = vmatprep.subr.bf16.mxu0 %v1557_v42  ;;  %1016 = vmatprep.subr.bf16.mxu1 %v1559_v43 }
 0x44f   :  { %976 = vmatpush1.bf16.msra.mxu0 %v1568_v45  ;;  %1017 = vmatpush1.bf16.msra.mxu1 %v1570_v46  ;;  %v2085_v45 = vld [vmem:[#allocation21_spill] sm:$0xff] }
 0x450   :  { %977 = vmatprep.subr.bf16.mxu0 %v1572_v47  ;;  %1018 = vmatprep.subr.bf16.mxu1 %v1574_v48  ;;  %v2086_v47 = vld [vmem:[#allocation22_spill] sm:$0xff] }
 0x453   :  { %978 = vmatpush1.bf16.msra.mxu0 %v1580_v49  ;;  %1019 = vmatpush1.bf16.msra.mxu1 %v1582_v50 }
 0x454   :  { %979 = vmatprep.subr.bf16.mxu0 %v1586_v51  ;;  %1020 = vmatprep.subr.bf16.mxu1 %v1588_v52 }
 0x457   :  { %980 = vmatpush1.bf16.msra.mxu0 %v1597_v54  ;;  %1021 = vmatpush1.bf16.msra.mxu1 %v1599_v55 }
 0x458   :  { %981 = vmatprep.subr.bf16.mxu0 %v1601_v56  ;;  %1022 = vmatprep.subr.bf16.mxu1 %v1603_v57 }
 0x45b   :  { %982 = vmatpush1.bf16.msra.mxu0 %v1609_v58  ;;  %1023 = vmatpush1.bf16.msra.mxu1 %v1611_v59 }
 0x45c   :  { %983 = vmatprep.subr.bf16.mxu0 %v1615_v60  ;;  %1024 = vmatprep.subr.bf16.mxu1 %v1617_v61 }
 0x45f   :  { %984 = vmatpush1.bf16.msra.mxu0 %v1626_v63  ;;  %1025 = vmatpush1.bf16.msra.mxu1 %v1628_v0 }
 0x460   :  { %985 = vmatprep.subr.bf16.mxu0 %v1630_v1  ;;  %1026 = vmatprep.subr.bf16.mxu1 %v1632_v2 }
 0x463   :  { %986 = vmatpush1.bf16.msra.mxu0 %v1638_v3  ;;  %1027 = vmatpush1.bf16.msra.mxu1 %v1640_v4 }
 0x464   :  { %1085 = vmatprep.subr.bf16.mxu0 %v1530_v33  ;;  %1126 = vmatprep.subr.bf16.mxu1 %v1532_v34 }
 0x519   :  { %v891_v36 = vpop.f32.mrb[32].mxu0  ;;  %v932_v37 = vpop.f32.mrb[32].mxu1 }
 0x51a   :  { %v939_v39 = vadd.f32 %v891_v36, %v2083_v38  ;;  %v941_v41 = vadd.f32 %v932_v37, %v2084_v40  ;;  %v893_v42 = vpop.f32.mrb[33].mxu0  ;;  %v934_v43 = vpop.f32.mrb[33].mxu1  ;;  %v1985_v36 = vld [vmem:[#allocation3 + $0x68] sm:$0xff]  ;;  %v1988_v37 = vld [vmem:[#allocation3 + $0x78] sm:$0xff] }
 0x51b   :  { %v940_v46 = vadd.f32 %v893_v42, %v2085_v45  ;;  %v942_v48 = vadd.f32 %v934_v43, %v2086_v47  ;;  %v895_v22 = vpop.f32.mrb[34].mxu0  ;;  %v936_v17 = vpop.f32.mrb[34].mxu1 }
 0x51c   :  { %v943_v18 = vmul.f32 0.5, %v939_v39  ;;  %v896_v19 = vpop.f32.mrb[35].mxu0  ;;  %v937_v10 = vpop.f32.mrb[35].mxu1  ;;  %v945_v34 = vmul.f32 0.5, %v941_v41 }
 0x51d   :  { %v944_v33 = vmul.f32 0.5, %v940_v46 }
 0x51e   :  { %1407 = vtanh.f32 %v943_v18 }
 0x51f   :  { %1409 = vtanh.f32 %v944_v33 }
 0x520   :  { %1411 = vtanh.f32 %v942_v48 }
 0x521   :  { %1413 = vtanh.f32 %v945_v34 }
 0x528   :  { %v1408_v20 = vpop.eup %1407 }
 0x529   :  { %v949_v21 = vmul.f32 0.5, %v1408_v20  ;;  %v1410_v27 = vpop.eup %1409 }
 0x52a   :  { %v950_v25 = vmul.f32 0.5, %v1410_v27  ;;  %v1412_v26 = vpop.eup %1411  ;;  %v1461_v27 = vld [vmem:[#allocation3 + $0x60] sm:$0xff] }
 0x52b   :  { %v952_v24 = vadd.f32 0.5, %v949_v21  ;;  %v1414_v28 = vpop.eup %1413 }
 0x52c   :  { %v953_v6 = vadd.f32 0.5, %v950_v25  ;;  %v951_v11 = vmul.f32 0.5, %v1414_v28  ;;  %v1464_v25 = vld [vmem:[#allocation3 + $0x98] sm:$0xff]  ;;  %v1470_v28 = vld [vmem:[#allocation3 + $0xb0] sm:$0xff] }
 0x52d   :  { %v957_v32 = vmul.f32 %v1412_v26, %v952_v24  ;;  %v1462_v24 = vld [vmem:[#allocation3 + $0x70] sm:$0xff]  ;;  %v1465_v26 = vld [vmem:[#allocation3 + $0x80] sm:$0xff] }
 0x52e   :  { %v956_v8 = vmul.f32 %v953_v6, %v1902_v53  ;;  %v954_v62 = vadd.f32 0.5, %v951_v11  ;;  %v1962_v53 = vld [vmem:[#allocation3 + $0x38] sm:$0xff]  ;;  %v1466_v6 = vld [vmem:[#allocation3 + $0x90] sm:$0xff]  ;;  %v1471_v11 = vld [vmem:[#allocation3 + $0xc8] sm:$0xff] }
 0x530   :  { %v1947_v44 = vadd.f32 %v957_v32, %v956_v8  ;;  %v1467_v32 = vld [vmem:[#allocation3 + $0xa8] sm:$0xff]  ;;  %v1468_v8 = vld [vmem:[#allocation3 + $0xb8] sm:$0xff] }
 0x532   :  { %1415 = vtanh.f32 %v1947_v44 }
 0x53c   :  { %v1416_v29 = vpop.eup %1415 }
 0x53d   :  { %v960_v9 = vmul.f32 %v1416_v29, %v954_v62  ;;  %v1472_v62 = vld [vmem:[#allocation3 + $0xd8] sm:$0xff]  ;;  %v1473_v29 = vld [vmem:[#allocation3 + $0xc0] sm:$0xff] }
 0x53f   :  { %v961_v13 = vpack.c.bf16 %v960_v9, %v960_v9  ;;  %v1474_v9 = vld [vmem:[#allocation3 + $0xd0] sm:$0xff] }
 0x541   :  { %1343 = vst [vmem:[%s2053_s4 + $0x10] sm:$0xf] %v961_v13  ;;  %1004 = vmatmul.mubr.bf16.vlgmr.msra.gmra.mrb[36].mxu0 %v961_v13  ;;  %1045 = vmatmul.mubr.bf16.vlgmr.msra.gmra.mrb[36].mxu1 %v961_v13  ;;  %v1475_v13 = vld [vmem:[#allocation3 + $0xe8] sm:$0xff] }
 0x542   :  { %1086 = vmatpush1.bf16.msra.mxu0 %v1953_v5  ;;  %1127 = vmatpush1.bf16.msra.mxu1 %v1956_v7 }
 0x543   :  { %1087 = vmatprep.subr.bf16.mxu0 %v1959_v12  ;;  %1128 = vmatprep.subr.bf16.mxu1 %v1962_v53 }
 0x544   :  { %1117 = vmatprep.mubr.bf16.mxu0 %v2077_v30  ;;  %1158 = vmatprep.mubr.bf16.mxu1 %v2077_v30 }
 0x546   :  { %1088 = vmatpush1.bf16.msra.mxu0 %v1967_v23  ;;  %1129 = vmatpush1.bf16.msra.mxu1 %v1970_v35 }
 0x547   :  { %1089 = vmatprep.subr.bf16.mxu0 %v1973_v31  ;;  %1130 = vmatprep.subr.bf16.mxu1 %v1976_v15 }
 0x54a   :  { %1090 = vmatpush1.bf16.msra.mxu0 %v1979_v14  ;;  %1131 = vmatpush1.bf16.msra.mxu1 %v1982_v16 }
 0x54b   :  { %1091 = vmatprep.subr.bf16.mxu0 %v1985_v36  ;;  %1132 = vmatprep.subr.bf16.mxu1 %v1988_v37 }
 0x54e   :  { %1092 = vmatpush1.bf16.msra.mxu0 %v1580_v49  ;;  %1133 = vmatpush1.bf16.msra.mxu1 %v1582_v50  ;;  %v1459_v49 = vld [vmem:[#allocation3 + $0x8] sm:$0xff]  ;;  %v1460_v50 = vld [vmem:[#allocation3 + $0x18] sm:$0xff] }
 0x54f   :  { %1093 = vmatprep.subr.bf16.mxu0 %v1586_v51  ;;  %1134 = vmatprep.subr.bf16.mxu1 %v1588_v52 }
 0x552   :  { %1094 = vmatpush1.bf16.msra.mxu0 %v1597_v54  ;;  %1135 = vmatpush1.bf16.msra.mxu1 %v1599_v55  ;;  %v2087_v54 = vld [vmem:[#allocation23_spill] sm:$0xff] }
 0x553   :  { %1095 = vmatprep.subr.bf16.mxu0 %v1601_v56  ;;  %1136 = vmatprep.subr.bf16.mxu1 %v1603_v57  ;;  %v2088_v56 = vld [vmem:[#allocation24_spill] sm:$0xff] }
 0x556   :  { %1096 = vmatpush1.bf16.msra.mxu0 %v1609_v58  ;;  %1137 = vmatpush1.bf16.msra.mxu1 %v1611_v59 }
 0x557   :  { %1097 = vmatprep.subr.bf16.mxu0 %v1615_v60  ;;  %1138 = vmatprep.subr.bf16.mxu1 %v1617_v61  ;;  %v2089_v60 = vld [vmem:[#allocation25_spill] sm:$0xff] }
 0x55a   :  { %1098 = vmatpush1.bf16.msra.mxu0 %v1626_v63  ;;  %1139 = vmatpush1.bf16.msra.mxu1 %v1628_v0  ;;  %v2090_v63 = vld [vmem:[#allocation26_spill] sm:$0xff] }
 0x55b   :  { %1099 = vmatprep.subr.bf16.mxu0 %v1630_v1  ;;  %1140 = vmatprep.subr.bf16.mxu1 %v1632_v2 }
 0x55e   :  { %1100 = vmatpush1.bf16.msra.mxu0 %v1638_v3  ;;  %1141 = vmatpush1.bf16.msra.mxu1 %v1640_v4 }
 0x55f   :  { %1199 = vmatprep.subr.bf16.mxu0 %v1459_v49  ;;  %1240 = vmatprep.subr.bf16.mxu1 %v1460_v50  ;;  %v2094_v50 = vld [vmem:[#allocation30_spill] sm:$0xff] }
 0x614   :  { %v1005_v51 = vpop.f32.mrb[36].mxu0  ;;  %v1046_v52 = vpop.f32.mrb[36].mxu1 }
 0x615   :  { %v1053_v55 = vadd.f32 %v1005_v51, %v2087_v54  ;;  %v1055_v57 = vadd.f32 %v1046_v52, %v2088_v56  ;;  %v1007_v58 = vpop.f32.mrb[37].mxu0  ;;  %v1048_v59 = vpop.f32.mrb[37].mxu1 }
 0x616   :  { %v1054_v61 = vadd.f32 %v1007_v58, %v2089_v60  ;;  %v1056_v0 = vadd.f32 %v1048_v59, %v2090_v63  ;;  %v1009_v1 = vpop.f32.mrb[38].mxu0  ;;  %v1050_v2 = vpop.f32.mrb[38].mxu1 }
 0x617   :  { %v1057_v3 = vmul.f32 0.5, %v1053_v55  ;;  %v1010_v4 = vpop.f32.mrb[39].mxu0  ;;  %v1051_v38 = vpop.f32.mrb[39].mxu1  ;;  %v1059_v40 = vmul.f32 0.5, %v1055_v57 }
 0x618   :  { %v1058_v39 = vmul.f32 0.5, %v1054_v61 }
 0x619   :  { %1417 = vtanh.f32 %v1057_v3 }
 0x61a   :  { %1419 = vtanh.f32 %v1058_v39 }
 0x61b   :  { %1421 = vtanh.f32 %v1056_v0 }
 0x61c   :  { %1423 = vtanh.f32 %v1059_v40 }
 0x623   :  { %v1418_v41 = vpop.eup %1417 }
 0x624   :  { %v1063_v42 = vmul.f32 0.5, %v1418_v41  ;;  %v1420_v43 = vpop.eup %1419 }
 0x625   :  { %v1064_v46 = vmul.f32 0.5, %v1420_v43  ;;  %v1422_v47 = vpop.eup %1421 }
 0x626   :  { %v1066_v45 = vadd.f32 0.5, %v1063_v42  ;;  %v1424_v19 = vpop.eup %1423 }
 0x627   :  { %v1067_v48 = vadd.f32 0.5, %v1064_v46  ;;  %v1065_v10 = vmul.f32 0.5, %v1424_v19  ;;  %v2096_v19 = vld [vmem:[#allocation32_spill] sm:$0xff] }
 0x628   :  { %v1071_v22 = vmul.f32 %v1422_v47, %v1066_v45 }
 0x629   :  { %v1070_v17 = vmul.f32 %v1067_v48, %v1947_v44  ;;  %v1068_v33 = vadd.f32 0.5, %v1065_v10  ;;  %v1469_v44 = vld [vmem:[#allocation3 + $0xa0] sm:$0xff] }
 0x62b   :  { %v2014_v18 = vadd.f32 %v1071_v22, %v1070_v17  ;;  %v2095_v22 = vld [vmem:[#allocation31_spill] sm:$0xff] }
 0x62d   :  { %1425 = vtanh.f32 %v2014_v18 }
 0x637   :  { %v1426_v34 = vpop.eup %1425 }
 0x638   :  { %v1074_v20 = vmul.f32 %v1426_v34, %v1068_v33  ;;  %v2097_v34 = vld [vmem:[#allocation33_spill] sm:$0xff] }
 0x63a   :  { %v1075_v21 = vpack.c.bf16 %v1074_v20, %v1074_v20 }
 0x63c   :  { %1344 = vst [vmem:[%s2053_s4 + $0x14] sm:$0xf] %v1075_v21  ;;  %1118 = vmatmul.mubr.bf16.vlgmr.msra.gmra.mrb[40].mxu0 %v1075_v21  ;;  %1159 = vmatmul.mubr.bf16.vlgmr.msra.gmra.mrb[40].mxu1 %v1075_v21  ;;  %v2098_v21 = vld [vmem:[#allocation34_spill] sm:$0xff] }
 0x63d   :  { %1200 = vmatpush1.bf16.msra.mxu0 %v1953_v5  ;;  %1241 = vmatpush1.bf16.msra.mxu1 %v1956_v7  ;;  %v1476_v5 = vld [vmem:[#allocation3 + $0xf8] sm:$0xff]  ;;  %v1477_v7 = vld [vmem:[#allocation3 + $0xe0] sm:$0xff] }
 0x63e   :  { %1201 = vmatprep.subr.bf16.mxu0 %v1959_v12  ;;  %1242 = vmatprep.subr.bf16.mxu1 %v1962_v53  ;;  %v1478_v12 = vld [vmem:[#allocation3 + $0xf0] sm:$0xff] }
 0x63f   :  { %1231 = vmatprep.mubr.bf16.mxu0 %v2077_v30  ;;  %1272 = vmatprep.mubr.bf16.mxu1 %v2077_v30  ;;  %v1463_v30 = vld [vmem:[#allocation3 + $0x88] sm:$0xff] }
 0x641   :  { %1202 = vmatpush1.bf16.msra.mxu0 %v1967_v23  ;;  %1243 = vmatpush1.bf16.msra.mxu1 %v1970_v35  ;;  %v2091_v35 = vld [vmem:[#allocation27_spill] sm:$0xff] }
 0x642   :  { %1203 = vmatprep.subr.bf16.mxu0 %v1973_v31  ;;  %1244 = vmatprep.subr.bf16.mxu1 %v1976_v15  ;;  %v2092_v15 = vld [vmem:[#allocation28_spill] sm:$0xff] }
 0x645   :  { %1204 = vmatpush1.bf16.msra.mxu0 %v1979_v14  ;;  %1245 = vmatpush1.bf16.msra.mxu1 %v1982_v16 }
 0x646   :  { %1205 = vmatprep.subr.bf16.mxu0 %v1985_v36  ;;  %1246 = vmatprep.subr.bf16.mxu1 %v1988_v37  ;;  %v2093_v37 = vld [vmem:[#allocation29_spill] sm:$0xff] }
 0x649   :  { %1206 = vmatpush1.bf16.msra.mxu0 %v1461_v27  ;;  %1247 = vmatpush1.bf16.msra.mxu1 %v1462_v24 }
 0x64a   :  { %1207 = vmatprep.subr.bf16.mxu0 %v1463_v30  ;;  %1248 = vmatprep.subr.bf16.mxu1 %v1464_v25 }
 0x64d   :  { %1208 = vmatpush1.bf16.msra.mxu0 %v1465_v26  ;;  %1249 = vmatpush1.bf16.msra.mxu1 %v1466_v6 }
 0x64e   :  { %1209 = vmatprep.subr.bf16.mxu0 %v1467_v32  ;;  %1250 = vmatprep.subr.bf16.mxu1 %v1468_v8 }
 0x651   :  { %1210 = vmatpush1.bf16.msra.mxu0 %v1469_v44  ;;  %1251 = vmatpush1.bf16.msra.mxu1 %v1470_v28 }
 0x652   :  { %1211 = vmatprep.subr.bf16.mxu0 %v1471_v11  ;;  %1252 = vmatprep.subr.bf16.mxu1 %v1472_v62 }
 0x655   :  { %1212 = vmatpush1.bf16.msra.mxu0 %v1473_v29  ;;  %1253 = vmatpush1.bf16.msra.mxu1 %v1474_v9 }
 0x656   :  { %1213 = vmatprep.subr.bf16.mxu0 %v1475_v13  ;;  %1254 = vmatprep.subr.bf16.mxu1 %v1476_v5 }
 0x659   :  { %1214 = vmatpush1.bf16.msra.mxu0 %v1477_v7  ;;  %1255 = vmatpush1.bf16.msra.mxu1 %v1478_v12 }
 0x70f   :  { %v1119_v53 = vpop.f32.mrb[40].mxu0  ;;  %v1160_v23 = vpop.f32.mrb[40].mxu1 }
 0x710   :  { %v1167_v31 = vadd.f32 %v1119_v53, %v2091_v35  ;;  %v1169_v14 = vadd.f32 %v1160_v23, %v2092_v15  ;;  %v1121_v16 = vpop.f32.mrb[41].mxu0  ;;  %v1162_v36 = vpop.f32.mrb[41].mxu1 }
 0x711   :  { %v1168_v49 = vadd.f32 %v1121_v16, %v2093_v37  ;;  %v1170_v51 = vadd.f32 %v1162_v36, %v2094_v50  ;;  %v1123_v52 = vpop.f32.mrb[42].mxu0  ;;  %v1164_v54 = vpop.f32.mrb[42].mxu1 }
 0x712   :  { %v1171_v55 = vmul.f32 0.5, %v1167_v31  ;;  %v1124_v56 = vpop.f32.mrb[43].mxu0  ;;  %v1165_v57 = vpop.f32.mrb[43].mxu1  ;;  %v1173_v59 = vmul.f32 0.5, %v1169_v14 }
 0x713   :  { %v1172_v58 = vmul.f32 0.5, %v1168_v49 }
 0x714   :  { %1427 = vtanh.f32 %v1171_v55 }
 0x715   :  { %1429 = vtanh.f32 %v1172_v58 }
 0x716   :  { %1431 = vtanh.f32 %v1170_v51 }
 0x717   :  { %1433 = vtanh.f32 %v1173_v59 }
 0x71e   :  { %v1428_v60 = vpop.eup %1427 }
 0x71f   :  { %v1177_v61 = vmul.f32 0.5, %v1428_v60  ;;  %v1430_v63 = vpop.eup %1429 }
 0x720   :  { %v1178_v1 = vmul.f32 0.5, %v1430_v63  ;;  %v1432_v2 = vpop.eup %1431 }
 0x721   :  { %v1180_v0 = vadd.f32 0.5, %v1177_v61  ;;  %v1434_v40 = vpop.eup %1433 }
 0x722   :  { %v1181_v3 = vadd.f32 0.5, %v1178_v1  ;;  %v1179_v41 = vmul.f32 0.5, %v1434_v40 }
 0x723   :  { %v1185_v4 = vmul.f32 %v1432_v2, %v1180_v0 }
 0x724   :  { %v1184_v38 = vmul.f32 %v1181_v3, %v2014_v18  ;;  %v1182_v42 = vadd.f32 0.5, %v1179_v41 }
 0x726   :  { %v1186_v39 = vadd.f32 %v1185_v4, %v1184_v38 }
 0x728   :  { %1435 = vtanh.f32 %v1186_v39 }
 0x732   :  { %v1436_v43 = vpop.eup %1435 }
 0x733   :  { %v1188_v45 = vmul.f32 %v1436_v43, %v1182_v42 }
 0x735   :  { %v1189_v46 = vpack.c.bf16 %v1188_v45, %v1188_v45 }
 0x737   :  { %1345 = vst [vmem:[%s2053_s4 + $0x18] sm:$0xf] %v1189_v46  ;;  %1232 = vmatmul.mubr.bf16.vlgmr.msra.gmra.mrb[44].mxu0 %v1189_v46  ;;  %1273 = vmatmul.mubr.bf16.vlgmr.msra.gmra.mrb[44].mxu1 %v1189_v46 }
 0x80a   :  { %v1233_v47 = vpop.f32.mrb[44].mxu0  ;;  %v1274_v48 = vpop.f32.mrb[44].mxu1 }
 0x80b   :  { %v1281_v17 = vadd.f32 %v1233_v47, %v2095_v22  ;;  %v1283_v18 = vadd.f32 %v1274_v48, %v2096_v19  ;;  %v1235_v10 = vpop.f32.mrb[45].mxu0  ;;  %v1276_v33 = vpop.f32.mrb[45].mxu1 }
 0x80c   :  { %v1282_v20 = vadd.f32 %v1235_v10, %v2097_v34  ;;  %v1284_v27 = vadd.f32 %v1276_v33, %v2098_v21  ;;  %v1237_v24 = vpop.f32.mrb[46].mxu0  ;;  %v1278_v30 = vpop.f32.mrb[46].mxu1 }
 0x80d   :  { %v1285_v25 = vmul.f32 0.5, %v1281_v17  ;;  %v1238_v26 = vpop.f32.mrb[47].mxu0  ;;  %v1279_v6 = vpop.f32.mrb[47].mxu1  ;;  %v1287_v8 = vmul.f32 0.5, %v1283_v18 }
 0x80e   :  { %v1286_v32 = vmul.f32 0.5, %v1282_v20 }
 0x80f   :  { %1437 = vtanh.f32 %v1285_v25 }
 0x810   :  { %1439 = vtanh.f32 %v1286_v32 }
 0x811   :  { %1441 = vtanh.f32 %v1284_v27 }
 0x812   :  { %1443 = vtanh.f32 %v1287_v8 }
 0x819   :  { %v1438_v44 = vpop.eup %1437 }
 0x81a   :  { %v1291_v28 = vmul.f32 0.5, %v1438_v44  ;;  %v1440_v11 = vpop.eup %1439 }
 0x81b   :  { %v1292_v29 = vmul.f32 0.5, %v1440_v11  ;;  %v1442_v9 = vpop.eup %1441 }
 0x81c   :  { %v1294_v62 = vadd.f32 0.5, %v1291_v28  ;;  %v1444_v53 = vpop.eup %1443 }
 0x81d   :  { %v1295_v13 = vadd.f32 0.5, %v1292_v29  ;;  %v1293_v23 = vmul.f32 0.5, %v1444_v53 }
 0x81e   :  { %v1299_v5 = vmul.f32 %v1442_v9, %v1294_v62 }
 0x81f   :  { %v1298_v7 = vmul.f32 %v1295_v13, %v1186_v39  ;;  %v1296_v35 = vadd.f32 0.5, %v1293_v23 }
 0x821   :  { %v1300_v12 = vadd.f32 %v1299_v5, %v1298_v7 }
 0x823   :  { %1445 = vtanh.f32 %v1300_v12 }
 0x82d   :  { %v1446_v31 = vpop.eup %1445 }
 0x82e   :  { %v1302_v15 = vmul.f32 %v1446_v31, %v1296_v35 }
 0x830   :  { %v1303_v14 = vpack.c.bf16 %v1302_v15, %v1302_v15 }
 0x832   :  { %1346 = vst [vmem:[%s2053_s4 + $0x1c] sm:$0xf] %v1303_v14 }
 0x833   :  { %1312 = vsyncmov [#allocation7] }
 0x836   :  { %s1313_s6 = vpop.sfrf %1312 }
 0x837   :  { %p1347_p0 = scmp.ne.s32.totalorder %s1313_s6, 0 }
 0x839   :  { %1317 = shalt.err (%p1347_p0)  }
 0x83a   :  { %1319 = vsyncmov [#allocation7 + $0x1] }
 0x83d   :  { %s1320_s7 = vpop.sfrf %1319 }
 0x83e   :  { %p1348_p1 = scmp.ne.s32.totalorder %s1320_s7, 0 }
 0x840   :  { %1324 = shalt.err (%p1348_p1)  }

</bundles_post_ra>
